<compile_context>
chip_gen: v5e
topology: v5e:2x2
jax: 0.10.0
libtpu: 0.0.40
codegen_flags: <defaults>
</compile_context>

<pallas_src>
import functools

import jax
import jax.numpy as jnp
from jax.experimental import pallas as pl
from jax.experimental.pallas import tpu as pltpu


def _residual_nhwc_kernel(x_ref, w_ref, b_ref, scale_ref, shift_ref, o_ref,
                          *, H, W, K, pad):
    """Fused depthwise-conv -> GELU -> BN(eval) -> + residual (channels-last).

    x_ref    : (1, H, W, Cb)  VMEM  input block (also the residual)
    w_ref    : (K*K, Cb)      VMEM  depthwise conv weights, tap-major
    b_ref    : (1, Cb)        VMEM  conv bias
    scale_ref: (1, Cb)        VMEM  gamma / sqrt(var + eps)
    shift_ref: (1, Cb)        VMEM  beta - mean * scale
    o_ref    : (1, H, W, Cb)  VMEM  output block
    """
    Cb = x_ref.shape[-1]
    x = x_ref[0].astype(jnp.float32)                     # (H, W, Cb)

    # Hoist all parameter loads out of the tap loop.
    w = w_ref[...].astype(jnp.float32)                   # (K*K, Cb)
    bias = b_ref[0].astype(jnp.float32)                  # (Cb,)
    scale = scale_ref[0].astype(jnp.float32)             # (Cb,)
    shift = shift_ref[0].astype(jnp.float32)             # (Cb,)

    # Zero halo built as an in-register value (no padded HBM copy, no scratch).
    if pad > 0:
        zr = jnp.zeros((pad, W, Cb), jnp.float32)
        xp = jnp.concatenate([zr, x, zr], axis=0)        # (H+2p, W,    Cb)
        zc = jnp.zeros((H + 2 * pad, pad, Cb), jnp.float32)
        xp = jnp.concatenate([zc, xp, zc], axis=1)       # (H+2p, W+2p, Cb)
    else:
        xp = x

    # Depthwise convolution: one sublane-shifted column slab per kw, cheap
    # outer-dim slices per kh, full-lane FMAs against per-channel weight rows.
    acc = jnp.zeros((H, W, Cb), jnp.float32)
    for kw in range(K):
        col = xp[:, kw:kw + W, :]                        # (H+2p, W, Cb)
        for kh in range(K):
            acc = acc + col[kh:kh + H] * w[kh * K + kw]
    acc = acc + bias

    # Exact (erf) GELU, matching nn.GELU() default.  lax.erf is not lowerable
    # by Mosaic, so use the A&S 7.1.26 polynomial (|abs err| <= 1.5e-7).
    z = acc * 0.7071067811865476
    az = jnp.abs(z)
    t = 1.0 / (1.0 + 0.3275911 * az)
    poly = t * (0.254829592 + t * (-0.284496736 + t * (1.421413741
               + t * (-1.453152027 + t * 1.061405429))))
    erf_abs = 1.0 - poly * jnp.exp(-az * az)
    erf_z = jnp.where(z < 0.0, -erf_abs, erf_abs)
    y = 0.5 * acc * (1.0 + erf_z)

    # BatchNorm2d (inference) folded to per-channel scale/shift, then residual.
    y = y * scale + shift
    o_ref[0] = (y + x).astype(o_ref.dtype)


def _pick_c_blk(C, H, W):
    """Largest lane-dense channel tile that keeps the per-step VMEM footprint small."""
    budget = 24 * 1024 * 1024
    for cand in (512, 256, 128):
        if C % cand == 0 and 8 * H * W * cand * 4 <= budget:
            return cand
    return C  # small / odd channel counts: full-extent block (allowed by (8,128) rule)


def _residual_forward_nhwc(x, wflat, b, scale, shift):
    """Channels-last core: x (B, H, W, C); wflat (K*K, C); b/scale/shift (1, C)."""
    B, H, W, C = x.shape
    KK = wflat.shape[0]
    K = int(round(KK ** 0.5))
    pad = K // 2
    c_blk = _pick_c_blk(C, H, W)

    kernel = functools.partial(_residual_nhwc_kernel, H=H, W=W, K=K, pad=pad)

    elems = int(B * H * W * C)
    itemsize = jnp.dtype(x.dtype).itemsize
    cost = pl.CostEstimate(
        flops=elems * (2 * K * K + 16),
        transcendentals=elems,
        bytes_accessed=2 * elems * itemsize + (KK + 3) * C * 4,
    )

    return pl.pallas_call(
        kernel,
        out_shape=jax.ShapeDtypeStruct((B, H, W, C), x.dtype),
        grid_spec=pltpu.PrefetchScalarGridSpec(
            num_scalar_prefetch=0,
            grid=(B, C // c_blk),
            in_specs=[
                pl.BlockSpec((1, H, W, c_blk), lambda bb, cc: (bb, 0, 0, cc)),
                pl.BlockSpec((KK, c_blk), lambda bb, cc: (0, cc)),
                pl.BlockSpec((1, c_blk), lambda bb, cc: (0, cc)),
                pl.BlockSpec((1, c_blk), lambda bb, cc: (0, cc)),
                pl.BlockSpec((1, c_blk), lambda bb, cc: (0, cc)),
            ],
            out_specs=pl.BlockSpec((1, H, W, c_blk), lambda bb, cc: (bb, 0, 0, cc)),
        ),
        compiler_params=pltpu.CompilerParams(
            dimension_semantics=("parallel", "parallel")),
        cost_estimate=cost,
    )(x, wflat, b, scale, shift)


def residual_forward(x, w, b, gamma, beta, running_mean, running_var, eps=1e-5):
    """Residual(fn)(x) = fn(x) + x, fn = depthwise conv + exact GELU + BN (eval).

    Accepts PyTorch NCHW layout and Conv2d(dim, dim, K, groups=dim) weights of
    shape (C, 1, K, K).  The kernel runs channels-last (NHWC); the transposes
    and BN folding below are plain-JAX layout plumbing — a channels-last
    pipeline can call `_residual_forward_nhwc` directly.
    """
    B, C, H, W = x.shape
    K = w.shape[-1]
    scale = (gamma / jnp.sqrt(running_var + eps)).astype(jnp.float32)
    shift = (beta.astype(jnp.float32) - running_mean.astype(jnp.float32) * scale)
    wflat = jnp.transpose(w.reshape(C, K * K)).astype(jnp.float32)   # (K*K, C)
    x_nhwc = jnp.transpose(x, (0, 2, 3, 1))
    y = _residual_forward_nhwc(
        x_nhwc, wflat,
        b.reshape(1, C).astype(jnp.float32),
        scale.reshape(1, C),
        shift.reshape(1, C))
    return jnp.transpose(y, (0, 3, 1, 2))


def residual_forward_ref(x, w, b, gamma, beta, running_mean, running_var, eps=1e-5):
    """Pure-JAX reference of the same forward (correctness check), NCHW."""
    C = x.shape[1]
    K = w.shape[-1]
    y = jax.lax.conv_general_dilated(
        x, w.reshape(C, 1, K, K), window_strides=(1, 1), padding="SAME",
        dimension_numbers=("NCHW", "OIHW", "NCHW"), feature_group_count=C)
    y = y + b.reshape(1, C, 1, 1)
    y = 0.5 * y * (1.0 + jax.lax.erf(y * 0.7071067811865476))
    scale = gamma / jnp.sqrt(running_var + eps)
    shift = beta - running_mean * scale
    y = y * scale.reshape(1, C, 1, 1) + shift.reshape(1, C, 1, 1)
    return y + x


if __name__ == "__main__":
    key = jax.random.PRNGKey(0)
    k_x, k_w, k_b, k_g, k_be, k_m, k_v = jax.random.split(key, 7)

    B, C, H, W, K = 2, 4, 16, 16, 3

    x = jax.random.normal(k_x, (B, C, H, W), dtype=jnp.float32)
    # Parameter shapes match nn.Conv2d(C, C, 3, groups=C) + nn.BatchNorm2d(C).
    w = jax.random.normal(k_w, (C, 1, K, K), dtype=jnp.float32) * 0.1
    b = jax.random.normal(k_b, (C,), dtype=jnp.float32) * 0.1
    gamma = 1.0 + 0.1 * jax.random.normal(k_g, (C,), dtype=jnp.float32)
    beta = 0.1 * jax.random.normal(k_be, (C,), dtype=jnp.float32)
    running_mean = 0.1 * jax.random.normal(k_m, (C,), dtype=jnp.float32)
    running_var = 1.0 + 0.1 * jax.nn.softplus(
        jax.random.normal(k_v, (C,), dtype=jnp.float32))

    out = residual_forward(x, w, b, gamma, beta, running_mean, running_var)
    out = jax.block_until_ready(out)

    ref = residual_forward_ref(x, w, b, gamma, beta, running_mean, running_var)
    assert out.shape == (B, C, H, W)
    assert jnp.allclose(out, ref, atol=2e-5, rtol=2e-5), "mismatch vs pure-JAX reference"

    print("KERNEL_OK")
</pallas_src>

<mosaic_0001>
module attributes {stable_mosaic.version = 11 : i64} {
  func.func @_residual_nhwc_kernel(%arg0: i32, %arg1: i32, %arg2: memref<1x16x16x4xf32, #tpu.memory_space<vmem>>, %arg3: memref<9x4xf32, #tpu.memory_space<vmem>>, %arg4: memref<1x4xf32, #tpu.memory_space<vmem>>, %arg5: memref<1x4xf32, #tpu.memory_space<vmem>>, %arg6: memref<1x4xf32, #tpu.memory_space<vmem>>, %arg7: memref<1x16x16x4xf32, #tpu.memory_space<vmem>>) attributes {dimension_semantics = [#tpu.dimension_semantics<parallel>, #tpu.dimension_semantics<parallel>], iteration_bounds = array<i64: 2, 1>, scalar_prefetch = 0 : i64, scratch_operands = 0 : i64, tpu.core_type = #tpu.core_type<tc>, window_params = [{transform_indices = @transform_0, window_bounds = array<i64: 1, 16, 16, 4>}, {transform_indices = @transform_1, window_bounds = array<i64: 9, 4>}, {transform_indices = @transform_2, window_bounds = array<i64: 1, 4>}, {transform_indices = @transform_3, window_bounds = array<i64: 1, 4>}, {transform_indices = @transform_4, window_bounds = array<i64: 1, 4>}, {transform_indices = @transform_5, window_bounds = array<i64: 1, 16, 16, 4>}]} {
    %c0 = arith.constant 0 : index
    %c0_0 = arith.constant 0 : index
    %c0_1 = arith.constant 0 : index
    %c0_2 = arith.constant 0 : index
    %0 = vector.load %arg2[%c0, %c0_0, %c0_1, %c0_2] : memref<1x16x16x4xf32, #tpu.memory_space<vmem>>, vector<1x16x16x4xf32>
    %1 = vector.shape_cast %0 : vector<1x16x16x4xf32> to vector<16x16x4xf32>
    %c0_3 = arith.constant 0 : index
    %c0_4 = arith.constant 0 : index
    %2 = vector.load %arg3[%c0_3, %c0_4] : memref<9x4xf32, #tpu.memory_space<vmem>>, vector<9x4xf32>
    %c0_5 = arith.constant 0 : index
    %c0_6 = arith.constant 0 : index
    %3 = vector.load %arg4[%c0_5, %c0_6] : memref<1x4xf32, #tpu.memory_space<vmem>>, vector<1x4xf32>
    %4 = vector.shape_cast %3 : vector<1x4xf32> to vector<4xf32>
    %c0_7 = arith.constant 0 : index
    %c0_8 = arith.constant 0 : index
    %5 = vector.load %arg5[%c0_7, %c0_8] : memref<1x4xf32, #tpu.memory_space<vmem>>, vector<1x4xf32>
    %6 = vector.shape_cast %5 : vector<1x4xf32> to vector<4xf32>
    %c0_9 = arith.constant 0 : index
    %c0_10 = arith.constant 0 : index
    %7 = vector.load %arg6[%c0_9, %c0_10] : memref<1x4xf32, #tpu.memory_space<vmem>>, vector<1x4xf32>
    %8 = vector.shape_cast %7 : vector<1x4xf32> to vector<4xf32>
    %cst = arith.constant 0.000000e+00 : f32
    %9 = vector.broadcast %cst : f32 to vector<1x16x4xf32>
    %10 = tpu.concatenate %9, %1, %9 in 0 : vector<1x16x4xf32>, vector<16x16x4xf32>, vector<1x16x4xf32> -> vector<18x16x4xf32>
    %cst_11 = arith.constant 0.000000e+00 : f32
    %11 = vector.broadcast %cst_11 : f32 to vector<18x1x4xf32>
    %12 = tpu.concatenate %11, %10, %11 in 1 : vector<18x1x4xf32>, vector<18x16x4xf32>, vector<18x1x4xf32> -> vector<18x18x4xf32>
    %cst_12 = arith.constant 0.000000e+00 : f32
    %13 = vector.broadcast %cst_12 : f32 to vector<16x16x4xf32>
    %14 = vector.extract_strided_slice %12 {offsets = [0, 0, 0], sizes = [18, 16, 4], strides = [1, 1, 1]} : vector<18x18x4xf32> to vector<18x16x4xf32>
    %15 = vector.extract_strided_slice %14 {offsets = [0, 0, 0], sizes = [16, 16, 4], strides = [1, 1, 1]} : vector<18x16x4xf32> to vector<16x16x4xf32>
    %16 = vector.extract_strided_slice %2 {offsets = [0, 0], sizes = [1, 4], strides = [1, 1]} : vector<9x4xf32> to vector<1x4xf32>
    %17 = vector.shape_cast %16 : vector<1x4xf32> to vector<4xf32>
    %18 = vector.shape_cast %17 : vector<4xf32> to vector<1x1x4xf32>
    %19 = vector.broadcast %18 : vector<1x1x4xf32> to vector<16x16x4xf32>
    %20 = arith.mulf %15, %19 : vector<16x16x4xf32>
    %21 = arith.addf %13, %20 : vector<16x16x4xf32>
    %22 = vector.extract_strided_slice %14 {offsets = [1, 0, 0], sizes = [16, 16, 4], strides = [1, 1, 1]} : vector<18x16x4xf32> to vector<16x16x4xf32>
    %23 = vector.extract_strided_slice %2 {offsets = [3, 0], sizes = [1, 4], strides = [1, 1]} : vector<9x4xf32> to vector<1x4xf32>
    %24 = vector.shape_cast %23 : vector<1x4xf32> to vector<4xf32>
    %25 = vector.shape_cast %24 : vector<4xf32> to vector<1x1x4xf32>
    %26 = vector.broadcast %25 : vector<1x1x4xf32> to vector<16x16x4xf32>
    %27 = arith.mulf %22, %26 : vector<16x16x4xf32>
    %28 = arith.addf %21, %27 : vector<16x16x4xf32>
    %29 = vector.extract_strided_slice %14 {offsets = [2, 0, 0], sizes = [16, 16, 4], strides = [1, 1, 1]} : vector<18x16x4xf32> to vector<16x16x4xf32>
    %30 = vector.extract_strided_slice %2 {offsets = [6, 0], sizes = [1, 4], strides = [1, 1]} : vector<9x4xf32> to vector<1x4xf32>
    %31 = vector.shape_cast %30 : vector<1x4xf32> to vector<4xf32>
    %32 = vector.shape_cast %31 : vector<4xf32> to vector<1x1x4xf32>
    %33 = vector.broadcast %32 : vector<1x1x4xf32> to vector<16x16x4xf32>
    %34 = arith.mulf %29, %33 : vector<16x16x4xf32>
    %35 = arith.addf %28, %34 : vector<16x16x4xf32>
    %36 = vector.extract_strided_slice %12 {offsets = [0, 1, 0], sizes = [18, 16, 4], strides = [1, 1, 1]} : vector<18x18x4xf32> to vector<18x16x4xf32>
    %37 = vector.extract_strided_slice %36 {offsets = [0, 0, 0], sizes = [16, 16, 4], strides = [1, 1, 1]} : vector<18x16x4xf32> to vector<16x16x4xf32>
    %38 = vector.extract_strided_slice %2 {offsets = [1, 0], sizes = [1, 4], strides = [1, 1]} : vector<9x4xf32> to vector<1x4xf32>
    %39 = vector.shape_cast %38 : vector<1x4xf32> to vector<4xf32>
    %40 = vector.shape_cast %39 : vector<4xf32> to vector<1x1x4xf32>
    %41 = vector.broadcast %40 : vector<1x1x4xf32> to vector<16x16x4xf32>
    %42 = arith.mulf %37, %41 : vector<16x16x4xf32>
    %43 = arith.addf %35, %42 : vector<16x16x4xf32>
    %44 = vector.extract_strided_slice %36 {offsets = [1, 0, 0], sizes = [16, 16, 4], strides = [1, 1, 1]} : vector<18x16x4xf32> to vector<16x16x4xf32>
    %45 = vector.extract_strided_slice %2 {offsets = [4, 0], sizes = [1, 4], strides = [1, 1]} : vector<9x4xf32> to vector<1x4xf32>
    %46 = vector.shape_cast %45 : vector<1x4xf32> to vector<4xf32>
    %47 = vector.shape_cast %46 : vector<4xf32> to vector<1x1x4xf32>
    %48 = vector.broadcast %47 : vector<1x1x4xf32> to vector<16x16x4xf32>
    %49 = arith.mulf %44, %48 : vector<16x16x4xf32>
    %50 = arith.addf %43, %49 : vector<16x16x4xf32>
    %51 = vector.extract_strided_slice %36 {offsets = [2, 0, 0], sizes = [16, 16, 4], strides = [1, 1, 1]} : vector<18x16x4xf32> to vector<16x16x4xf32>
    %52 = vector.extract_strided_slice %2 {offsets = [7, 0], sizes = [1, 4], strides = [1, 1]} : vector<9x4xf32> to vector<1x4xf32>
    %53 = vector.shape_cast %52 : vector<1x4xf32> to vector<4xf32>
    %54 = vector.shape_cast %53 : vector<4xf32> to vector<1x1x4xf32>
    %55 = vector.broadcast %54 : vector<1x1x4xf32> to vector<16x16x4xf32>
    %56 = arith.mulf %51, %55 : vector<16x16x4xf32>
    %57 = arith.addf %50, %56 : vector<16x16x4xf32>
    %58 = vector.extract_strided_slice %12 {offsets = [0, 2, 0], sizes = [18, 16, 4], strides = [1, 1, 1]} : vector<18x18x4xf32> to vector<18x16x4xf32>
    %59 = vector.extract_strided_slice %58 {offsets = [0, 0, 0], sizes = [16, 16, 4], strides = [1, 1, 1]} : vector<18x16x4xf32> to vector<16x16x4xf32>
    %60 = vector.extract_strided_slice %2 {offsets = [2, 0], sizes = [1, 4], strides = [1, 1]} : vector<9x4xf32> to vector<1x4xf32>
    %61 = vector.shape_cast %60 : vector<1x4xf32> to vector<4xf32>
    %62 = vector.shape_cast %61 : vector<4xf32> to vector<1x1x4xf32>
    %63 = vector.broadcast %62 : vector<1x1x4xf32> to vector<16x16x4xf32>
    %64 = arith.mulf %59, %63 : vector<16x16x4xf32>
    %65 = arith.addf %57, %64 : vector<16x16x4xf32>
    %66 = vector.extract_strided_slice %58 {offsets = [1, 0, 0], sizes = [16, 16, 4], strides = [1, 1, 1]} : vector<18x16x4xf32> to vector<16x16x4xf32>
    %67 = vector.extract_strided_slice %2 {offsets = [5, 0], sizes = [1, 4], strides = [1, 1]} : vector<9x4xf32> to vector<1x4xf32>
    %68 = vector.shape_cast %67 : vector<1x4xf32> to vector<4xf32>
    %69 = vector.shape_cast %68 : vector<4xf32> to vector<1x1x4xf32>
    %70 = vector.broadcast %69 : vector<1x1x4xf32> to vector<16x16x4xf32>
    %71 = arith.mulf %66, %70 : vector<16x16x4xf32>
    %72 = arith.addf %65, %71 : vector<16x16x4xf32>
    %73 = vector.extract_strided_slice %58 {offsets = [2, 0, 0], sizes = [16, 16, 4], strides = [1, 1, 1]} : vector<18x16x4xf32> to vector<16x16x4xf32>
    %74 = vector.extract_strided_slice %2 {offsets = [8, 0], sizes = [1, 4], strides = [1, 1]} : vector<9x4xf32> to vector<1x4xf32>
    %75 = vector.shape_cast %74 : vector<1x4xf32> to vector<4xf32>
    %76 = vector.shape_cast %75 : vector<4xf32> to vector<1x1x4xf32>
    %77 = vector.broadcast %76 : vector<1x1x4xf32> to vector<16x16x4xf32>
    %78 = arith.mulf %73, %77 : vector<16x16x4xf32>
    %79 = arith.addf %72, %78 : vector<16x16x4xf32>
    %80 = vector.shape_cast %4 : vector<4xf32> to vector<1x1x4xf32>
    %81 = vector.broadcast %80 : vector<1x1x4xf32> to vector<16x16x4xf32>
    %82 = arith.addf %79, %81 : vector<16x16x4xf32>
    %cst_13 = arith.constant 0.707106769 : f32
    %83 = vector.broadcast %cst_13 : f32 to vector<16x16x4xf32>
    %84 = arith.mulf %82, %83 : vector<16x16x4xf32>
    %85 = math.absf %84 : vector<16x16x4xf32>
    %cst_14 = arith.constant 0.327591091 : f32
    %86 = vector.broadcast %cst_14 : f32 to vector<16x16x4xf32>
    %87 = arith.mulf %86, %85 : vector<16x16x4xf32>
    %cst_15 = arith.constant 1.000000e+00 : f32
    %88 = vector.broadcast %cst_15 : f32 to vector<16x16x4xf32>
    %89 = arith.addf %88, %87 : vector<16x16x4xf32>
    %cst_16 = arith.constant 1.000000e+00 : f32
    %90 = vector.broadcast %cst_16 : f32 to vector<16x16x4xf32>
    %91 = arith.divf %90, %89 : vector<16x16x4xf32>
    %cst_17 = arith.constant 1.06140542 : f32
    %92 = vector.broadcast %cst_17 : f32 to vector<16x16x4xf32>
    %93 = arith.mulf %91, %92 : vector<16x16x4xf32>
    %cst_18 = arith.constant -1.45315206 : f32
    %94 = vector.broadcast %cst_18 : f32 to vector<16x16x4xf32>
    %95 = arith.addf %94, %93 : vector<16x16x4xf32>
    %96 = arith.mulf %91, %95 : vector<16x16x4xf32>
    %cst_19 = arith.constant 1.42141378 : f32
    %97 = vector.broadcast %cst_19 : f32 to vector<16x16x4xf32>
    %98 = arith.addf %97, %96 : vector<16x16x4xf32>
    %99 = arith.mulf %91, %98 : vector<16x16x4xf32>
    %cst_20 = arith.constant -0.284496725 : f32
    %100 = vector.broadcast %cst_20 : f32 to vector<16x16x4xf32>
    %101 = arith.addf %100, %99 : vector<16x16x4xf32>
    %102 = arith.mulf %91, %101 : vector<16x16x4xf32>
    %cst_21 = arith.constant 0.254829586 : f32
    %103 = vector.broadcast %cst_21 : f32 to vector<16x16x4xf32>
    %104 = arith.addf %103, %102 : vector<16x16x4xf32>
    %105 = arith.mulf %91, %104 : vector<16x16x4xf32>
    %cst_22 = arith.constant 0.000000e+00 : f32
    %106 = vector.broadcast %cst_22 : f32 to vector<16x16x4xf32>
    %107 = arith.subf %106, %85 : vector<16x16x4xf32>
    %108 = arith.mulf %107, %85 : vector<16x16x4xf32>
    %109 = math.exp %108 : vector<16x16x4xf32>
    %110 = arith.mulf %105, %109 : vector<16x16x4xf32>
    %cst_23 = arith.constant 1.000000e+00 : f32
    %111 = vector.broadcast %cst_23 : f32 to vector<16x16x4xf32>
    %112 = arith.subf %111, %110 : vector<16x16x4xf32>
    %cst_24 = arith.constant 0.000000e+00 : f32
    %113 = vector.broadcast %cst_24 : f32 to vector<16x16x4xf32>
    %114 = arith.cmpf olt, %84, %113 : vector<16x16x4xf32>
    %cst_25 = arith.constant 0.000000e+00 : f32
    %115 = vector.broadcast %cst_25 : f32 to vector<16x16x4xf32>
    %116 = arith.subf %115, %112 : vector<16x16x4xf32>
    %117 = arith.select %114, %116, %112 : vector<16x16x4xi1>, vector<16x16x4xf32>
    %cst_26 = arith.constant 5.000000e-01 : f32
    %118 = vector.broadcast %cst_26 : f32 to vector<16x16x4xf32>
    %119 = arith.mulf %118, %82 : vector<16x16x4xf32>
    %cst_27 = arith.constant 1.000000e+00 : f32
    %120 = vector.broadcast %cst_27 : f32 to vector<16x16x4xf32>
    %121 = arith.addf %120, %117 : vector<16x16x4xf32>
    %122 = arith.mulf %119, %121 : vector<16x16x4xf32>
    %123 = vector.shape_cast %6 : vector<4xf32> to vector<1x1x4xf32>
    %124 = vector.broadcast %123 : vector<1x1x4xf32> to vector<16x16x4xf32>
    %125 = arith.mulf %122, %124 : vector<16x16x4xf32>
    %126 = vector.shape_cast %8 : vector<4xf32> to vector<1x1x4xf32>
    %127 = vector.broadcast %126 : vector<1x1x4xf32> to vector<16x16x4xf32>
    %128 = arith.addf %125, %127 : vector<16x16x4xf32>
    %129 = arith.addf %128, %1 : vector<16x16x4xf32>
    %c0_28 = arith.constant 0 : index
    %c0_29 = arith.constant 0 : index
    %c0_30 = arith.constant 0 : index
    %c0_31 = arith.constant 0 : index
    %130 = vector.load %arg7[%c0_28, %c0_29, %c0_30, %c0_31] : memref<1x16x16x4xf32, #tpu.memory_space<vmem>>, vector<1x16x16x4xf32>
    %131 = vector.shape_cast %130 : vector<1x16x16x4xf32> to vector<16x16x4xf32>
    %132 = vector.shape_cast %129 : vector<16x16x4xf32> to vector<1x16x16x4xf32>
    tpu.vector_store %arg7[%c0_28, %c0_29, %c0_30, %c0_31], %132 {strides = array<i32>} : memref<1x16x16x4xf32, #tpu.memory_space<vmem>>, vector<1x16x16x4xf32>,
    return
  }
  func.func @transform_0(%arg0: i32, %arg1: i32) -> (i32, i32, i32, i32) {
    %c0_i32 = arith.constant 0 : i32
    %c0_i32_0 = arith.constant 0 : i32
    %c0_i32_1 = arith.constant 0 : i32
    return %arg0, %c0_i32, %c0_i32_0, %arg1 : i32, i32, i32, i32
  }
  func.func @transform_1(%arg0: i32, %arg1: i32) -> (i32, i32) {
    %c0_i32 = arith.constant 0 : i32
    %c0_i32_0 = arith.constant 0 : i32
    return %c0_i32, %arg1 : i32, i32
  }
  func.func @transform_2(%arg0: i32, %arg1: i32) -> (i32, i32) {
    %c0_i32 = arith.constant 0 : i32
    %c0_i32_0 = arith.constant 0 : i32
    return %c0_i32, %arg1 : i32, i32
  }
  func.func @transform_3(%arg0: i32, %arg1: i32) -> (i32, i32) {
    %c0_i32 = arith.constant 0 : i32
    %c0_i32_0 = arith.constant 0 : i32
    return %c0_i32, %arg1 : i32, i32
  }
  func.func @transform_4(%arg0: i32, %arg1: i32) -> (i32, i32) {
    %c0_i32 = arith.constant 0 : i32
    %c0_i32_0 = arith.constant 0 : i32
    return %c0_i32, %arg1 : i32, i32
  }
  func.func @transform_5(%arg0: i32, %arg1: i32) -> (i32, i32, i32, i32) {
    %c0_i32 = arith.constant 0 : i32
    %c0_i32_0 = arith.constant 0 : i32
    %c0_i32_1 = arith.constant 0 : i32
    return %arg0, %c0_i32, %c0_i32_0, %arg1 : i32, i32, i32, i32
  }
}

</mosaic_0001>

<bundles_post_ra>
// kernel: tpu_custom_call.1
= control target key start
LH: loop header
LB: loop body
LE: loop exit
PB: predicated region body
PF: predicated region fallthrough
CT: control target
= control target key end

     0   :  { %s4010_s18 = smov 0   ;;  %s4012_s19 = smov 0   ;;  %s9365_s0 = inlined_call_operand.vmem [shape: f32[2,16,16,4], index: 0, kind: input, shape index: {}]   ;;  %s9366_s1 = inlined_call_operand.vmem [shape: f32[9,4], index: 1, kind: input, shape index: {}]   ;;  %s9367_s2 = inlined_call_operand.vmem [shape: f32[1,4], index: 2, kind: input, shape index: {}]   ;;  %s9368_s3 = inlined_call_operand.vmem [shape: f32[1,4], index: 3, kind: input, shape index: {}]   ;;  %s9369_s4 = inlined_call_operand.vmem [shape: f32[1,4], index: 4, kind: input, shape index: {}]   ;;  %s9370_s5 = inlined_call_operand.vmem [shape: f32[2,16,16,4], index: 5, kind: output, shape index: {}]  }
   0x1   :  { %s4014_s20 = smov 0  }
   0x2 LB: > { %s27_s21 = sadd.s32 1, %s3973_s19  ;;  %p3756_p0 = scmp.ge.s32.totalorder %s3977_s20, 1  ;;  %s3977_s20 = sphi %s4014_s20, %s15_s20   ;;  %s3973_s19 = sphi %s4012_s19, %s11041_s19   ;;  %s3969_s18 = sphi %s4010_s18, %s11040_s18  }
   0x3   : > { %p29_p1 = scmp.ge.s32.totalorder %s27_s21, 2  ;;  %p239_p2 = scmp.lt.s32.totalorder %s3977_s20, 3 }
   0x5   : > { %s11043_s21 = smov (%p29_p1, %s27_s21), 0  ;;  %p240_p3 = pnand %p3756_p0, %p239_p2 }
   0x7   : > { %243 = sbr.rel (%p240_p3) target bundleno = 802 (0x322), region = 40 }
   0xc   : > { %p286_p4 = scmp.lt.s32.totalorder %s3969_s18, 1  ;;  %v4047_v2 = vld [vmem:[%s9366_s1] sm:$0xff]  ;;  %v3979_v3 = vmov 0.0   ;;  %vm385_vm0 = vcmask 1040384   ;;  %vm812_vm1 = vcmask 1046528   ;;  %vm1536_vm2 = vcmask 1045504  }
   0xd   : > { %9710 = vst [vmem:[#allocation2_spill] sm:$0xff] %v4047_v2  ;;  %v4049_v4 = vrot.slane %v3979_v3, 7  ;;  %v4075_v14 = vperm.slane %v4047_v2, 0  ;;  %v4104_v26 = vperm.slane %v4047_v2, 3 }
   0xe   : > { %s11045_s18 = smov (!%p286_p4, %s3969_s18), 1 }
   0xf   : > { %s3763_s22 = sshll.u32 %s11045_s18, 8  ;;  %9711 = vst [vmem:[#allocation3_spill] sm:$0xff] %v4049_v4  ;;  %v4090_v20 = vsel %vm385_vm0, 0.0, %v4049_v4  ;;  %v4119_v32 = vsel %vm385_vm0, %v4049_v4, 0.0  ;;  %v4144_v39 = vmul.f32 %v4075_v14, %v4049_v4 }
  0x10   : > { %s4036_s25 = scalar_lea.vmem %s9365_s0, %s3763_s22  ;;  %9712 = vst [vmem:[#allocation4_spill] sm:$0xff] %v4090_v20  ;;  %v4140_v38 = vmul.f32 %v4075_v14, %v4090_v20  ;;  %s9176_s15 = scalar_lea.vmem %s9370_s5, %s3763_s22 }
  0x11   : > { %v4039_v0 = vld [vmem:[%s4036_s25] sm:$0xff]  ;;  %v4042_v1 = vld [vmem:[%s4036_s25 + $0x8] sm:$0xff]  ;;  %v4052_v5 = vld [vmem:[%s4036_s25 + $0x10] sm:$0xff]  ;;  %9713 = vst [vmem:[#allocation5_spill] sm:$0xff] %v4119_v32 }
  0x12   : > { %v4055_v6 = vld [vmem:[%s4036_s25 + $0x18] sm:$0xff]  ;;  %v4058_v7 = vld [vmem:[%s4036_s25 + $0x20] sm:$0xff]  ;;  %v4061_v8 = vld [vmem:[%s4036_s25 + $0x28] sm:$0xff]  ;;  %v388_v12 = vrot.slane %v4039_v0, 7  ;;  %v389_v13 = vrot.slane %v4042_v1, 7  ;;  %v391_v18 = vrot.slane %v4052_v5, 7 }
  0x13   : > { %v4064_v9 = vld [vmem:[%s4036_s25 + $0x30] sm:$0xff]  ;;  %v4067_v10 = vld [vmem:[%s4036_s25 + $0x38] sm:$0xff]  ;;  %v4070_v11 = vld [vmem:[%s4036_s25 + $0x40] sm:$0xff]  ;;  %v9375_v19 = vrot.slane %v4055_v6, 7  ;;  %v394_v24 = vrot.slane %v4058_v7, 7  ;;  %v9372_v25 = vrot.slane %v4061_v8, 7 }
  0x14   : > { %v4078_v15 = vld [vmem:[%s4036_s25 + $0x48] sm:$0xff]  ;;  %v4081_v16 = vld [vmem:[%s4036_s25 + $0x50] sm:$0xff]  ;;  %v4084_v17 = vld [vmem:[%s4036_s25 + $0x58] sm:$0xff]  ;;  %v397_v30 = vrot.slane %v4064_v9, 7  ;;  %v9371_v31 = vrot.slane %v4067_v10, 7  ;;  %v4135_v36 = vsel %vm385_vm0, %v388_v12, %v389_v13  ;;  %v400_v37 = vrot.slane %v4070_v11, 7 }
  0x15   : > { %v4093_v21 = vld [vmem:[%s4036_s25 + $0x60] sm:$0xff]  ;;  %v4096_v22 = vld [vmem:[%s4036_s25 + $0x68] sm:$0xff]  ;;  %v4099_v23 = vld [vmem:[%s4036_s25 + $0x70] sm:$0xff]  ;;  %9714 = vst [vmem:[#allocation6_spill] sm:$0xff] %v4135_v36  ;;  %v4158_v43 = vsel %vm385_vm0, %v391_v18, %v9375_v19  ;;  %v9374_v44 = vrot.slane %v4078_v15, 7  ;;  %v403_v45 = vrot.slane %v4081_v16, 7  ;;  %v4173_v50 = vsel %vm385_vm0, %v394_v24, %v9372_v25 }
  0x16   : > { %v4107_v27 = vld [vmem:[%s4036_s25 + $0x78] sm:$0xff]  ;;  %v4110_v28 = vld [vmem:[%s4036_s25 + $0x80] sm:$0xff]  ;;  %v4113_v29 = vld [vmem:[%s4036_s25 + $0x88] sm:$0xff]  ;;  %9715 = vst [vmem:[#allocation7_spill] sm:$0xff] %v4158_v43  ;;  %v9373_v46 = vrot.slane %v4084_v17, 7  ;;  %v406_v51 = vrot.slane %v4093_v21, 7  ;;  %v4190_v57 = vsel %vm385_vm0, %v397_v30, %v9371_v31 }
  0x17   : > { %v4122_v33 = vld [vmem:[%s4036_s25 + $0x90] sm:$0xff]  ;;  %v4125_v34 = vld [vmem:[%s4036_s25 + $0x98] sm:$0xff]  ;;  %v4128_v35 = vld [vmem:[%s4036_s25 + $0xa0] sm:$0xff]  ;;  %9716 = vst [vmem:[#allocation8_spill] sm:$0xff] %v4173_v50  ;;  %v407_v52 = vrot.slane %v4096_v22, 7  ;;  %v409_v53 = vrot.slane %v4099_v23, 7 }
  0x18   : > { %v4147_v40 = vld [vmem:[%s4036_s25 + $0xa8] sm:$0xff]  ;;  %v337_v41 = vld [vmem:[%s4036_s25 + $0xb0] sm:$0xff]  ;;  %v4151_v42 = vld [vmem:[%s4036_s25 + $0xb8] sm:$0xff]  ;;  %9717 = vst [vmem:[#allocation9_spill] sm:$0xff] %v4190_v57  ;;  %v410_v58 = vrot.slane %v4107_v27, 7  ;;  %v412_v59 = vrot.slane %v4110_v28, 7 }
  0x19   : > { %v339_v47 = vld [vmem:[%s4036_s25 + $0xc0] sm:$0xff]  ;;  %v4165_v48 = vld [vmem:[%s4036_s25 + $0xc8] sm:$0xff]  ;;  %v341_v49 = vld [vmem:[%s4036_s25 + $0xd0] sm:$0xff]  ;;  %v413_v60 = vrot.slane %v4113_v29, 7  ;;  %v415_v63 = vrot.slane %v4122_v33, 7  ;;  %v416_v3 = vrot.slane %v4125_v34, 7  ;;  %v4208_v33 = vsel %vm385_vm0, %v400_v37, %v9374_v44 }
  0x1a   : > { %v4179_v54 = vld [vmem:[%s4036_s25 + $0xd8] sm:$0xff]  ;;  %v343_v55 = vld [vmem:[%s4036_s25 + $0xe0] sm:$0xff]  ;;  %v4183_v56 = vld [vmem:[%s4036_s25 + $0xe8] sm:$0xff]  ;;  %v418_v11 = vrot.slane %v4128_v35, 7  ;;  %v419_v16 = vrot.slane %v4147_v40, 7  ;;  %v421_v21 = vrot.slane %v337_v41, 7  ;;  %v4213_v34 = vsel %vm385_vm0, %v403_v45, %v9373_v46 }
  0x1b   : > { %v345_v61 = vld [vmem:[%s4036_s25 + $0xf0] sm:$0xff]  ;;  %v346_v62 = vld [vmem:[%s4036_s25 + $0xf8] sm:$0xff]  ;;  %v422_v22 = vrot.slane %v4151_v42, 7  ;;  %v424_v23 = vrot.slane %v339_v47, 7  ;;  %v425_v27 = vrot.slane %v4165_v48, 7  ;;  %v427_v31 = vrot.slane %v341_v49, 7 }
  0x1c   : > { %v428_v28 = vrot.slane %v4179_v54, 7  ;;  %v430_v29 = vrot.slane %v343_v55, 7  ;;  %v431_v25 = vrot.slane %v4183_v56, 7  ;;  %9718 = vst [vmem:[#allocation10_spill] sm:$0xff] %v4208_v33  ;;  %v433_v35 = vrot.slane %v345_v61, 7 }
  0x1d   : > { %9719 = vst [vmem:[#allocation11_spill] sm:$0xff] %v4213_v34  ;;  %v434_v40 = vrot.slane %v346_v62, 7  ;;  %v4216_v41 = vsel %vm385_vm0, %v406_v51, %v407_v52  ;;  %v4219_v42 = vsel %vm385_vm0, %v409_v53, %v410_v58  ;;  %v4222_v47 = vsel %vm385_vm0, %v412_v59, %v413_v60 }
  0x1e   : > { %9720 = vst [vmem:[#allocation12_spill] sm:$0xff] %v4216_v41  ;;  %v4225_v48 = vsel %vm385_vm0, %v415_v63, %v416_v3  ;;  %v4228_v49 = vsel %vm385_vm0, %v418_v11, %v419_v16  ;;  %v4231_v54 = vsel %vm385_vm0, %v421_v21, %v422_v22  ;;  %v4234_v55 = vsel %vm385_vm0, %v424_v23, %v425_v27 }
  0x1f   : > { %9721 = vst [vmem:[#allocation13_spill] sm:$0xff] %v4219_v42  ;;  %v4239_v56 = vsel %vm385_vm0, 0.0, %v388_v12  ;;  %v4242_v61 = vsel %vm385_vm0, %v427_v31, %v428_v28  ;;  %v4245_v62 = vsel %vm385_vm0, %v430_v29, %v431_v25  ;;  %v4250_v46 = vsel %vm385_vm0, 0.0, %v391_v18 }
  0x20   : > { %9722 = vst [vmem:[#allocation14_spill] sm:$0xff] %v4222_v47  ;;  %v4255_v44 = vsel %vm385_vm0, 0.0, %v394_v24  ;;  %v4258_v0 = vsel %vm385_vm0, %v433_v35, %v434_v40  ;;  %v4263_v12 = vsel %vm385_vm0, 0.0, %v397_v30  ;;  %v4266_v19 = vsel %vm385_vm0, 0.0, %v400_v37 }
  0x21   : > { %9723 = vst [vmem:[#allocation15_spill] sm:$0xff] %v4225_v48  ;;  %v4269_v5 = vsel %vm385_vm0, 0.0, %v403_v45  ;;  %v4272_v18 = vsel %vm385_vm0, 0.0, %v406_v51  ;;  %v4275_v7 = vsel %vm385_vm0, 0.0, %v409_v53  ;;  %v4278_v24 = vsel %vm385_vm0, 0.0, %v412_v59 }
  0x22   : > { %9724 = vst [vmem:[#allocation16_spill] sm:$0xff] %v4228_v49  ;;  %v4281_v9 = vsel %vm385_vm0, 0.0, %v415_v63  ;;  %v4284_v30 = vsel %vm385_vm0, 0.0, %v418_v11  ;;  %v4287_v37 = vsel %vm385_vm0, 0.0, %v421_v21  ;;  %v4290_v45 = vsel %vm385_vm0, 0.0, %v424_v23 }
  0x23   : > { %9725 = vst [vmem:[#allocation17_spill] sm:$0xff] %v4231_v54  ;;  %v4293_v51 = vsel %vm385_vm0, 0.0, %v427_v31  ;;  %v4296_v53 = vsel %vm385_vm0, 0.0, %v430_v29  ;;  %v4299_v59 = vsel %vm385_vm0, 0.0, %v433_v35  ;;  %v4304_v63 = vsel %vm385_vm0, %v389_v13, 0.0 }
  0x24   : > { %9726 = vst [vmem:[#allocation18_spill] sm:$0xff] %v4234_v55  ;;  %v9747_v11 = vrot.slane %v4055_v6, 7  ;;  %v9749_v23 = vrot.slane %v4061_v8, 7  ;;  %v9751_v29 = vrot.slane %v4067_v10, 7  ;;  %v9753_v1 = vrot.slane %v4078_v15, 7 }
  0x25   : > { %9727 = vst [vmem:[#allocation19_spill] sm:$0xff] %v4239_v56  ;;  %v9755_v6 = vrot.slane %v4084_v17, 7  ;;  %v4332_v8 = vsel %vm385_vm0, %v407_v52, 0.0  ;;  %v4338_v10 = vsel %vm385_vm0, %v413_v60, 0.0  ;;  %v4344_v15 = vsel %vm385_vm0, %v419_v16, 0.0 }
  0x26   : > { %9728 = vst [vmem:[#allocation20_spill] sm:$0xff] %v4242_v61  ;;  %v4309_v21 = vsel %vm385_vm0, %v9747_v11, 0.0  ;;  %v4314_v31 = vsel %vm385_vm0, %v9749_v23, 0.0  ;;  %v4319_v35 = vsel %vm385_vm0, %v9751_v29, 0.0  ;;  %v4324_v13 = vsel %vm385_vm0, %v9753_v1, 0.0 }
  0x27   : > { %9729 = vst [vmem:[#allocation21_spill] sm:$0xff] %v4245_v62  ;;  %v4329_v11 = vsel %vm385_vm0, %v9755_v6, 0.0  ;;  %v4335_v23 = vsel %vm385_vm0, %v410_v58, 0.0  ;;  %v4341_v29 = vsel %vm385_vm0, %v416_v3, 0.0  ;;  %v4347_v17 = vsel %vm385_vm0, %v422_v22, 0.0 }
  0x28   : > { %9730 = vst [vmem:[#allocation22_spill] sm:$0xff] %v4250_v46  ;;  %v4350_v1 = vsel %vm385_vm0, %v425_v27, 0.0  ;;  %v4353_v52 = vsel %vm385_vm0, %v428_v28, 0.0  ;;  %v4356_v58 = vsel %vm385_vm0, %v431_v25, 0.0  ;;  %v4359_v60 = vsel %vm385_vm0, %v434_v40, 0.0 }
  0x29   : > { %9731 = vst [vmem:[#allocation23_spill] sm:$0xff] %v4255_v44  ;;  %v4363_v3 = vmul.f32 %v4075_v14, %v4239_v56  ;;  %v4367_v16 = vmul.f32 %v4075_v14, %v4135_v36  ;;  %v4371_v22 = vmul.f32 %v4075_v14, %v4250_v46  ;;  %v4375_v27 = vmul.f32 %v4075_v14, %v4158_v43 }
  0x2a   : > { %9732 = vst [vmem:[#allocation24_spill] sm:$0xff] %v4258_v0  ;;  %v4379_v25 = vmul.f32 %v4075_v14, %v4255_v44  ;;  %v4383_v28 = vmul.f32 %v4075_v14, %v4173_v50  ;;  %v4387_v40 = vmul.f32 %v4075_v14, %v4263_v12  ;;  %v4391_v6 = vmul.f32 %v4075_v14, %v4190_v57 }
  0x2b   : > { %9733 = vst [vmem:[#allocation25_spill] sm:$0xff] %v4263_v12  ;;  %v4459_v32 = vmul.f32 %v4075_v14, %v4290_v45  ;;  %v4463_v4 = vmul.f32 %v4075_v14, %v4234_v55  ;;  %v4467_v20 = vmul.f32 %v4075_v14, %v4293_v51 }
  0x2c   : > { %9734 = vst [vmem:[#allocation26_spill] sm:$0xff] %v4266_v19 }
  0x2d   : > { %9735 = vst [vmem:[#allocation27_spill] sm:$0xff] %v4269_v5 }
  0x2e   : > { %9736 = vst [vmem:[#allocation28_spill] sm:$0xff] %v4272_v18 }
  0x2f   : > { %9737 = vst [vmem:[#allocation29_spill] sm:$0xff] %v4275_v7 }
  0x30   : > { %9738 = vst [vmem:[#allocation30_spill] sm:$0xff] %v4278_v24 }
  0x31   : > { %9739 = vst [vmem:[#allocation31_spill] sm:$0xff] %v4281_v9 }
  0x32   : > { %9740 = vst [vmem:[#allocation32_spill] sm:$0xff] %v4284_v30 }
  0x33   : > { %9741 = vst [vmem:[#allocation33_spill] sm:$0xff] %v4287_v37 }
  0x34   : > { %9742 = vst [vmem:[#allocation34_spill] sm:$0xff] %v4290_v45 }
  0x35   : > { %9743 = vst [vmem:[#allocation35_spill] sm:$0xff] %v4293_v51 }
  0x36   : > { %9744 = vst [vmem:[#allocation36_spill] sm:$0xff] %v4296_v53 }
  0x37   : > { %9745 = vst [vmem:[#allocation37_spill] sm:$0xff] %v4299_v59 }
  0x38   : > { %9746 = vst [vmem:[#allocation38_spill] sm:$0xff] %v4304_v63  ;;  %v4455_v63 = vmul.f32 %v4075_v14, %v4231_v54 }
  0x39   : > { %9748 = vst [vmem:[#allocation39_spill] sm:$0xff] %v4309_v21  ;;  %v4451_v21 = vmul.f32 %v4075_v14, %v4287_v37 }
  0x3a   : > { %9750 = vst [vmem:[#allocation40_spill] sm:$0xff] %v4314_v31  ;;  %v4447_v31 = vmul.f32 %v4075_v14, %v4228_v49 }
  0x3b   : > { %9752 = vst [vmem:[#allocation41_spill] sm:$0xff] %v4319_v35  ;;  %v4443_v35 = vmul.f32 %v4075_v14, %v4284_v30 }
  0x3c   : > { %9754 = vst [vmem:[#allocation42_spill] sm:$0xff] %v4324_v13  ;;  %v4439_v13 = vmul.f32 %v4075_v14, %v4225_v48 }
  0x3d   : > { %9756 = vst [vmem:[#allocation43_spill] sm:$0xff] %v4329_v11  ;;  %v4435_v11 = vmul.f32 %v4075_v14, %v4281_v9 }
  0x3e   : > { %9757 = vst [vmem:[#allocation44_spill] sm:$0xff] %v4332_v8  ;;  %v4431_v8 = vmul.f32 %v4075_v14, %v4222_v47 }
  0x3f   : > { %9758 = vst [vmem:[#allocation45_spill] sm:$0xff] %v4335_v23  ;;  %v4427_v23 = vmul.f32 %v4075_v14, %v4278_v24 }
  0x40   : > { %9759 = vst [vmem:[#allocation46_spill] sm:$0xff] %v4338_v10  ;;  %v4423_v10 = vmul.f32 %v4075_v14, %v4219_v42 }
  0x41   : > { %9760 = vst [vmem:[#allocation47_spill] sm:$0xff] %v4341_v29  ;;  %v4419_v29 = vmul.f32 %v4075_v14, %v4275_v7 }
  0x42   : > { %9761 = vst [vmem:[#allocation48_spill] sm:$0xff] %v4344_v15  ;;  %v4415_v15 = vmul.f32 %v4075_v14, %v4216_v41 }
  0x43   : > { %9762 = vst [vmem:[#allocation49_spill] sm:$0xff] %v4347_v17  ;;  %v4411_v17 = vmul.f32 %v4075_v14, %v4272_v18 }
  0x44   : > { %9763 = vst [vmem:[#allocation50_spill] sm:$0xff] %v4350_v1  ;;  %v4407_v1 = vmul.f32 %v4075_v14, %v4213_v34 }
  0x45   : > { %9764 = vst [vmem:[#allocation51_spill] sm:$0xff] %v4353_v52  ;;  %v4403_v52 = vmul.f32 %v4075_v14, %v4269_v5 }
  0x46   : > { %9765 = vst [vmem:[#allocation52_spill] sm:$0xff] %v4356_v58  ;;  %v4399_v58 = vmul.f32 %v4075_v14, %v4208_v33 }
  0x47   : > { %9766 = vst [vmem:[#allocation53_spill] sm:$0xff] %v4359_v60  ;;  %v4395_v60 = vmul.f32 %v4075_v14, %v4266_v19 }
  0x48   : > { %9767 = vst [vmem:[#allocation54_spill] sm:$0xff] %v4443_v35  ;;  %v590_v35 = vmul.f32 %v4104_v26, %v4255_v44  ;;  %v597_v44 = vmul.f32 %v4104_v26, %v4213_v34  ;;  %v604_v34 = vmul.f32 %v4104_v26, %v4281_v9  ;;  %v611_v9 = vmul.f32 %v4104_v26, %v4234_v55 }
  0x49   : > { %9768 = vst [vmem:[#allocation55_spill] sm:$0xff] %v4447_v31  ;;  %v4471_v31 = vmul.f32 %v4075_v14, %v4242_v61 }
  0x4a   : > { %9769 = vst [vmem:[#allocation56_spill] sm:$0xff] %v4451_v21  ;;  %v4475_v21 = vmul.f32 %v4075_v14, %v4296_v53 }
  0x4b   : > { %9770 = vst [vmem:[#allocation57_spill] sm:$0xff] %v4455_v63  ;;  %v4479_v63 = vmul.f32 %v4075_v14, %v4245_v62  ;;  %v592_v14 = vmul.f32 %v4104_v26, %v4263_v12  ;;  %v599_v12 = vmul.f32 %v4104_v26, %v4216_v41  ;;  %v606_v41 = vmul.f32 %v4104_v26, %v4284_v30 }
  0x4c   : > { %9771 = vst [vmem:[#allocation58_spill] sm:$0xff] %v4459_v32  ;;  %v586_v32 = vmul.f32 %v4104_v26, %v4239_v56  ;;  %v593_v56 = vmul.f32 %v4104_v26, %v4190_v57  ;;  %v600_v57 = vmul.f32 %v4104_v26, %v4275_v7  ;;  %v607_v7 = vmul.f32 %v4104_v26, %v4228_v49 }
  0x4d   : > { %9772 = vst [vmem:[#allocation59_spill] sm:$0xff] %v4463_v4  ;;  %v587_v4 = vmul.f32 %v4104_v26, %v4135_v36  ;;  %v594_v36 = vmul.f32 %v4104_v26, %v4266_v19  ;;  %v601_v19 = vmul.f32 %v4104_v26, %v4219_v42  ;;  %v608_v42 = vmul.f32 %v4104_v26, %v4287_v37 }
  0x4e   : > { %9773 = vst [vmem:[#allocation60_spill] sm:$0xff] %v4467_v20  ;;  %v588_v20 = vmul.f32 %v4104_v26, %v4250_v46  ;;  %v595_v46 = vmul.f32 %v4104_v26, %v4208_v33  ;;  %v602_v33 = vmul.f32 %v4104_v26, %v4278_v24  ;;  %v609_v24 = vmul.f32 %v4104_v26, %v4231_v54 }
  0x4f   : > { %9774 = vst [vmem:[#allocation61_spill] sm:$0xff] %v4471_v31  ;;  %v589_v31 = vmul.f32 %v4104_v26, %v4158_v43  ;;  %v596_v43 = vmul.f32 %v4104_v26, %v4269_v5  ;;  %v603_v5 = vmul.f32 %v4104_v26, %v4222_v47  ;;  %v610_v47 = vmul.f32 %v4104_v26, %v4290_v45 }
  0x50   : > { %9775 = vst [vmem:[#allocation62_spill] sm:$0xff] %v4475_v21  ;;  %v591_v21 = vmul.f32 %v4104_v26, %v4173_v50  ;;  %v598_v50 = vmul.f32 %v4104_v26, %v4272_v18  ;;  %v605_v18 = vmul.f32 %v4104_v26, %v4225_v48  ;;  %v612_v48 = vmul.f32 %v4104_v26, %v4293_v51 }
  0x51   : > { %v613_v30 = vmul.f32 %v4104_v26, %v4242_v61  ;;  %v614_v49 = vmul.f32 %v4104_v26, %v4296_v53  ;;  %v615_v37 = vmul.f32 %v4104_v26, %v4245_v62  ;;  %v616_v54 = vmul.f32 %v4104_v26, %v4299_v59 }
  0x52   : > { %v617_v45 = vmul.f32 %v4104_v26, %v4258_v0  ;;  %v4546_v55 = vadd.f32 %v586_v32, %v4140_v38  ;;  %v4549_v51 = vadd.f32 %v587_v4, %v4144_v39  ;;  %v4552_v61 = vadd.f32 %v588_v20, %v4363_v3 }
  0x53   : > { %v4555_v53 = vadd.f32 %v589_v31, %v4367_v16  ;;  %v4558_v62 = vadd.f32 %v590_v35, %v4371_v22  ;;  %v4561_v59 = vadd.f32 %v591_v21, %v4375_v27  ;;  %v4564_v26 = vadd.f32 %v592_v14, %v4379_v25  ;;  %v9777_v35 = vld [vmem:[#allocation54_spill] sm:$0xff]  ;;  %v9801_v22 = vld [vmem:[#allocation25_spill] sm:$0xff]  ;;  %v9806_v14 = vld [vmem:[#allocation11_spill] sm:$0xff] }
  0x54   : > { %v4567_v32 = vadd.f32 %v593_v56, %v4383_v28  ;;  %v4570_v4 = vadd.f32 %v594_v36, %v4387_v40  ;;  %v4573_v20 = vadd.f32 %v595_v46, %v4391_v6  ;;  %v4576_v38 = vadd.f32 %v596_v43, %v4395_v60  ;;  %v9802_v27 = vld [vmem:[#allocation9_spill] sm:$0xff]  ;;  %v9804_v40 = vld [vmem:[#allocation10_spill] sm:$0xff] }
  0x55   : > { %v4579_v39 = vadd.f32 %v597_v44, %v4399_v58  ;;  %v4582_v21 = vadd.f32 %v598_v50, %v4403_v52  ;;  %v4585_v31 = vadd.f32 %v599_v12, %v4407_v1  ;;  %v4588_v56 = vadd.f32 %v600_v57, %v4411_v17  ;;  %v9797_v58 = vld [vmem:[#allocation7_spill] sm:$0xff] }
  0x56   : > { %v4591_v36 = vadd.f32 %v601_v19, %v4415_v15  ;;  %v4594_v46 = vadd.f32 %v602_v33, %v4419_v29  ;;  %v4597_v43 = vadd.f32 %v603_v5, %v4423_v10  ;;  %v4600_v44 = vadd.f32 %v604_v34, %v4427_v23  ;;  %v9779_v29 = vld [vmem:[#allocation55_spill] sm:$0xff]  ;;  %v9781_v10 = vld [vmem:[#allocation56_spill] sm:$0xff]  ;;  %v9783_v23 = vld [vmem:[#allocation57_spill] sm:$0xff] }
  0x57   : > { %v650_v50 = vperm.slane %v4047_v2, 6  ;;  %v4604_v12 = vadd.f32 %v605_v18, %v4431_v8  ;;  %v4607_v57 = vadd.f32 %v606_v41, %v4435_v11  ;;  %v4610_v19 = vadd.f32 %v607_v7, %v4439_v13  ;;  %v9785_v18 = vld [vmem:[#allocation58_spill] sm:$0xff]  ;;  %v9787_v41 = vld [vmem:[#allocation59_spill] sm:$0xff]  ;;  %v9789_v7 = vld [vmem:[#allocation60_spill] sm:$0xff] }
  0x58   : > { %v4613_v33 = vadd.f32 %v608_v42, %v9777_v35  ;;  %v4616_v5 = vadd.f32 %v609_v24, %v9779_v29  ;;  %v4619_v34 = vadd.f32 %v610_v47, %v9781_v10  ;;  %v4622_v15 = vadd.f32 %v611_v9, %v9783_v23  ;;  %v9791_v42 = vld [vmem:[#allocation61_spill] sm:$0xff]  ;;  %v9793_v24 = vld [vmem:[#allocation62_spill] sm:$0xff]  ;;  %v9807_v29 = vld [vmem:[#allocation28_spill] sm:$0xff] }
  0x59   : > { %9776 = vst [vmem:[#allocation63_spill] sm:$0xff] %v4610_v19  ;;  %v4625_v8 = vadd.f32 %v612_v48, %v9785_v18  ;;  %v4628_v11 = vadd.f32 %v613_v30, %v9787_v41  ;;  %v4631_v13 = vadd.f32 %v614_v49, %v9789_v7  ;;  %v4634_v17 = vadd.f32 %v615_v37, %v9791_v42  ;;  %v9796_v9 = vld [vmem:[#allocation22_spill] sm:$0xff]  ;;  %v9799_v30 = vld [vmem:[#allocation23_spill] sm:$0xff]  ;;  %v9800_v49 = vld [vmem:[#allocation8_spill] sm:$0xff] }
  0x5a   : > { %9778 = vst [vmem:[#allocation54_spill] sm:$0xff] %v4613_v33  ;;  %v4637_v1 = vadd.f32 %v616_v54, %v9793_v24  ;;  %v4640_v47 = vadd.f32 %v617_v45, %v4479_v63  ;;  %v651_v52 = vmul.f32 %v650_v50, %v9796_v9  ;;  %v652_v48 = vmul.f32 %v650_v50, %v9797_v58  ;;  %v9803_v54 = vld [vmem:[#allocation26_spill] sm:$0xff]  ;;  %v9805_v63 = vld [vmem:[#allocation27_spill] sm:$0xff]  ;;  %v9808_v23 = vld [vmem:[#allocation12_spill] sm:$0xff] }
  0x5b   : > { %9780 = vst [vmem:[#allocation55_spill] sm:$0xff] %v4616_v5  ;;  %v4645_v60 = vperm.slane %v4047_v2, 1  ;;  %v653_v3 = vmul.f32 %v650_v50, %v9799_v30  ;;  %v654_v16 = vmul.f32 %v650_v50, %v9800_v49  ;;  %v655_v37 = vmul.f32 %v650_v50, %v9801_v22  ;;  %v9809_v41 = vld [vmem:[#allocation29_spill] sm:$0xff]  ;;  %v9811_v2 = vld [vmem:[#allocation30_spill] sm:$0xff]  ;;  %v9813_v30 = vld [vmem:[#allocation31_spill] sm:$0xff] }
  0x5c   : > { %9782 = vst [vmem:[#allocation56_spill] sm:$0xff] %v4619_v34  ;;  %v656_v25 = vmul.f32 %v650_v50, %v9802_v27  ;;  %v657_v28 = vmul.f32 %v650_v50, %v9803_v54  ;;  %v658_v45 = vmul.f32 %v650_v50, %v9804_v40  ;;  %v659_v6 = vmul.f32 %v650_v50, %v9805_v63  ;;  %v9810_v42 = vld [vmem:[#allocation13_spill] sm:$0xff]  ;;  %v9812_v49 = vld [vmem:[#allocation14_spill] sm:$0xff]  ;;  %v9814_v58 = vld [vmem:[#allocation15_spill] sm:$0xff] }
  0x5d   : > { %9784 = vst [vmem:[#allocation57_spill] sm:$0xff] %v4622_v15  ;;  %v660_v35 = vmul.f32 %v650_v50, %v9806_v14  ;;  %v661_v10 = vmul.f32 %v650_v50, %v9807_v29  ;;  %v662_v18 = vmul.f32 %v650_v50, %v9808_v23  ;;  %v663_v7 = vmul.f32 %v650_v50, %v9809_v41  ;;  %v9815_v9 = vld [vmem:[#allocation32_spill] sm:$0xff]  ;;  %v9824_v34 = vld [vmem:[#allocation21_spill] sm:$0xff]  ;;  %v9827_v19 = vld [vmem:[#allocation3_spill] sm:$0xff] }
  0x5e   : > { %9786 = vst [vmem:[#allocation58_spill] sm:$0xff] %v4625_v8  ;;  %v664_v24 = vmul.f32 %v650_v50, %v9810_v42  ;;  %v665_v22 = vmul.f32 %v650_v50, %v9811_v2  ;;  %v666_v27 = vmul.f32 %v650_v50, %v9812_v49  ;;  %v667_v54 = vmul.f32 %v650_v50, %v9813_v30  ;;  %v9822_v8 = vld [vmem:[#allocation20_spill] sm:$0xff]  ;;  %v9825_v5 = vld [vmem:[#allocation37_spill] sm:$0xff] }
  0x5f   : > { %9788 = vst [vmem:[#allocation59_spill] sm:$0xff] %v4628_v11  ;;  %v668_v40 = vmul.f32 %v650_v50, %v9814_v58  ;;  %v669_v63 = vmul.f32 %v650_v50, %v9815_v9  ;;  %v9821_v11 = vld [vmem:[#allocation35_spill] sm:$0xff]  ;;  %v676_v49 = vmul.f32 %v650_v50, %v9822_v8  ;;  %v9823_v15 = vld [vmem:[#allocation36_spill] sm:$0xff]  ;;  %v678_v58 = vmul.f32 %v650_v50, %v9824_v34 }
  0x60   : > { %9790 = vst [vmem:[#allocation60_spill] sm:$0xff] %v4631_v13  ;;  %v9820_v13 = vld [vmem:[#allocation18_spill] sm:$0xff]  ;;  %v675_v2 = vmul.f32 %v650_v50, %v9821_v11  ;;  %v677_v30 = vmul.f32 %v650_v50, %v9823_v15  ;;  %v679_v9 = vmul.f32 %v650_v50, %v9825_v5  ;;  %v9826_v33 = vld [vmem:[#allocation4_spill] sm:$0xff]  ;;  %v4684_v8 = vadd.f32 %v653_v3, %v4552_v61 }
  0x61   : > { %9792 = vst [vmem:[#allocation61_spill] sm:$0xff] %v4634_v17  ;;  %v9819_v17 = vld [vmem:[#allocation34_spill] sm:$0xff]  ;;  %v674_v42 = vmul.f32 %v650_v50, %v9820_v13  ;;  %v4681_v13 = vadd.f32 %v652_v48, %v4549_v51  ;;  %v4687_v15 = vadd.f32 %v654_v16, %v4555_v53  ;;  %v4690_v5 = vadd.f32 %v655_v37, %v4558_v62 }
  0x62   : > { %9794 = vst [vmem:[#allocation62_spill] sm:$0xff] %v4637_v1  ;;  %v9818_v1 = vld [vmem:[#allocation17_spill] sm:$0xff]  ;;  %v673_v41 = vmul.f32 %v650_v50, %v9819_v17  ;;  %v4678_v17 = vadd.f32 %v651_v52, %v4546_v55  ;;  %v4699_v55 = vadd.f32 %v658_v45, %v4567_v32  ;;  %v4702_v51 = vadd.f32 %v659_v6, %v4570_v4 }
  0x63   : > { %9795 = vst [vmem:[#allocation64_spill] sm:$0xff] %v4640_v47  ;;  %v9817_v47 = vld [vmem:[#allocation33_spill] sm:$0xff]  ;;  %v672_v23 = vmul.f32 %v650_v50, %v9818_v1  ;;  %v682_v1 = vmul.f32 %v650_v50, %v9827_v19  ;;  %v4705_v61 = vadd.f32 %v660_v35, %v4573_v20  ;;  %v4708_v53 = vadd.f32 %v661_v10, %v4576_v38  ;;  %v9869_v10 = vld [vmem:[#allocation38_spill] sm:$0xff] }
  0x64   : > { %9798 = vst [vmem:[#allocation65_spill] sm:$0xff] %v4645_v60  ;;  %v9816_v60 = vld [vmem:[#allocation16_spill] sm:$0xff]  ;;  %v671_v29 = vmul.f32 %v650_v50, %v9817_v47  ;;  %v681_v47 = vmul.f32 %v650_v50, %v9826_v33  ;;  %v4711_v62 = vadd.f32 %v662_v18, %v4579_v39  ;;  %v4720_v32 = vadd.f32 %v665_v22, %v4588_v56  ;;  %v9843_v56 = vld [vmem:[#allocation63_spill] sm:$0xff] }
  0x65   : > { %v670_v14 = vmul.f32 %v650_v50, %v9816_v60  ;;  %v680_v60 = vmul.f32 %v650_v50, %v4258_v0  ;;  %v4693_v0 = vadd.f32 %v656_v25, %v4561_v59  ;;  %v4696_v50 = vadd.f32 %v657_v28, %v4564_v26  ;;  %9829 = vst [vmem:[#allocation67_spill] sm:$0xff] %v4699_v55 }
  0x66   : > { %9830 = vst [vmem:[#allocation68_spill] sm:$0xff] %v4702_v51  ;;  %v4714_v59 = vadd.f32 %v663_v7, %v4582_v21  ;;  %v4717_v26 = vadd.f32 %v664_v24, %v4585_v31  ;;  %v4723_v4 = vadd.f32 %v666_v27, %v4591_v36  ;;  %v4726_v20 = vadd.f32 %v667_v54, %v4594_v46  ;;  %v9845_v36 = vld [vmem:[#allocation54_spill] sm:$0xff]  ;;  %v9847_v46 = vld [vmem:[#allocation55_spill] sm:$0xff] }
  0x67   : > { %9828 = vst [vmem:[#allocation66_spill] sm:$0xff] %v4696_v50  ;;  %v4729_v38 = vadd.f32 %v668_v40, %v4597_v43  ;;  %v4732_v39 = vadd.f32 %v669_v63, %v4600_v44  ;;  %v4735_v21 = vadd.f32 %v670_v14, %v4604_v12  ;;  %v4738_v31 = vadd.f32 %v671_v29, %v4607_v57  ;;  %v9849_v43 = vld [vmem:[#allocation56_spill] sm:$0xff]  ;;  %v9851_v44 = vld [vmem:[#allocation57_spill] sm:$0xff]  ;;  %v9853_v12 = vld [vmem:[#allocation58_spill] sm:$0xff] }
  0x68   : > { %9831 = vst [vmem:[#allocation69_spill] sm:$0xff] %v4705_v61  ;;  %v4741_v52 = vadd.f32 %v672_v23, %v9843_v56  ;;  %v4744_v48 = vadd.f32 %v673_v41, %v9845_v36  ;;  %v4747_v3 = vadd.f32 %v674_v42, %v9847_v46  ;;  %v4750_v16 = vadd.f32 %v675_v2, %v9849_v43  ;;  %v9855_v57 = vld [vmem:[#allocation59_spill] sm:$0xff]  ;;  %v9857_v25 = vld [vmem:[#allocation60_spill] sm:$0xff]  ;;  %v9859_v28 = vld [vmem:[#allocation61_spill] sm:$0xff] }
  0x69   : > { %9832 = vst [vmem:[#allocation70_spill] sm:$0xff] %v4708_v53  ;;  %v4753_v22 = vadd.f32 %v676_v49, %v9851_v44  ;;  %v4756_v37 = vadd.f32 %v677_v30, %v9853_v12  ;;  %v4759_v27 = vadd.f32 %v678_v58, %v9855_v57  ;;  %v4762_v54 = vadd.f32 %v679_v9, %v9857_v25  ;;  %v9861_v45 = vld [vmem:[#allocation62_spill] sm:$0xff]  ;;  %v9866_v58 = vld [vmem:[#allocation5_spill] sm:$0xff]  ;;  %v9867_v9 = vld [vmem:[#allocation19_spill] sm:$0xff] }
  0x6a   : > { %9833 = vst [vmem:[#allocation71_spill] sm:$0xff] %v4711_v62  ;;  %v4765_v40 = vadd.f32 %v680_v60, %v9859_v28  ;;  %v4768_v63 = vadd.f32 %v681_v47, %v9861_v45  ;;  %v9863_v2 = vld [vmem:[#allocation64_spill] sm:$0xff]  ;;  %v9868_v60 = vld [vmem:[#allocation6_spill] sm:$0xff]  ;;  %v9871_v41 = vld [vmem:[#allocation7_spill] sm:$0xff] }
  0x6b   : > { %9834 = vst [vmem:[#allocation72_spill] sm:$0xff] %v4714_v59  ;;  %v4771_v6 = vadd.f32 %v682_v1, %v9863_v2  ;;  %v9865_v49 = vld [vmem:[#allocation65_spill] sm:$0xff]  ;;  %v9870_v23 = vld [vmem:[#allocation22_spill] sm:$0xff]  ;;  %v9872_v42 = vld [vmem:[#allocation39_spill] sm:$0xff] }
  0x6c   : > { %9835 = vst [vmem:[#allocation73_spill] sm:$0xff] %v4717_v26  ;;  %v716_v14 = vmul.f32 %v9865_v49, %v9826_v33  ;;  %v717_v30 = vmul.f32 %v9865_v49, %v9827_v19  ;;  %v718_v35 = vmul.f32 %v9865_v49, %v9866_v58  ;;  %v4781_v29 = vmul.f32 %v9865_v49, %v9867_v9  ;;  %v9873_v56 = vld [vmem:[#allocation23_spill] sm:$0xff]  ;;  %v9874_v46 = vld [vmem:[#allocation8_spill] sm:$0xff]  ;;  %v9876_v57 = vld [vmem:[#allocation25_spill] sm:$0xff] }
  0x6d   : > { %9836 = vst [vmem:[#allocation74_spill] sm:$0xff] %v4720_v32  ;;  %v4785_v47 = vmul.f32 %v9865_v49, %v9868_v60  ;;  %v4789_v1 = vmul.f32 %v9865_v49, %v9869_v10  ;;  %v4793_v18 = vmul.f32 %v9865_v49, %v9870_v23  ;;  %v4797_v7 = vmul.f32 %v9865_v49, %v9871_v41  ;;  %v9875_v44 = vld [vmem:[#allocation40_spill] sm:$0xff]  ;;  %v9877_v28 = vld [vmem:[#allocation9_spill] sm:$0xff]  ;;  %v9879_v19 = vld [vmem:[#allocation26_spill] sm:$0xff] }
  0x6e   : > { %9837 = vst [vmem:[#allocation75_spill] sm:$0xff] %v4723_v4  ;;  %v4801_v24 = vmul.f32 %v9865_v49, %v9872_v42  ;;  %v4805_v36 = vmul.f32 %v9865_v49, %v9873_v56  ;;  %v4809_v43 = vmul.f32 %v9865_v49, %v9874_v46  ;;  %v4813_v12 = vmul.f32 %v9865_v49, %v9875_v44  ;;  %v9878_v2 = vld [vmem:[#allocation41_spill] sm:$0xff]  ;;  %v9880_v46 = vld [vmem:[#allocation10_spill] sm:$0xff]  ;;  %v9882_v42 = vld [vmem:[#allocation27_spill] sm:$0xff] }
  0x6f   : > { %9838 = vst [vmem:[#allocation76_spill] sm:$0xff] %v4726_v20  ;;  %v4817_v25 = vmul.f32 %v9865_v49, %v9876_v57  ;;  %v4821_v45 = vmul.f32 %v9865_v49, %v9877_v28  ;;  %v4825_v58 = vmul.f32 %v9865_v49, %v9878_v2  ;;  %v4829_v33 = vmul.f32 %v9865_v49, %v9879_v19  ;;  %v9881_v56 = vld [vmem:[#allocation42_spill] sm:$0xff]  ;;  %v9883_v41 = vld [vmem:[#allocation11_spill] sm:$0xff]  ;;  %v9885_v10 = vld [vmem:[#allocation28_spill] sm:$0xff] }
  0x70   : > { %9839 = vst [vmem:[#allocation77_spill] sm:$0xff] %v4729_v38  ;;  %v4833_v44 = vmul.f32 %v9865_v49, %v9880_v46  ;;  %v4837_v57 = vmul.f32 %v9865_v49, %v9881_v56  ;;  %v4841_v28 = vmul.f32 %v9865_v49, %v9882_v42  ;;  %v4845_v2 = vmul.f32 %v9865_v49, %v9883_v41  ;;  %v9884_v23 = vld [vmem:[#allocation43_spill] sm:$0xff]  ;;  %v9886_v60 = vld [vmem:[#allocation12_spill] sm:$0xff]  ;;  %v9902_v38 = vld [vmem:[#allocation49_spill] sm:$0xff] }
  0x71   : > { %9840 = vst [vmem:[#allocation78_spill] sm:$0xff] %v4732_v39  ;;  %v4849_v19 = vmul.f32 %v9865_v49, %v9884_v23  ;;  %v4853_v46 = vmul.f32 %v9865_v49, %v9885_v10  ;;  %v4857_v56 = vmul.f32 %v9865_v49, %v9886_v60  ;;  %v9887_v9 = vld [vmem:[#allocation44_spill] sm:$0xff]  ;;  %v9901_v39 = vld [vmem:[#allocation17_spill] sm:$0xff]  ;;  %v813_v20 = vrot.slane %v716_v14, 1  ;;  %v9903_v32 = vld [vmem:[#allocation34_spill] sm:$0xff] }
  0x72   : > { %9841 = vst [vmem:[#allocation79_spill] sm:$0xff] %v4735_v21  ;;  %v4861_v42 = vmul.f32 %v9865_v49, %v9887_v9  ;;  %v9900_v21 = vld [vmem:[#allocation33_spill] sm:$0xff]  ;;  %v814_v4 = vrot.slane %v717_v30, 1  ;;  %v4925_v26 = vmul.f32 %v9865_v49, %v9903_v32  ;;  %v9907_v30 = vld [vmem:[#allocation51_spill] sm:$0xff]  ;;  %v9908_v32 = vld [vmem:[#allocation36_spill] sm:$0xff]  ;;  %v818_v61 = vrot.slane %v4781_v29, 1 }
  0x73   : > { %9842 = vst [vmem:[#allocation80_spill] sm:$0xff] %v4738_v31  ;;  %v9899_v31 = vld [vmem:[#allocation48_spill] sm:$0xff]  ;;  %v821_v51 = vrot.slane %v4789_v1, 1  ;;  %v823_v55 = vrot.slane %v4793_v18, 1  ;;  %v826_v50 = vrot.slane %v4801_v24, 1  ;;  %v829_v29 = vrot.slane %v4809_v43, 1 }
  0x74   : > { %9844 = vst [vmem:[#allocation63_spill] sm:$0xff] %v4741_v52  ;;  %v9898_v52 = vld [vmem:[#allocation16_spill] sm:$0xff]  ;;  %v833_v1 = vrot.slane %v4817_v25, 1  ;;  %v841_v18 = vrot.slane %v4837_v57, 1  ;;  %v844_v24 = vrot.slane %v4845_v2, 1  ;;  %v848_v43 = vrot.slane %v4853_v46, 1 }
  0x75   : > { %9846 = vst [vmem:[#allocation54_spill] sm:$0xff] %v4744_v48  ;;  %v9897_v48 = vld [vmem:[#allocation32_spill] sm:$0xff]  ;;  %v851_v25 = vrot.slane %v4861_v42, 1 }
  0x76   : > { %9848 = vst [vmem:[#allocation55_spill] sm:$0xff] %v4747_v3  ;;  %v9896_v3 = vld [vmem:[#allocation47_spill] sm:$0xff]  ;;  %v9909_v53 = vld [vmem:[#allocation52_spill] sm:$0xff] }
  0x77   : > { %9850 = vst [vmem:[#allocation56_spill] sm:$0xff] %v4750_v16  ;;  %v9895_v16 = vld [vmem:[#allocation15_spill] sm:$0xff] }
  0x78   : > { %9852 = vst [vmem:[#allocation57_spill] sm:$0xff] %v4753_v22  ;;  %v9894_v22 = vld [vmem:[#allocation31_spill] sm:$0xff] }
  0x79   : > { %9854 = vst [vmem:[#allocation58_spill] sm:$0xff] %v4756_v37  ;;  %v9893_v37 = vld [vmem:[#allocation46_spill] sm:$0xff] }
  0x7a   : > { %9856 = vst [vmem:[#allocation59_spill] sm:$0xff] %v4759_v27  ;;  %v9892_v27 = vld [vmem:[#allocation14_spill] sm:$0xff] }
  0x7b   : > { %9858 = vst [vmem:[#allocation60_spill] sm:$0xff] %v4762_v54  ;;  %v9891_v54 = vld [vmem:[#allocation30_spill] sm:$0xff]  ;;  %v4881_v9 = vmul.f32 %v9865_v49, %v9892_v27  ;;  %v4901_v27 = vmul.f32 %v9865_v49, %v9897_v48  ;;  %v4921_v48 = vmul.f32 %v9865_v49, %v9902_v38  ;;  %v9906_v38 = vld [vmem:[#allocation20_spill] sm:$0xff] }
  0x7c   : > { %9860 = vst [vmem:[#allocation61_spill] sm:$0xff] %v4765_v40  ;;  %v9890_v40 = vld [vmem:[#allocation45_spill] sm:$0xff]  ;;  %v4877_v60 = vmul.f32 %v9865_v49, %v9891_v54  ;;  %v4897_v54 = vmul.f32 %v9865_v49, %v9896_v3  ;;  %v4917_v3 = vmul.f32 %v9865_v49, %v9901_v39  ;;  %v4937_v39 = vmul.f32 %v9865_v49, %v9821_v11 }
  0x7d   : > { %9862 = vst [vmem:[#allocation62_spill] sm:$0xff] %v4768_v63  ;;  %v9889_v63 = vld [vmem:[#allocation13_spill] sm:$0xff]  ;;  %v4873_v10 = vmul.f32 %v9865_v49, %v9890_v40  ;;  %v4893_v40 = vmul.f32 %v9865_v49, %v9895_v16  ;;  %v4913_v16 = vmul.f32 %v9865_v49, %v9900_v21  ;;  %v9905_v21 = vld [vmem:[#allocation50_spill] sm:$0xff]  ;;  %v4941_v14 = vmul.f32 %v9865_v49, %v9906_v38 }
  0x7e   : > { %9864 = vst [vmem:[#allocation64_spill] sm:$0xff] %v4771_v6  ;;  %v9888_v6 = vld [vmem:[#allocation29_spill] sm:$0xff]  ;;  %v4869_v23 = vmul.f32 %v9865_v49, %v9889_v63  ;;  %v4889_v63 = vmul.f32 %v9865_v49, %v9894_v22  ;;  %v4909_v22 = vmul.f32 %v9865_v49, %v9899_v31  ;;  %v9904_v31 = vld [vmem:[#allocation18_spill] sm:$0xff]  ;;  %v4933_v62 = vmul.f32 %v9865_v49, %v9905_v21 }
  0x7f   : > { %v4865_v41 = vmul.f32 %v9865_v49, %v9888_v6  ;;  %v4885_v6 = vmul.f32 %v9865_v49, %v9893_v37  ;;  %v4905_v37 = vmul.f32 %v9865_v49, %v9898_v52  ;;  %v816_v52 = vrot.slane %v718_v35, 1 }
  0x80   : > { %v4929_v59 = vmul.f32 %v9865_v49, %v9904_v31  ;;  %v4945_v35 = vmul.f32 %v9865_v49, %v9907_v30  ;;  %v4949_v31 = vmul.f32 %v9865_v49, %v9908_v32  ;;  %v4953_v21 = vmul.f32 %v9865_v49, %v9824_v34 }
  0x81   : > { %v4957_v11 = vmul.f32 %v9865_v49, %v9909_v53  ;;  %v819_v38 = vrot.slane %v4785_v47, 1  ;;  %v4963_v30 = vsel %vm812_vm1, %v813_v20, %v814_v4  ;;  %v4966_v32 = vsel %vm812_vm1, %v814_v4, %v816_v52 }
  0x82   : > { %v824_v34 = vrot.slane %v4797_v7, 1  ;;  %v828_v49 = vrot.slane %v4805_v36, 1  ;;  %v831_v47 = vrot.slane %v4813_v12, 1  ;;  %v834_v20 = vrot.slane %v4821_v45, 1 }
  0x83   : > { %v836_v53 = vrot.slane %v4825_v58, 1  ;;  %v838_v4 = vrot.slane %v4829_v33, 1  ;;  %v839_v52 = vrot.slane %v4833_v44, 1  ;;  %v843_v7 = vrot.slane %v4841_v28, 1 }
  0x84   : > { %v846_v36 = vrot.slane %v4849_v19, 1  ;;  %v849_v12 = vrot.slane %v4857_v56, 1  ;;  %v820_v58 = vsel %vm812_vm1, %v818_v61, %v819_v38  ;;  %v822_v33 = vsel %vm812_vm1, %v819_v38, %v821_v51 }
  0x85   : > { %v853_v44 = vrot.slane %v4865_v41, 1  ;;  %v854_v57 = vrot.slane %v4869_v23, 1  ;;  %v825_v28 = vsel %vm812_vm1, %v823_v55, %v824_v34  ;;  %v827_v45 = vsel %vm812_vm1, %v824_v34, %v826_v50 }
  0x86   : > { %v830_v19 = vsel %vm812_vm1, %v828_v49, %v829_v29  ;;  %v832_v46 = vsel %vm812_vm1, %v829_v29, %v831_v47  ;;  %v835_v56 = vsel %vm812_vm1, %v833_v1, %v834_v20  ;;  %v837_v42 = vsel %vm812_vm1, %v834_v20, %v836_v53 }
  0x87   : > { %v840_v61 = vsel %vm812_vm1, %v838_v4, %v839_v52  ;;  %v842_v51 = vsel %vm812_vm1, %v839_v52, %v841_v18  ;;  %v845_v38 = vsel %vm812_vm1, %v843_v7, %v844_v24  ;;  %v847_v23 = vsel %vm812_vm1, %v844_v24, %v846_v36 }
  0x88   : > { %v850_v55 = vsel %vm812_vm1, %v848_v43, %v849_v12  ;;  %v852_v34 = vsel %vm812_vm1, %v849_v12, %v851_v25  ;;  %v855_v50 = vsel %vm812_vm1, %v853_v44, %v854_v57  ;;  %v856_v41 = vrot.slane %v4873_v10, 1 }
  0x89   : > { %v858_v2 = vrot.slane %v4877_v60, 1  ;;  %v859_v53 = vrot.slane %v4881_v9, 1  ;;  %v861_v49 = vrot.slane %v4885_v6, 1  ;;  %v863_v29 = vrot.slane %v4889_v63, 1 }
  0x8a   : > { %v864_v47 = vrot.slane %v4893_v40, 1  ;;  %v866_v1 = vrot.slane %v4897_v54, 1  ;;  %v868_v20 = vrot.slane %v4901_v27, 1  ;;  %v869_v4 = vrot.slane %v4905_v37, 1 }
  0x8b   : > { %v871_v52 = vrot.slane %v4909_v22, 1  ;;  %v873_v10 = vrot.slane %v4913_v16, 1  ;;  %v874_v60 = vrot.slane %v4917_v3, 1  ;;  %v876_v9 = vrot.slane %v4921_v48, 1 }
  0x8c   : > { %v878_v6 = vrot.slane %v4925_v26, 1  ;;  %v879_v63 = vrot.slane %v4929_v59, 1  ;;  %v881_v40 = vrot.slane %v4933_v62, 1  ;;  %v883_v54 = vrot.slane %v4937_v39, 1 }
  0x8d   : > { %v884_v27 = vrot.slane %v4941_v14, 1  ;;  %v886_v37 = vrot.slane %v4945_v35, 1  ;;  %v857_v22 = vsel %vm812_vm1, %v854_v57, %v856_v41  ;;  %v888_v16 = vrot.slane %v4949_v31, 1 }
  0x8e   : > { %v889_v3 = vrot.slane %v4953_v21, 1  ;;  %v891_v48 = vrot.slane %v4957_v11, 1  ;;  %v860_v26 = vsel %vm812_vm1, %v858_v2, %v859_v53  ;;  %v862_v59 = vsel %vm812_vm1, %v859_v53, %v861_v49  ;;  %v9910_v53 = vld [vmem:[#allocation66_spill] sm:$0xff] }
  0x8f   : > { %v865_v62 = vsel %vm812_vm1, %v863_v29, %v864_v47  ;;  %v867_v39 = vsel %vm812_vm1, %v864_v47, %v866_v1  ;;  %v870_v14 = vsel %vm812_vm1, %v868_v20, %v869_v4  ;;  %v872_v35 = vsel %vm812_vm1, %v869_v4, %v871_v52 }
  0x90   : > { %v875_v18 = vsel %vm812_vm1, %v873_v10, %v874_v60  ;;  %v877_v31 = vsel %vm812_vm1, %v874_v60, %v876_v9  ;;  %v880_v21 = vsel %vm812_vm1, %v878_v6, %v879_v63  ;;  %v882_v11 = vsel %vm812_vm1, %v879_v63, %v881_v40  ;;  %v9945_v40 = vld [vmem:[#allocation55_spill] sm:$0xff] }
  0x91   : > { %v885_v7 = vsel %vm812_vm1, %v883_v54, %v884_v27  ;;  %v887_v24 = vsel %vm812_vm1, %v884_v27, %v886_v37  ;;  %v890_v36 = vsel %vm812_vm1, %v888_v16, %v889_v3  ;;  %v892_v43 = vsel %vm812_vm1, %v889_v3, %v891_v48  ;;  %v9947_v27 = vld [vmem:[#allocation56_spill] sm:$0xff]  ;;  %v9951_v3 = vld [vmem:[#allocation58_spill] sm:$0xff] }
  0x92   : > { %v5042_v12 = vadd.f32 %v4963_v30, %v4678_v17  ;;  %v5046_v25 = vadd.f32 %v4966_v32, %v4681_v13  ;;  %v5049_v44 = vadd.f32 %v820_v58, %v4684_v8  ;;  %v5052_v57 = vadd.f32 %v822_v33, %v4687_v15  ;;  %v9912_v17 = vld [vmem:[#allocation67_spill] sm:$0xff]  ;;  %v9914_v13 = vld [vmem:[#allocation68_spill] sm:$0xff]  ;;  %v9916_v8 = vld [vmem:[#allocation69_spill] sm:$0xff] }
  0x93   : > { %v5055_v41 = vadd.f32 %v825_v28, %v4690_v5  ;;  %v5058_v2 = vadd.f32 %v827_v45, %v4693_v0  ;;  %v5061_v49 = vadd.f32 %v830_v19, %v9910_v53  ;;  %v5064_v30 = vadd.f32 %v832_v46, %v9912_v17  ;;  %v9918_v15 = vld [vmem:[#allocation70_spill] sm:$0xff]  ;;  %v9920_v5 = vld [vmem:[#allocation71_spill] sm:$0xff]  ;;  %v9922_v0 = vld [vmem:[#allocation72_spill] sm:$0xff] }
  0x94   : > { %v5067_v32 = vadd.f32 %v835_v56, %v9914_v13  ;;  %v5070_v58 = vadd.f32 %v837_v42, %v9916_v8  ;;  %v5073_v33 = vadd.f32 %v840_v61, %v9918_v15  ;;  %v5076_v28 = vadd.f32 %v842_v51, %v9920_v5  ;;  %v9924_v19 = vld [vmem:[#allocation73_spill] sm:$0xff]  ;;  %v9926_v46 = vld [vmem:[#allocation74_spill] sm:$0xff]  ;;  %v9928_v56 = vld [vmem:[#allocation75_spill] sm:$0xff] }
  0x95   : > { %9911 = vst [vmem:[#allocation65_spill] sm:$0xff] %v5061_v49  ;;  %v5079_v45 = vadd.f32 %v845_v38, %v9922_v0  ;;  %v5082_v29 = vadd.f32 %v847_v23, %v9924_v19  ;;  %v5085_v47 = vadd.f32 %v850_v55, %v9926_v46  ;;  %v5088_v1 = vadd.f32 %v852_v34, %v9928_v56  ;;  %v9930_v42 = vld [vmem:[#allocation76_spill] sm:$0xff]  ;;  %v9932_v61 = vld [vmem:[#allocation2_spill] sm:$0xff]  ;;  %v9933_v51 = vld [vmem:[#allocation77_spill] sm:$0xff] }
  0x96   : > { %9913 = vst [vmem:[#allocation66_spill] sm:$0xff] %v5064_v30  ;;  %v5091_v20 = vadd.f32 %v855_v50, %v9930_v42  ;;  %v5094_v4 = vperm.slane %v9932_v61, 4  ;;  %v5097_v52 = vadd.f32 %v857_v22, %v9933_v51  ;;  %v9935_v38 = vld [vmem:[#allocation78_spill] sm:$0xff]  ;;  %v9937_v23 = vld [vmem:[#allocation79_spill] sm:$0xff]  ;;  %v9939_v55 = vld [vmem:[#allocation80_spill] sm:$0xff]  ;;  %v5115_v54 = vadd.f32 %v872_v35, %v9945_v40 }
  0x97   : > { %9915 = vst [vmem:[#allocation67_spill] sm:$0xff] %v5067_v32  ;;  %v5100_v10 = vadd.f32 %v860_v26, %v9935_v38  ;;  %v5103_v60 = vadd.f32 %v862_v59, %v9937_v23  ;;  %v5106_v9 = vadd.f32 %v865_v62, %v9939_v55  ;;  %v9941_v34 = vld [vmem:[#allocation63_spill] sm:$0xff]  ;;  %v9943_v50 = vld [vmem:[#allocation54_spill] sm:$0xff]  ;;  %v5118_v37 = vadd.f32 %v875_v18, %v9947_v27  ;;  %v9949_v22 = vld [vmem:[#allocation57_spill] sm:$0xff] }
  0x98   : > { %9917 = vst [vmem:[#allocation68_spill] sm:$0xff] %v5070_v58  ;;  %v5109_v6 = vadd.f32 %v867_v39, %v9941_v34  ;;  %v5112_v63 = vadd.f32 %v870_v14, %v9943_v50  ;;  %v5121_v16 = vadd.f32 %v877_v31, %v9949_v22  ;;  %v5124_v48 = vadd.f32 %v880_v21, %v9951_v3  ;;  %v9953_v26 = vld [vmem:[#allocation59_spill] sm:$0xff]  ;;  %v9955_v62 = vld [vmem:[#allocation60_spill] sm:$0xff]  ;;  %v9957_v14 = vld [vmem:[#allocation61_spill] sm:$0xff] }
  0x99   : > { %9919 = vst [vmem:[#allocation69_spill] sm:$0xff] %v5073_v33  ;;  %v5127_v59 = vadd.f32 %v882_v11, %v9953_v26  ;;  %v5130_v39 = vadd.f32 %v885_v7, %v9955_v62  ;;  %v5133_v53 = vadd.f32 %v887_v24, %v9957_v14  ;;  %v9959_v35 = vld [vmem:[#allocation62_spill] sm:$0xff]  ;;  %v9961_v18 = vld [vmem:[#allocation64_spill] sm:$0xff]  ;;  %v9963_v31 = vld [vmem:[#allocation19_spill] sm:$0xff] }
  0x9a   : > { %9921 = vst [vmem:[#allocation70_spill] sm:$0xff] %v5076_v28  ;;  %v5136_v17 = vadd.f32 %v890_v36, %v9959_v35  ;;  %v5139_v13 = vadd.f32 %v892_v43, %v9961_v18  ;;  %v958_v8 = vmul.f32 %v5094_v4, %v9963_v31  ;;  %v9964_v21 = vld [vmem:[#allocation6_spill] sm:$0xff]  ;;  %v9967_v24 = vld [vmem:[#allocation7_spill] sm:$0xff]  ;;  %v9970_v42 = vld [vmem:[#allocation8_spill] sm:$0xff] }
  0x9b   : > { %9923 = vst [vmem:[#allocation71_spill] sm:$0xff] %v5079_v45  ;;  %v959_v15 = vmul.f32 %v5094_v4, %v9964_v21  ;;  %v9965_v11 = vld [vmem:[#allocation38_spill] sm:$0xff]  ;;  %v5153_v36 = vmul.f32 %v5094_v4, %v9967_v24  ;;  %v9968_v19 = vld [vmem:[#allocation39_spill] sm:$0xff]  ;;  %v5165_v61 = vmul.f32 %v5094_v4, %v9970_v42  ;;  %v9971_v51 = vld [vmem:[#allocation40_spill] sm:$0xff] }
  0x9c   : > { %9925 = vst [vmem:[#allocation72_spill] sm:$0xff] %v5082_v29  ;;  %v960_v5 = vmul.f32 %v5094_v4, %v9965_v11  ;;  %v9966_v7 = vld [vmem:[#allocation22_spill] sm:$0xff]  ;;  %v5157_v43 = vmul.f32 %v5094_v4, %v9968_v19  ;;  %v9969_v46 = vld [vmem:[#allocation23_spill] sm:$0xff]  ;;  %v5169_v38 = vmul.f32 %v5094_v4, %v9971_v51  ;;  %v9972_v23 = vld [vmem:[#allocation25_spill] sm:$0xff] }
  0x9d   : > { %9927 = vst [vmem:[#allocation73_spill] sm:$0xff] %v5085_v47  ;;  %v5149_v0 = vmul.f32 %v5094_v4, %v9966_v7  ;;  %v5161_v56 = vmul.f32 %v5094_v4, %v9969_v46  ;;  %v5173_v55 = vmul.f32 %v5094_v4, %v9972_v23  ;;  %v9973_v34 = vld [vmem:[#allocation9_spill] sm:$0xff]  ;;  %v9975_v22 = vld [vmem:[#allocation26_spill] sm:$0xff]  ;;  %v9978_v18 = vld [vmem:[#allocation27_spill] sm:$0xff]  ;;  %v1065_v30 = vrot.slane %v5165_v61, 1 }
  0x9e   : > { %9929 = vst [vmem:[#allocation74_spill] sm:$0xff] %v5088_v1  ;;  %v5177_v50 = vmul.f32 %v5094_v4, %v9973_v34  ;;  %v9974_v40 = vld [vmem:[#allocation41_spill] sm:$0xff]  ;;  %v5185_v3 = vmul.f32 %v5094_v4, %v9975_v22  ;;  %v9976_v26 = vld [vmem:[#allocation10_spill] sm:$0xff]  ;;  %v5197_v11 = vmul.f32 %v5094_v4, %v9978_v18  ;;  %v9979_v21 = vld [vmem:[#allocation11_spill] sm:$0xff]  ;;  %v1067_v49 = vrot.slane %v5169_v38, 1 }
  0x9f   : > { %9931 = vst [vmem:[#allocation75_spill] sm:$0xff] %v5091_v20  ;;  %v5181_v27 = vmul.f32 %v5094_v4, %v9974_v40  ;;  %v5189_v62 = vmul.f32 %v5094_v4, %v9976_v26  ;;  %v9977_v14 = vld [vmem:[#allocation42_spill] sm:$0xff]  ;;  %v5201_v31 = vmul.f32 %v5094_v4, %v9979_v21  ;;  %v9980_v40 = vld [vmem:[#allocation43_spill] sm:$0xff]  ;;  %v9981_v34 = vld [vmem:[#allocation28_spill] sm:$0xff]  ;;  %v1059_v58 = vrot.slane %v5149_v0, 1 }
  0xa0   : > { %9934 = vst [vmem:[#allocation76_spill] sm:$0xff] %v5097_v52  ;;  %v5193_v35 = vmul.f32 %v5094_v4, %v9977_v14  ;;  %v5205_v22 = vmul.f32 %v5094_v4, %v9980_v40  ;;  %v5209_v26 = vmul.f32 %v5094_v4, %v9981_v34  ;;  %v9982_v23 = vld [vmem:[#allocation12_spill] sm:$0xff]  ;;  %v9984_v42 = vld [vmem:[#allocation29_spill] sm:$0xff]  ;;  %v9987_v24 = vld [vmem:[#allocation30_spill] sm:$0xff]  ;;  %v1055_v52 = vrot.slane %v959_v15, 1 }
  0xa1   : > { %9936 = vst [vmem:[#allocation2_spill] sm:$0xff] %v5100_v10  ;;  %v5213_v14 = vmul.f32 %v5094_v4, %v9982_v23  ;;  %v9983_v51 = vld [vmem:[#allocation44_spill] sm:$0xff]  ;;  %v5221_v21 = vmul.f32 %v5094_v4, %v9984_v42  ;;  %v9985_v46 = vld [vmem:[#allocation13_spill] sm:$0xff]  ;;  %v5233_v23 = vmul.f32 %v5094_v4, %v9987_v24  ;;  %v9988_v7 = vld [vmem:[#allocation14_spill] sm:$0xff]  ;;  %v1054_v10 = vrot.slane %v958_v8, 1 }
  0xa2   : > { %9938 = vst [vmem:[#allocation77_spill] sm:$0xff] %v5103_v60  ;;  %v5217_v18 = vmul.f32 %v5094_v4, %v9983_v51  ;;  %v5225_v40 = vmul.f32 %v5094_v4, %v9985_v46  ;;  %v9986_v19 = vld [vmem:[#allocation45_spill] sm:$0xff]  ;;  %v5237_v51 = vmul.f32 %v5094_v4, %v9988_v7  ;;  %v10001_v60 = vld [vmem:[#allocation50_spill] sm:$0xff]  ;;  %v10005_v29 = vld [vmem:[#allocation36_spill] sm:$0xff]  ;;  %v1070_v0 = vrot.slane %v5177_v50, 1 }
  0xa3   : > { %9940 = vst [vmem:[#allocation78_spill] sm:$0xff] %v5106_v9  ;;  %v5229_v34 = vmul.f32 %v5094_v4, %v9986_v19  ;;  %v10000_v9 = vld [vmem:[#allocation18_spill] sm:$0xff]  ;;  %v5305_v45 = vmul.f32 %v5094_v4, %v10005_v29  ;;  %v10007_v15 = vld [vmem:[#allocation52_spill] sm:$0xff]  ;;  %v10008_v28 = vld [vmem:[#allocation37_spill] sm:$0xff]  ;;  %v5330_v32 = vsel %vm812_vm1, %v1054_v10, %v1055_v52  ;;  %v1074_v10 = vrot.slane %v5185_v3, 1 }
  0xa4   : > { %9942 = vst [vmem:[#allocation79_spill] sm:$0xff] %v5109_v6  ;;  %v9999_v6 = vld [vmem:[#allocation34_spill] sm:$0xff]  ;;  %v10009_v33 = vld [vmem:[#allocation24_spill] sm:$0xff]  ;;  %v1080_v61 = vrot.slane %v5201_v31, 1  ;;  %v1085_v38 = vrot.slane %v5213_v14, 1  ;;  %v1089_v50 = vrot.slane %v5221_v21, 1  ;;  %v1068_v14 = vsel %vm812_vm1, %v1065_v30, %v1067_v49 }
  0xa5   : > { %9944 = vst [vmem:[#allocation80_spill] sm:$0xff] %v5112_v63  ;;  %v9998_v63 = vld [vmem:[#allocation49_spill] sm:$0xff]  ;;  %v1095_v31 = vrot.slane %v5237_v51, 1 }
  0xa6   : > { %9946 = vst [vmem:[#allocation63_spill] sm:$0xff] %v5115_v54  ;;  %v9997_v54 = vld [vmem:[#allocation17_spill] sm:$0xff] }
  0xa7   : > { %9948 = vst [vmem:[#allocation54_spill] sm:$0xff] %v5118_v37  ;;  %v9996_v37 = vld [vmem:[#allocation33_spill] sm:$0xff] }
  0xa8   : > { %9950 = vst [vmem:[#allocation55_spill] sm:$0xff] %v5121_v16  ;;  %v9995_v16 = vld [vmem:[#allocation48_spill] sm:$0xff] }
  0xa9   : > { %9952 = vst [vmem:[#allocation56_spill] sm:$0xff] %v5124_v48  ;;  %v9994_v48 = vld [vmem:[#allocation16_spill] sm:$0xff] }
  0xaa   : > { %9954 = vst [vmem:[#allocation57_spill] sm:$0xff] %v5127_v59  ;;  %v9993_v59 = vld [vmem:[#allocation32_spill] sm:$0xff] }
  0xab   : > { %9956 = vst [vmem:[#allocation58_spill] sm:$0xff] %v5130_v39  ;;  %v9992_v39 = vld [vmem:[#allocation47_spill] sm:$0xff]  ;;  %v5257_v7 = vmul.f32 %v5094_v4, %v9993_v59  ;;  %v5277_v59 = vmul.f32 %v5094_v4, %v9998_v63  ;;  %v10003_v63 = vld [vmem:[#allocation20_spill] sm:$0xff] }
  0xac   : > { %9958 = vst [vmem:[#allocation59_spill] sm:$0xff] %v5133_v53  ;;  %v9991_v53 = vld [vmem:[#allocation15_spill] sm:$0xff]  ;;  %v5253_v24 = vmul.f32 %v5094_v4, %v9992_v39  ;;  %v5273_v39 = vmul.f32 %v5094_v4, %v9997_v54  ;;  %v5297_v1 = vmul.f32 %v5094_v4, %v10003_v63  ;;  %v5317_v63 = vmul.f32 %v5094_v4, %v10008_v28 }
  0xad   : > { %9960 = vst [vmem:[#allocation60_spill] sm:$0xff] %v5136_v17  ;;  %v9990_v17 = vld [vmem:[#allocation31_spill] sm:$0xff]  ;;  %v5249_v19 = vmul.f32 %v5094_v4, %v9991_v53  ;;  %v5269_v53 = vmul.f32 %v5094_v4, %v9996_v37  ;;  %v5289_v37 = vmul.f32 %v5094_v4, %v10001_v60  ;;  %v10006_v60 = vld [vmem:[#allocation21_spill] sm:$0xff]  ;;  %v1064_v28 = vrot.slane %v5161_v56, 1 }
  0xae   : > { %9962 = vst [vmem:[#allocation61_spill] sm:$0xff] %v5139_v13  ;;  %v9989_v13 = vld [vmem:[#allocation46_spill] sm:$0xff]  ;;  %v5245_v46 = vmul.f32 %v5094_v4, %v9990_v17  ;;  %v5265_v17 = vmul.f32 %v5094_v4, %v9995_v16  ;;  %v5285_v16 = vmul.f32 %v5094_v4, %v10000_v9  ;;  %v10002_v54 = vld [vmem:[#allocation35_spill] sm:$0xff]  ;;  %v1057_v9 = vrot.slane %v960_v5, 1  ;;  %v10010_v5 = vld [vmem:[#allocation53_spill] sm:$0xff] }
  0xaf   : > { %v5241_v42 = vmul.f32 %v5094_v4, %v9989_v13  ;;  %v5261_v13 = vmul.f32 %v5094_v4, %v9994_v48  ;;  %v5281_v48 = vmul.f32 %v5094_v4, %v9999_v6  ;;  %v5293_v20 = vmul.f32 %v5094_v4, %v10002_v54  ;;  %v10004_v6 = vld [vmem:[#allocation51_spill] sm:$0xff] }
  0xb0   : > { %v5301_v47 = vmul.f32 %v5094_v4, %v10004_v6  ;;  %v5309_v8 = vmul.f32 %v5094_v4, %v10006_v60  ;;  %v5313_v54 = vmul.f32 %v5094_v4, %v10007_v15  ;;  %v5321_v6 = vmul.f32 %v5094_v4, %v10009_v33 }
  0xb1   : > { %v5325_v29 = vmul.f32 %v5094_v4, %v10010_v5  ;;  %v1060_v60 = vrot.slane %v5153_v36, 1  ;;  %v1062_v15 = vrot.slane %v5157_v43, 1  ;;  %v5336_v33 = vsel %vm812_vm1, %v1055_v52, %v1057_v9 }
  0xb2   : > { %v1069_v4 = vrot.slane %v5173_v55, 1  ;;  %v1072_v36 = vrot.slane %v5181_v27, 1  ;;  %v1075_v5 = vrot.slane %v5189_v62, 1  ;;  %v1077_v43 = vrot.slane %v5193_v35, 1 }
  0xb3   : > { %v1079_v56 = vrot.slane %v5197_v11, 1  ;;  %v1082_v52 = vrot.slane %v5205_v22, 1  ;;  %v1084_v9 = vrot.slane %v5209_v26, 1  ;;  %v1087_v55 = vrot.slane %v5217_v18, 1 }
  0xb4   : > { %v1090_v27 = vrot.slane %v5225_v40, 1  ;;  %v1061_v3 = vsel %vm812_vm1, %v1059_v58, %v1060_v60  ;;  %v1092_v62 = vrot.slane %v5229_v34, 1  ;;  %v1094_v11 = vrot.slane %v5233_v23, 1 }
  0xb5   : > { %v1063_v22 = vsel %vm812_vm1, %v1060_v60, %v1062_v15  ;;  %v1066_v26 = vsel %vm812_vm1, %v1064_v28, %v1065_v30  ;;  %v1071_v35 = vsel %vm812_vm1, %v1069_v4, %v1070_v0  ;;  %v1073_v21 = vsel %vm812_vm1, %v1070_v0, %v1072_v36 }
  0xb6   : > { %v1076_v40 = vsel %vm812_vm1, %v1074_v10, %v1075_v5  ;;  %v1078_v58 = vsel %vm812_vm1, %v1075_v5, %v1077_v43  ;;  %v1081_v34 = vsel %vm812_vm1, %v1079_v56, %v1080_v61  ;;  %v1083_v23 = vsel %vm812_vm1, %v1080_v61, %v1082_v52 }
  0xb7   : > { %v1086_v51 = vsel %vm812_vm1, %v1084_v9, %v1085_v38  ;;  %v1088_v60 = vsel %vm812_vm1, %v1085_v38, %v1087_v55  ;;  %v1091_v28 = vsel %vm812_vm1, %v1089_v50, %v1090_v27  ;;  %v1093_v49 = vsel %vm812_vm1, %v1090_v27, %v1092_v62 }
  0xb8   : > { %v1096_v30 = vsel %vm812_vm1, %v1094_v11, %v1095_v31  ;;  %v1097_v18 = vrot.slane %v5241_v42, 1  ;;  %v1099_v15 = vrot.slane %v5245_v46, 1  ;;  %v1100_v5 = vrot.slane %v5249_v19, 1 }
  0xb9   : > { %v1102_v4 = vrot.slane %v5253_v24, 1  ;;  %v1104_v0 = vrot.slane %v5257_v7, 1  ;;  %v1105_v36 = vrot.slane %v5261_v13, 1  ;;  %v1107_v10 = vrot.slane %v5265_v17, 1 }
  0xba   : > { %v1109_v43 = vrot.slane %v5269_v53, 1  ;;  %v1110_v56 = vrot.slane %v5273_v39, 1  ;;  %v1112_v61 = vrot.slane %v5277_v59, 1  ;;  %v1114_v42 = vrot.slane %v5281_v48, 1 }
  0xbb   : > { %v1115_v46 = vrot.slane %v5285_v16, 1  ;;  %v1117_v19 = vrot.slane %v5289_v37, 1  ;;  %v1119_v24 = vrot.slane %v5293_v20, 1  ;;  %v1120_v7 = vrot.slane %v5297_v1, 1 }
  0xbc   : > { %v1122_v13 = vrot.slane %v5301_v47, 1  ;;  %v1124_v17 = vrot.slane %v5305_v45, 1  ;;  %v1125_v53 = vrot.slane %v5309_v8, 1  ;;  %v1098_v39 = vsel %vm812_vm1, %v1095_v31, %v1097_v18 }
  0xbd   : > { %v1127_v59 = vrot.slane %v5313_v54, 1  ;;  %v1129_v48 = vrot.slane %v5317_v63, 1  ;;  %v1130_v16 = vrot.slane %v5321_v6, 1  ;;  %v1101_v37 = vsel %vm812_vm1, %v1099_v15, %v1100_v5 }
  0xbe   : > { %v1103_v20 = vsel %vm812_vm1, %v1100_v5, %v1102_v4  ;;  %v1106_v1 = vsel %vm812_vm1, %v1104_v0, %v1105_v36  ;;  %v1132_v47 = vrot.slane %v5325_v29, 1  ;;  %v1108_v45 = vsel %vm812_vm1, %v1105_v36, %v1107_v10  ;;  %v10012_v5 = vld [vmem:[#allocation66_spill] sm:$0xff] }
  0xbf   : > { %v1111_v8 = vsel %vm812_vm1, %v1109_v43, %v1110_v56  ;;  %v1113_v52 = vsel %vm812_vm1, %v1110_v56, %v1112_v61  ;;  %v1116_v54 = vsel %vm812_vm1, %v1114_v42, %v1115_v46  ;;  %v1118_v63 = vsel %vm812_vm1, %v1115_v46, %v1117_v19  ;;  %v10041_v46 = vld [vmem:[#allocation79_spill] sm:$0xff] }
  0xc0   : > { %v1121_v6 = vsel %vm812_vm1, %v1119_v24, %v1120_v7  ;;  %v1123_v9 = vsel %vm812_vm1, %v1120_v7, %v1122_v13  ;;  %v1126_v38 = vsel %vm812_vm1, %v1124_v17, %v1125_v53  ;;  %v1128_v55 = vsel %vm812_vm1, %v1125_v53, %v1127_v59  ;;  %v10043_v24 = vld [vmem:[#allocation80_spill] sm:$0xff]  ;;  %v10045_v13 = vld [vmem:[#allocation63_spill] sm:$0xff]  ;;  %v10047_v53 = vld [vmem:[#allocation54_spill] sm:$0xff] }
  0xc1   : > { %v1131_v29 = vsel %vm812_vm1, %v1129_v48, %v1130_v16  ;;  %v5409_v50 = vadd.f32 %v5330_v32, %v5042_v12  ;;  %v5413_v27 = vadd.f32 %v5336_v33, %v5046_v25  ;;  %v1133_v62 = vsel %vm812_vm1, %v1130_v16, %v1132_v47  ;;  %v10011_v12 = vld [vmem:[#allocation65_spill] sm:$0xff]  ;;  %v10014_v33 = vld [vmem:[#allocation67_spill] sm:$0xff]  ;;  %v10051_v16 = vld [vmem:[#allocation56_spill] sm:$0xff] }
  0xc2   : > { %v5417_v11 = vadd.f32 %v1061_v3, %v5049_v44  ;;  %v5420_v31 = vadd.f32 %v1063_v22, %v5052_v57  ;;  %v5423_v18 = vadd.f32 %v1066_v26, %v5055_v41  ;;  %v5426_v15 = vadd.f32 %v1068_v14, %v5058_v2  ;;  %v10016_v44 = vld [vmem:[#allocation68_spill] sm:$0xff]  ;;  %v10018_v57 = vld [vmem:[#allocation69_spill] sm:$0xff]  ;;  %v10020_v41 = vld [vmem:[#allocation70_spill] sm:$0xff] }
  0xc3   : > { %v5429_v32 = vadd.f32 %v1071_v35, %v10011_v12  ;;  %v5432_v25 = vadd.f32 %v1073_v21, %v10012_v5  ;;  %v5435_v4 = vadd.f32 %v1076_v40, %v10014_v33  ;;  %v5438_v3 = vadd.f32 %v1078_v58, %v10016_v44  ;;  %v10022_v2 = vld [vmem:[#allocation71_spill] sm:$0xff]  ;;  %v10024_v35 = vld [vmem:[#allocation72_spill] sm:$0xff]  ;;  %v10026_v21 = vld [vmem:[#allocation73_spill] sm:$0xff] }
  0xc4   : > { %v5441_v22 = vadd.f32 %v1081_v34, %v10018_v57  ;;  %v5444_v26 = vadd.f32 %v1083_v23, %v10020_v41  ;;  %v5447_v14 = vadd.f32 %v1086_v51, %v10022_v2  ;;  %v5450_v0 = vadd.f32 %v1088_v60, %v10024_v35  ;;  %v10028_v40 = vld [vmem:[#allocation74_spill] sm:$0xff]  ;;  %v10030_v58 = vld [vmem:[#allocation75_spill] sm:$0xff]  ;;  %v10032_v34 = vld [vmem:[#allocation76_spill] sm:$0xff] }
  0xc5   : > { %10013 = vst [vmem:[#allocation62_spill] sm:$0xff] %v5432_v25  ;;  %v5453_v36 = vadd.f32 %v1091_v28, %v10026_v21  ;;  %v5456_v10 = vadd.f32 %v1093_v49, %v10028_v40  ;;  %v5459_v43 = vadd.f32 %v1096_v30, %v10030_v58  ;;  %v5462_v56 = vadd.f32 %v1098_v39, %v10032_v34  ;;  %v10034_v23 = vld [vmem:[#allocation2_spill] sm:$0xff]  ;;  %v10036_v51 = vld [vmem:[#allocation77_spill] sm:$0xff]  ;;  %v10049_v59 = vld [vmem:[#allocation55_spill] sm:$0xff] }
  0xc6   : > { %10015 = vst [vmem:[#allocation64_spill] sm:$0xff] %v5435_v4  ;;  %v5465_v61 = vadd.f32 %v1101_v37, %v10034_v23  ;;  %v5468_v42 = vadd.f32 %v1103_v20, %v10036_v51  ;;  %v5473_v60 = vld [vmem:[%s9366_s1] sm:$0xff]  ;;  %v5482_v19 = vadd.f32 %v1108_v45, %v10041_v46  ;;  %v5485_v7 = vadd.f32 %v1111_v8, %v10043_v24  ;;  %v10053_v20 = vld [vmem:[#allocation57_spill] sm:$0xff]  ;;  %v10057_v8 = vld [vmem:[#allocation59_spill] sm:$0xff] }
  0xc7   : > { %10017 = vst [vmem:[#allocation65_spill] sm:$0xff] %v5438_v3  ;;  %v5476_v28 = vperm.slane %v5473_v60, 7  ;;  %v10039_v49 = vld [vmem:[#allocation78_spill] sm:$0xff]  ;;  %v5488_v17 = vadd.f32 %v1113_v52, %v10045_v13  ;;  %v5491_v39 = vadd.f32 %v1116_v54, %v10047_v53  ;;  %v5494_v48 = vadd.f32 %v1118_v63, %v10049_v59  ;;  %v10059_v52 = vld [vmem:[#allocation60_spill] sm:$0xff]  ;;  %v10061_v54 = vld [vmem:[#allocation61_spill] sm:$0xff] }
  0xc8   : > { %10019 = vst [vmem:[#allocation66_spill] sm:$0xff] %v5441_v22  ;;  %v5479_v30 = vadd.f32 %v1106_v1, %v10039_v49  ;;  %v5497_v37 = vadd.f32 %v1121_v6, %v10051_v16  ;;  %v5500_v1 = vadd.f32 %v1123_v9, %v10053_v20  ;;  %v10055_v47 = vld [vmem:[#allocation58_spill] sm:$0xff]  ;;  %v5506_v12 = vadd.f32 %v1128_v55, %v10057_v8  ;;  %v10064_v6 = vld [vmem:[#allocation7_spill] sm:$0xff]  ;;  %v10067_v55 = vld [vmem:[#allocation8_spill] sm:$0xff] }
  0xc9   : > { %10021 = vst [vmem:[#allocation67_spill] sm:$0xff] %v5444_v26  ;;  %v5503_v45 = vadd.f32 %v1126_v38, %v10055_v47  ;;  %v5509_v5 = vadd.f32 %v1131_v29, %v10059_v52  ;;  %v5512_v33 = vadd.f32 %v1133_v62, %v10061_v54  ;;  %v10063_v63 = vld [vmem:[#allocation22_spill] sm:$0xff]  ;;  %v1200_v57 = vmul.f32 %v5476_v28, %v10064_v6  ;;  %v10065_v9 = vld [vmem:[#allocation39_spill] sm:$0xff]  ;;  %v10068_v29 = vld [vmem:[#allocation40_spill] sm:$0xff] }
  0xca   : > { %10023 = vst [vmem:[#allocation68_spill] sm:$0xff] %v5447_v14  ;;  %v1199_v44 = vmul.f32 %v5476_v28, %v10063_v63  ;;  %v1201_v41 = vmul.f32 %v5476_v28, %v10065_v9  ;;  %v10066_v38 = vld [vmem:[#allocation23_spill] sm:$0xff]  ;;  %v1203_v35 = vmul.f32 %v5476_v28, %v10067_v55  ;;  %v1204_v21 = vmul.f32 %v5476_v28, %v10068_v29  ;;  %v10069_v62 = vld [vmem:[#allocation25_spill] sm:$0xff]  ;;  %v10072_v49 = vld [vmem:[#allocation26_spill] sm:$0xff] }
  0xcb   : > { %10025 = vst [vmem:[#allocation69_spill] sm:$0xff] %v5450_v0  ;;  %v1202_v2 = vmul.f32 %v5476_v28, %v10066_v38  ;;  %v5528_v40 = vmul.f32 %v5476_v28, %v10069_v62  ;;  %v10070_v58 = vld [vmem:[#allocation9_spill] sm:$0xff]  ;;  %v5540_v46 = vmul.f32 %v5476_v28, %v10072_v49  ;;  %v10073_v24 = vld [vmem:[#allocation10_spill] sm:$0xff]  ;;  %v10075_v16 = vld [vmem:[#allocation27_spill] sm:$0xff] }
  0xcc   : > { %10027 = vst [vmem:[#allocation70_spill] sm:$0xff] %v5453_v36  ;;  %v5532_v34 = vmul.f32 %v5476_v28, %v10070_v58  ;;  %v10071_v23 = vld [vmem:[#allocation41_spill] sm:$0xff]  ;;  %v5544_v13 = vmul.f32 %v5476_v28, %v10073_v24  ;;  %v10074_v53 = vld [vmem:[#allocation42_spill] sm:$0xff]  ;;  %v5552_v20 = vmul.f32 %v5476_v28, %v10075_v16  ;;  %v10076_v47 = vld [vmem:[#allocation11_spill] sm:$0xff]  ;;  %v1301_v14 = vrot.slane %v1203_v35, 1 }
  0xcd   : > { %10029 = vst [vmem:[#allocation71_spill] sm:$0xff] %v5456_v10  ;;  %v5536_v51 = vmul.f32 %v5476_v28, %v10071_v23  ;;  %v5548_v59 = vmul.f32 %v5476_v28, %v10074_v53  ;;  %v5556_v8 = vmul.f32 %v5476_v28, %v10076_v47  ;;  %v10077_v52 = vld [vmem:[#allocation43_spill] sm:$0xff]  ;;  %v10078_v49 = vld [vmem:[#allocation28_spill] sm:$0xff]  ;;  %v10081_v62 = vld [vmem:[#allocation29_spill] sm:$0xff]  ;;  %v1296_v10 = vrot.slane %v1200_v57, 1 }
  0xce   : > { %10031 = vst [vmem:[#allocation72_spill] sm:$0xff] %v5459_v43  ;;  %v5560_v54 = vmul.f32 %v5476_v28, %v10077_v52  ;;  %v5564_v24 = vmul.f32 %v5476_v28, %v10078_v49  ;;  %v10079_v23 = vld [vmem:[#allocation12_spill] sm:$0xff]  ;;  %v5576_v47 = vmul.f32 %v5476_v28, %v10081_v62  ;;  %v10082_v29 = vld [vmem:[#allocation13_spill] sm:$0xff]  ;;  %v10084_v38 = vld [vmem:[#allocation30_spill] sm:$0xff]  ;;  %v1295_v43 = vrot.slane %v1199_v44, 1 }
  0xcf   : > { %10033 = vst [vmem:[#allocation73_spill] sm:$0xff] %v5462_v56  ;;  %v5568_v53 = vmul.f32 %v5476_v28, %v10079_v23  ;;  %v10080_v58 = vld [vmem:[#allocation44_spill] sm:$0xff]  ;;  %v5580_v52 = vmul.f32 %v5476_v28, %v10082_v29  ;;  %v10083_v55 = vld [vmem:[#allocation45_spill] sm:$0xff]  ;;  %v5588_v23 = vmul.f32 %v5476_v28, %v10084_v38  ;;  %v10085_v9 = vld [vmem:[#allocation14_spill] sm:$0xff]  ;;  %v1303_v26 = vrot.slane %v1204_v21, 1 }
  0xd0   : > { %10035 = vst [vmem:[#allocation74_spill] sm:$0xff] %v5465_v61  ;;  %v5572_v16 = vmul.f32 %v5476_v28, %v10080_v58  ;;  %v5584_v49 = vmul.f32 %v5476_v28, %v10083_v55  ;;  %v5592_v58 = vmul.f32 %v5476_v28, %v10085_v9  ;;  %v10086_v6 = vld [vmem:[#allocation46_spill] sm:$0xff]  ;;  %v10087_v63 = vld [vmem:[#allocation31_spill] sm:$0xff]  ;;  %v10102_v61 = vld [vmem:[#allocation36_spill] sm:$0xff]  ;;  %v5697_v4 = vsel %vm812_vm1, %v1295_v43, %v1296_v10 }
  0xd1   : > { %10037 = vst [vmem:[#allocation75_spill] sm:$0xff] %v5468_v42  ;;  %v5596_v62 = vmul.f32 %v5476_v28, %v10086_v6  ;;  %v5600_v29 = vmul.f32 %v5476_v28, %v10087_v63  ;;  %v10100_v42 = vld [vmem:[#allocation20_spill] sm:$0xff]  ;;  %v10103_v56 = vld [vmem:[#allocation21_spill] sm:$0xff]  ;;  %v1310_v25 = vrot.slane %v5540_v46, 1  ;;  %v1315_v43 = vrot.slane %v5552_v20, 1 }
  0xd2   : > { %10038 = vst [vmem:[#allocation76_spill] sm:$0xff] %v5473_v60  ;;  %v10101_v60 = vld [vmem:[#allocation51_spill] sm:$0xff]  ;;  %v10104_v36 = vld [vmem:[#allocation52_spill] sm:$0xff]  ;;  %v10110_v35 = vld [vmem:[#allocation5_spill] sm:$0xff]  ;;  %v1325_v46 = vrot.slane %v5576_v47, 1 }
  0xd3   : > { %10040 = vst [vmem:[#allocation2_spill] sm:$0xff] %v5479_v30  ;;  %v10099_v30 = vld [vmem:[#allocation35_spill] sm:$0xff]  ;;  %v5668_v0 = vmul.f32 %v5476_v28, %v10104_v36  ;;  %v10108_v57 = vld [vmem:[#allocation4_spill] sm:$0xff]  ;;  %v5692_v21 = vmul.f32 %v5476_v28, %v10110_v35  ;;  %v1316_v35 = vrot.slane %v5556_v8, 1  ;;  %v1333_v20 = vrot.slane %v5596_v62, 1 }
  0xd4   : > { %10042 = vst [vmem:[#allocation77_spill] sm:$0xff] %v5482_v19  ;;  %v10098_v19 = vld [vmem:[#allocation50_spill] sm:$0xff]  ;;  %v10109_v36 = vld [vmem:[#allocation3_spill] sm:$0xff] }
  0xd5   : > { %10044 = vst [vmem:[#allocation78_spill] sm:$0xff] %v5485_v7  ;;  %v10097_v7 = vld [vmem:[#allocation18_spill] sm:$0xff] }
  0xd6   : > { %10046 = vst [vmem:[#allocation79_spill] sm:$0xff] %v5488_v17  ;;  %v10096_v17 = vld [vmem:[#allocation34_spill] sm:$0xff] }
  0xd7   : > { %10048 = vst [vmem:[#allocation80_spill] sm:$0xff] %v5491_v39  ;;  %v10095_v39 = vld [vmem:[#allocation49_spill] sm:$0xff] }
  0xd8   : > { %10050 = vst [vmem:[#allocation63_spill] sm:$0xff] %v5494_v48  ;;  %v10094_v48 = vld [vmem:[#allocation17_spill] sm:$0xff] }
  0xd9   : > { %10052 = vst [vmem:[#allocation54_spill] sm:$0xff] %v5497_v37  ;;  %v10093_v37 = vld [vmem:[#allocation33_spill] sm:$0xff] }
  0xda   : > { %10054 = vst [vmem:[#allocation55_spill] sm:$0xff] %v5500_v1  ;;  %v10092_v1 = vld [vmem:[#allocation48_spill] sm:$0xff] }
  0xdb   : > { %10056 = vst [vmem:[#allocation56_spill] sm:$0xff] %v5503_v45  ;;  %v10091_v45 = vld [vmem:[#allocation16_spill] sm:$0xff]  ;;  %v5620_v63 = vmul.f32 %v5476_v28, %v10092_v1  ;;  %v5640_v1 = vmul.f32 %v5476_v28, %v10097_v7  ;;  %v5660_v7 = vmul.f32 %v5476_v28, %v10102_v61 }
  0xdc   : > { %10058 = vst [vmem:[#allocation57_spill] sm:$0xff] %v5506_v12  ;;  %v10090_v12 = vld [vmem:[#allocation32_spill] sm:$0xff]  ;;  %v5616_v6 = vmul.f32 %v5476_v28, %v10091_v45  ;;  %v5636_v45 = vmul.f32 %v5476_v28, %v10096_v17  ;;  %v5656_v17 = vmul.f32 %v5476_v28, %v10101_v60  ;;  %v10105_v60 = vld [vmem:[#allocation37_spill] sm:$0xff] }
  0xdd   : > { %10060 = vst [vmem:[#allocation58_spill] sm:$0xff] %v5509_v5  ;;  %v10089_v5 = vld [vmem:[#allocation47_spill] sm:$0xff]  ;;  %v5612_v9 = vmul.f32 %v5476_v28, %v10090_v12  ;;  %v5632_v12 = vmul.f32 %v5476_v28, %v10095_v39  ;;  %v5652_v39 = vmul.f32 %v5476_v28, %v10100_v42  ;;  %v1300_v42 = vrot.slane %v1202_v2, 1  ;;  %v10106_v61 = vld [vmem:[#allocation24_spill] sm:$0xff] }
  0xde   : > { %10062 = vst [vmem:[#allocation59_spill] sm:$0xff] %v5512_v33  ;;  %v10088_v33 = vld [vmem:[#allocation15_spill] sm:$0xff]  ;;  %v5608_v38 = vmul.f32 %v5476_v28, %v10089_v5  ;;  %v5628_v5 = vmul.f32 %v5476_v28, %v10094_v48  ;;  %v5648_v48 = vmul.f32 %v5476_v28, %v10099_v30  ;;  %v1298_v30 = vrot.slane %v1201_v41, 1 }
  0xdf   : > { %v5604_v55 = vmul.f32 %v5476_v28, %v10088_v33  ;;  %v5624_v33 = vmul.f32 %v5476_v28, %v10093_v37  ;;  %v5644_v37 = vmul.f32 %v5476_v28, %v10098_v19  ;;  %v5664_v19 = vmul.f32 %v5476_v28, %v10103_v56  ;;  %v10107_v56 = vld [vmem:[#allocation53_spill] sm:$0xff] }
  0xe0   : > { %v5672_v22 = vmul.f32 %v5476_v28, %v10105_v60  ;;  %v5676_v3 = vmul.f32 %v5476_v28, %v10106_v61  ;;  %v5680_v44 = vmul.f32 %v5476_v28, %v10107_v56  ;;  %v5684_v41 = vmul.f32 %v5476_v28, %v10108_v57 }
  0xe1   : > { %v5688_v2 = vmul.f32 %v5476_v28, %v10109_v36  ;;  %v1305_v60 = vrot.slane %v5528_v40, 1  ;;  %v1306_v61 = vrot.slane %v5532_v34, 1  ;;  %v5700_v56 = vsel %vm812_vm1, %v1296_v10, %v1298_v30 }
  0xe2   : > { %v1308_v57 = vrot.slane %v5536_v51, 1  ;;  %v5705_v36 = vsel %vm812_vm1, %v1300_v42, %v1301_v14  ;;  %v5708_v28 = vsel %vm812_vm1, %v1301_v14, %v1303_v26  ;;  %v1311_v40 = vrot.slane %v5544_v13, 1 }
  0xe3   : > { %v1313_v34 = vrot.slane %v5548_v59, 1  ;;  %v1318_v10 = vrot.slane %v5560_v54, 1  ;;  %v1320_v30 = vrot.slane %v5564_v24, 1  ;;  %v1321_v51 = vrot.slane %v5568_v53, 1 }
  0xe4   : > { %v1323_v42 = vrot.slane %v5572_v16, 1  ;;  %v1326_v26 = vrot.slane %v5580_v52, 1  ;;  %v1328_v14 = vrot.slane %v5584_v49, 1  ;;  %v1330_v13 = vrot.slane %v5588_v23, 1 }
  0xe5   : > { %v1331_v59 = vrot.slane %v5592_v58, 1  ;;  %v1307_v8 = vsel %vm812_vm1, %v1305_v60, %v1306_v61  ;;  %v1309_v24 = vsel %vm812_vm1, %v1306_v61, %v1308_v57  ;;  %v1335_v53 = vrot.slane %v5600_v29, 1 }
  0xe6   : > { %v1336_v16 = vrot.slane %v5604_v55, 1  ;;  %v1312_v47 = vsel %vm812_vm1, %v1310_v25, %v1311_v40  ;;  %v1314_v52 = vsel %vm812_vm1, %v1311_v40, %v1313_v34  ;;  %v1317_v49 = vsel %vm812_vm1, %v1315_v43, %v1316_v35 }
  0xe7   : > { %v1338_v23 = vrot.slane %v5608_v38, 1  ;;  %v1319_v58 = vsel %vm812_vm1, %v1316_v35, %v1318_v10  ;;  %v1322_v62 = vsel %vm812_vm1, %v1320_v30, %v1321_v51  ;;  %v1324_v60 = vsel %vm812_vm1, %v1321_v51, %v1323_v42 }
  0xe8   : > { %v1327_v61 = vsel %vm812_vm1, %v1325_v46, %v1326_v26  ;;  %v1329_v29 = vsel %vm812_vm1, %v1326_v26, %v1328_v14  ;;  %v1332_v55 = vsel %vm812_vm1, %v1330_v13, %v1331_v59  ;;  %v1334_v25 = vsel %vm812_vm1, %v1331_v59, %v1333_v20 }
  0xe9   : > { %v1340_v54 = vrot.slane %v5612_v9, 1  ;;  %v1337_v57 = vsel %vm812_vm1, %v1335_v53, %v1336_v16  ;;  %v1341_v38 = vrot.slane %v5616_v6, 1  ;;  %v1343_v35 = vrot.slane %v5620_v63, 1 }
  0xea   : > { %v1345_v40 = vrot.slane %v5624_v33, 1  ;;  %v1339_v34 = vsel %vm812_vm1, %v1336_v16, %v1338_v23  ;;  %v1346_v43 = vrot.slane %v5628_v5, 1  ;;  %v1348_v10 = vrot.slane %v5632_v12, 1 }
  0xeb   : > { %v1350_v30 = vrot.slane %v5636_v45, 1  ;;  %v1351_v51 = vrot.slane %v5640_v1, 1  ;;  %v1353_v9 = vrot.slane %v5644_v37, 1  ;;  %v1355_v42 = vrot.slane %v5648_v48, 1 }
  0xec   : > { %v1356_v6 = vrot.slane %v5652_v39, 1  ;;  %v1358_v63 = vrot.slane %v5656_v17, 1  ;;  %v1360_v33 = vrot.slane %v5660_v7, 1  ;;  %v1361_v46 = vrot.slane %v5664_v19, 1 }
  0xed   : > { %v1363_v5 = vrot.slane %v5668_v0, 1  ;;  %v1342_v12 = vsel %vm812_vm1, %v1340_v54, %v1341_v38  ;;  %v1365_v45 = vrot.slane %v5672_v22, 1  ;;  %v1366_v1 = vrot.slane %v5676_v3, 1 }
  0xee   : > { %v1368_v37 = vrot.slane %v5680_v44, 1  ;;  %v1344_v48 = vsel %vm812_vm1, %v1341_v38, %v1343_v35  ;;  %v1370_v39 = vrot.slane %v5684_v41, 1  ;;  %v1371_v17 = vrot.slane %v5688_v2, 1  ;;  %v10113_v38 = vld [vmem:[#allocation64_spill] sm:$0xff] }
  0xef   : > { %v1373_v7 = vrot.slane %v5692_v21, 1  ;;  %v1347_v19 = vsel %vm812_vm1, %v1345_v40, %v1346_v43  ;;  %v1349_v0 = vsel %vm812_vm1, %v1346_v43, %v1348_v10  ;;  %v1352_v26 = vsel %vm812_vm1, %v1350_v30, %v1351_v51 }
  0xf0   : > { %v1354_v22 = vsel %vm812_vm1, %v1351_v51, %v1353_v9  ;;  %v1357_v3 = vsel %vm812_vm1, %v1355_v42, %v1356_v6  ;;  %v1359_v44 = vsel %vm812_vm1, %v1356_v6, %v1358_v63  ;;  %v1362_v14 = vsel %vm812_vm1, %v1360_v33, %v1361_v46 }
  0xf1   : > { %v1364_v41 = vsel %vm812_vm1, %v1361_v46, %v1363_v5  ;;  %v1367_v2 = vsel %vm812_vm1, %v1365_v45, %v1366_v1  ;;  %v1369_v21 = vsel %vm812_vm1, %v1366_v1, %v1368_v37  ;;  %v5776_v13 = vadd.f32 %v5697_v4, %v5409_v50  ;;  %v10111_v4 = vld [vmem:[#allocation62_spill] sm:$0xff]  ;;  %v10146_v5 = vld [vmem:[#allocation80_spill] sm:$0xff]  ;;  %v10148_v45 = vld [vmem:[#allocation63_spill] sm:$0xff] }
  0xf2   : > { %v5780_v59 = vadd.f32 %v5700_v56, %v5413_v27  ;;  %v1372_v20 = vsel %vm812_vm1, %v1370_v39, %v1371_v17  ;;  %v1374_v53 = vsel %vm812_vm1, %v1371_v17, %v1373_v7  ;;  %v5786_v16 = vadd.f32 %v5705_v36, %v5417_v11  ;;  %v10115_v11 = vld [vmem:[#allocation65_spill] sm:$0xff]  ;;  %v10150_v37 = vld [vmem:[#allocation54_spill] sm:$0xff]  ;;  %v10152_v39 = vld [vmem:[#allocation55_spill] sm:$0xff] }
  0xf3   : > { %v5790_v23 = vadd.f32 %v5708_v28, %v5420_v31  ;;  %v5793_v54 = vadd.f32 %v1307_v8, %v5423_v18  ;;  %v5796_v50 = vadd.f32 %v1309_v24, %v5426_v15  ;;  %v5799_v27 = vadd.f32 %v1312_v47, %v5429_v32  ;;  %v10117_v31 = vld [vmem:[#allocation66_spill] sm:$0xff]  ;;  %v10119_v18 = vld [vmem:[#allocation67_spill] sm:$0xff]  ;;  %v10121_v15 = vld [vmem:[#allocation68_spill] sm:$0xff] }
  0xf4   : > { %v5802_v56 = vadd.f32 %v1314_v52, %v10111_v4  ;;  %v5805_v35 = vadd.f32 %v1317_v49, %v10113_v38  ;;  %v5808_v36 = vadd.f32 %v1319_v58, %v10115_v11  ;;  %v5811_v28 = vadd.f32 %v1322_v62, %v10117_v31  ;;  %v10123_v32 = vld [vmem:[#allocation69_spill] sm:$0xff]  ;;  %v10125_v52 = vld [vmem:[#allocation70_spill] sm:$0xff]  ;;  %v10127_v49 = vld [vmem:[#allocation71_spill] sm:$0xff] }
  0xf5   : > { %v5814_v8 = vadd.f32 %v1324_v60, %v10119_v18  ;;  %v5817_v24 = vadd.f32 %v1327_v61, %v10121_v15  ;;  %v5820_v47 = vadd.f32 %v1329_v29, %v10123_v32  ;;  %v5823_v40 = vadd.f32 %v1332_v55, %v10125_v52  ;;  %v10129_v58 = vld [vmem:[#allocation72_spill] sm:$0xff]  ;;  %v10131_v62 = vld [vmem:[#allocation73_spill] sm:$0xff]  ;;  %v10133_v60 = vld [vmem:[#allocation74_spill] sm:$0xff] }
  0xf6   : > { %10112 = vst [vmem:[#allocation60_spill] sm:$0xff] %v5802_v56  ;;  %v5826_v43 = vadd.f32 %v1334_v25, %v10127_v49  ;;  %v5829_v10 = vadd.f32 %v1337_v57, %v10129_v58  ;;  %v5832_v30 = vadd.f32 %v1339_v34, %v10131_v62  ;;  %v5835_v51 = vadd.f32 %v1342_v12, %v10133_v60  ;;  %v10135_v61 = vld [vmem:[#allocation76_spill] sm:$0xff]  ;;  %v10136_v29 = vld [vmem:[#allocation75_spill] sm:$0xff]  ;;  %v10138_v55 = vld [vmem:[#allocation2_spill] sm:$0xff] }
  0xf7   : > { %10114 = vst [vmem:[#allocation61_spill] sm:$0xff] %v5805_v35  ;;  %v5838_v9 = vperm.slane %v10135_v61, 2  ;;  %v5841_v42 = vadd.f32 %v1344_v48, %v10136_v29  ;;  %v5844_v6 = vadd.f32 %v1347_v19, %v10138_v55  ;;  %v10140_v25 = vld [vmem:[#allocation77_spill] sm:$0xff]  ;;  %v10142_v57 = vld [vmem:[#allocation78_spill] sm:$0xff]  ;;  %v10144_v34 = vld [vmem:[#allocation79_spill] sm:$0xff]  ;;  %v5856_v12 = vadd.f32 %v1357_v3, %v10146_v5 }
  0xf8   : > { %10116 = vst [vmem:[#allocation62_spill] sm:$0xff] %v5808_v36  ;;  %v5847_v63 = vadd.f32 %v1349_v0, %v10140_v25  ;;  %v5850_v33 = vadd.f32 %v1352_v26, %v10142_v57  ;;  %v5853_v46 = vadd.f32 %v1354_v22, %v10144_v34  ;;  %v5859_v1 = vadd.f32 %v1359_v44, %v10148_v45  ;;  %v10154_v7 = vld [vmem:[#allocation56_spill] sm:$0xff]  ;;  %v10156_v0 = vld [vmem:[#allocation57_spill] sm:$0xff]  ;;  %v10158_v22 = vld [vmem:[#allocation58_spill] sm:$0xff] }
  0xf9   : > { %10118 = vst [vmem:[#allocation64_spill] sm:$0xff] %v5811_v28  ;;  %v5862_v48 = vadd.f32 %v1362_v14, %v10150_v37  ;;  %v5865_v17 = vadd.f32 %v1364_v41, %v10152_v39  ;;  %v5868_v19 = vadd.f32 %v1367_v2, %v10154_v7  ;;  %v5871_v26 = vadd.f32 %v1369_v21, %v10156_v0  ;;  %v10160_v3 = vld [vmem:[#allocation59_spill] sm:$0xff]  ;;  %v10162_v44 = vld [vmem:[#allocation4_spill] sm:$0xff]  ;;  %v10164_v41 = vld [vmem:[#allocation5_spill] sm:$0xff] }
  0xfa   : > { %10120 = vst [vmem:[#allocation65_spill] sm:$0xff] %v5814_v8  ;;  %v5874_v4 = vadd.f32 %v1372_v20, %v10158_v22  ;;  %v5877_v38 = vadd.f32 %v1374_v53, %v10160_v3  ;;  %v1440_v11 = vmul.f32 %v5838_v9, %v10162_v44  ;;  %v10163_v14 = vld [vmem:[#allocation3_spill] sm:$0xff]  ;;  %v1442_v18 = vmul.f32 %v5838_v9, %v10164_v41  ;;  %v10166_v21 = vld [vmem:[#allocation6_spill] sm:$0xff]  ;;  %v10172_v57 = vld [vmem:[#allocation8_spill] sm:$0xff] }
  0xfb   : > { %10122 = vst [vmem:[#allocation66_spill] sm:$0xff] %v5817_v24  ;;  %v1441_v31 = vmul.f32 %v5838_v9, %v10163_v14  ;;  %v10165_v2 = vld [vmem:[#allocation19_spill] sm:$0xff]  ;;  %v5889_v32 = vmul.f32 %v5838_v9, %v10166_v21  ;;  %v10167_v20 = vld [vmem:[#allocation38_spill] sm:$0xff]  ;;  %v5913_v34 = vmul.f32 %v5838_v9, %v10172_v57  ;;  %v10173_v5 = vld [vmem:[#allocation40_spill] sm:$0xff] }
  0xfc   : > { %10124 = vst [vmem:[#allocation67_spill] sm:$0xff] %v5820_v47  ;;  %v1443_v15 = vmul.f32 %v5838_v9, %v10165_v2  ;;  %v5893_v53 = vmul.f32 %v5838_v9, %v10167_v20  ;;  %v10168_v52 = vld [vmem:[#allocation22_spill] sm:$0xff]  ;;  %v10169_v58 = vld [vmem:[#allocation7_spill] sm:$0xff]  ;;  %v5917_v45 = vmul.f32 %v5838_v9, %v10173_v5  ;;  %v10174_v37 = vld [vmem:[#allocation25_spill] sm:$0xff] }
  0xfd   : > { %10126 = vst [vmem:[#allocation68_spill] sm:$0xff] %v5823_v40  ;;  %v5897_v49 = vmul.f32 %v5838_v9, %v10168_v52  ;;  %v5901_v62 = vmul.f32 %v5838_v9, %v10169_v58  ;;  %v10170_v60 = vld [vmem:[#allocation39_spill] sm:$0xff]  ;;  %v5921_v39 = vmul.f32 %v5838_v9, %v10174_v37  ;;  %v10175_v7 = vld [vmem:[#allocation9_spill] sm:$0xff]  ;;  %v10177_v41 = vld [vmem:[#allocation26_spill] sm:$0xff]  ;;  %v1543_v24 = vrot.slane %v5889_v32, 2 }
  0xfe   : > { %10128 = vst [vmem:[#allocation69_spill] sm:$0xff] %v5826_v43  ;;  %v5905_v29 = vmul.f32 %v5838_v9, %v10170_v60  ;;  %v10171_v55 = vld [vmem:[#allocation23_spill] sm:$0xff]  ;;  %v5925_v0 = vmul.f32 %v5838_v9, %v10175_v7  ;;  %v10176_v22 = vld [vmem:[#allocation41_spill] sm:$0xff]  ;;  %v5933_v14 = vmul.f32 %v5838_v9, %v10177_v41  ;;  %v10178_v44 = vld [vmem:[#allocation10_spill] sm:$0xff]  ;;  %v1545_v36 = vrot.slane %v5893_v53, 2 }
  0xff   : > { %10130 = vst [vmem:[#allocation70_spill] sm:$0xff] %v5829_v10  ;;  %v5909_v25 = vmul.f32 %v5838_v9, %v10171_v55  ;;  %v5929_v3 = vmul.f32 %v5838_v9, %v10176_v22  ;;  %v5937_v5 = vmul.f32 %v5838_v9, %v10178_v44  ;;  %v10179_v57 = vld [vmem:[#allocation42_spill] sm:$0xff]  ;;  %v10180_v55 = vld [vmem:[#allocation27_spill] sm:$0xff]  ;;  %v10183_v52 = vld [vmem:[#allocation28_spill] sm:$0xff]  ;;  %v1538_v10 = vrot.slane %v1441_v31, 2 }
 0x100   : > { %10132 = vst [vmem:[#allocation71_spill] sm:$0xff] %v5832_v30  ;;  %v5941_v37 = vmul.f32 %v5838_v9, %v10179_v57  ;;  %v5945_v7 = vmul.f32 %v5838_v9, %v10180_v55  ;;  %v10181_v60 = vld [vmem:[#allocation11_spill] sm:$0xff]  ;;  %v5957_v44 = vmul.f32 %v5838_v9, %v10183_v52  ;;  %v10184_v20 = vld [vmem:[#allocation12_spill] sm:$0xff]  ;;  %v10186_v2 = vld [vmem:[#allocation29_spill] sm:$0xff]  ;;  %v1537_v30 = vrot.slane %v1440_v11, 2 }
 0x101   : > { %10134 = vst [vmem:[#allocation72_spill] sm:$0xff] %v5835_v51  ;;  %v5949_v22 = vmul.f32 %v5838_v9, %v10181_v60  ;;  %v10182_v58 = vld [vmem:[#allocation43_spill] sm:$0xff]  ;;  %v5961_v57 = vmul.f32 %v5838_v9, %v10184_v20  ;;  %v10185_v21 = vld [vmem:[#allocation44_spill] sm:$0xff]  ;;  %v5969_v60 = vmul.f32 %v5838_v9, %v10186_v2  ;;  %v10200_v51 = vld [vmem:[#allocation49_spill] sm:$0xff]  ;;  %v1550_v56 = vrot.slane %v5905_v29, 2 }
 0x102   : > { %10137 = vst [vmem:[#allocation73_spill] sm:$0xff] %v5841_v42  ;;  %v5953_v41 = vmul.f32 %v5838_v9, %v10182_v58  ;;  %v5965_v55 = vmul.f32 %v5838_v9, %v10185_v21  ;;  %v10199_v42 = vld [vmem:[#allocation17_spill] sm:$0xff]  ;;  %v10201_v61 = vld [vmem:[#allocation34_spill] sm:$0xff]  ;;  %v10206_v31 = vld [vmem:[#allocation51_spill] sm:$0xff]  ;;  %v6067_v35 = vsel %vm1536_vm2, %v1537_v30, %v1538_v10  ;;  %v1555_v53 = vrot.slane %v5917_v45, 2 }
 0x103   : > { %10139 = vst [vmem:[#allocation74_spill] sm:$0xff] %v5844_v6  ;;  %v10198_v6 = vld [vmem:[#allocation33_spill] sm:$0xff]  ;;  %v10202_v43 = vld [vmem:[#allocation18_spill] sm:$0xff]  ;;  %v10209_v32 = vld [vmem:[#allocation52_spill] sm:$0xff]  ;;  %v1558_v30 = vrot.slane %v5925_v0, 2  ;;  %v1565_v29 = vrot.slane %v5941_v37, 2 }
 0x104   : > { %10141 = vst [vmem:[#allocation75_spill] sm:$0xff] %v5847_v63  ;;  %v10197_v63 = vld [vmem:[#allocation48_spill] sm:$0xff]  ;;  %v6033_v40 = vmul.f32 %v5838_v9, %v10202_v43  ;;  %v1572_v45 = vrot.slane %v5957_v44, 2  ;;  %v1575_v0 = vrot.slane %v5965_v55, 2 }
 0x105   : > { %10143 = vst [vmem:[#allocation2_spill] sm:$0xff] %v5850_v33  ;;  %v10196_v33 = vld [vmem:[#allocation16_spill] sm:$0xff] }
 0x106   : > { %10145 = vst [vmem:[#allocation77_spill] sm:$0xff] %v5853_v46  ;;  %v10195_v46 = vld [vmem:[#allocation32_spill] sm:$0xff] }
 0x107   : > { %10147 = vst [vmem:[#allocation78_spill] sm:$0xff] %v5856_v12  ;;  %v10194_v12 = vld [vmem:[#allocation47_spill] sm:$0xff]  ;;  %v10207_v43 = vld [vmem:[#allocation36_spill] sm:$0xff] }
 0x108   : > { %10149 = vst [vmem:[#allocation79_spill] sm:$0xff] %v5859_v1  ;;  %v10193_v1 = vld [vmem:[#allocation15_spill] sm:$0xff]  ;;  %v6054_v28 = vmul.f32 %v5838_v9, %v10207_v43  ;;  %v1548_v43 = vrot.slane %v5901_v62, 2  ;;  %v1563_v62 = vrot.slane %v5937_v5, 2  ;;  %v1577_v5 = vrot.slane %v5969_v60, 2 }
 0x109   : > { %10151 = vst [vmem:[#allocation80_spill] sm:$0xff] %v5862_v48  ;;  %v10192_v48 = vld [vmem:[#allocation31_spill] sm:$0xff] }
 0x10a   : > { %10153 = vst [vmem:[#allocation63_spill] sm:$0xff] %v5865_v17  ;;  %v10191_v17 = vld [vmem:[#allocation46_spill] sm:$0xff] }
 0x10b   : > { %10155 = vst [vmem:[#allocation54_spill] sm:$0xff] %v5868_v19  ;;  %v10190_v19 = vld [vmem:[#allocation14_spill] sm:$0xff]  ;;  %v5989_v2 = vmul.f32 %v5838_v9, %v10191_v17  ;;  %v6009_v17 = vmul.f32 %v5838_v9, %v10196_v33  ;;  %v6029_v33 = vmul.f32 %v5838_v9, %v10201_v61  ;;  %v10205_v61 = vld [vmem:[#allocation20_spill] sm:$0xff] }
 0x10c   : > { %10157 = vst [vmem:[#allocation55_spill] sm:$0xff] %v5871_v26  ;;  %v10189_v26 = vld [vmem:[#allocation30_spill] sm:$0xff]  ;;  %v5985_v21 = vmul.f32 %v5838_v9, %v10190_v19  ;;  %v6005_v19 = vmul.f32 %v5838_v9, %v10195_v46  ;;  %v6025_v46 = vmul.f32 %v5838_v9, %v10200_v51  ;;  %v10204_v51 = vld [vmem:[#allocation35_spill] sm:$0xff]  ;;  %v6046_v11 = vmul.f32 %v5838_v9, %v10205_v61 }
 0x10d   : > { %10159 = vst [vmem:[#allocation56_spill] sm:$0xff] %v5874_v4  ;;  %v10188_v4 = vld [vmem:[#allocation45_spill] sm:$0xff]  ;;  %v5981_v20 = vmul.f32 %v5838_v9, %v10189_v26  ;;  %v6001_v26 = vmul.f32 %v5838_v9, %v10194_v12  ;;  %v6021_v12 = vmul.f32 %v5838_v9, %v10199_v42  ;;  %v1542_v42 = vrot.slane %v1443_v15, 2 }
 0x10e   : > { %10161 = vst [vmem:[#allocation57_spill] sm:$0xff] %v5877_v38  ;;  %v10187_v38 = vld [vmem:[#allocation13_spill] sm:$0xff]  ;;  %v5977_v52 = vmul.f32 %v5838_v9, %v10188_v4  ;;  %v5997_v4 = vmul.f32 %v5838_v9, %v10193_v1  ;;  %v6017_v1 = vmul.f32 %v5838_v9, %v10198_v6  ;;  %v10203_v6 = vld [vmem:[#allocation50_spill] sm:$0xff]  ;;  %v6042_v8 = vmul.f32 %v5838_v9, %v10204_v51 }
 0x10f   : > { %v5973_v58 = vmul.f32 %v5838_v9, %v10187_v38  ;;  %v5993_v38 = vmul.f32 %v5838_v9, %v10192_v48  ;;  %v6013_v48 = vmul.f32 %v5838_v9, %v10197_v63  ;;  %v1540_v63 = vrot.slane %v1442_v18, 2 }
 0x110   : > { %v6037_v47 = vmul.f32 %v5838_v9, %v10203_v6  ;;  %v6050_v18 = vmul.f32 %v5838_v9, %v10206_v31  ;;  %v10208_v6 = vld [vmem:[#allocation21_spill] sm:$0xff]  ;;  %v6062_v51 = vmul.f32 %v5838_v9, %v10209_v32  ;;  %v1547_v61 = vrot.slane %v5897_v49, 2 }
 0x111   : > { %v6058_v15 = vmul.f32 %v5838_v9, %v10208_v6  ;;  %v6070_v31 = vsel %vm1536_vm2, %v1538_v10, %v1540_v63  ;;  %v6075_v6 = vsel %vm1536_vm2, %v1542_v42, %v1543_v24  ;;  %v1552_v9 = vrot.slane %v5909_v25, 2 }
 0x112   : > { %v1553_v32 = vrot.slane %v5913_v34, 2  ;;  %v1557_v49 = vrot.slane %v5921_v39, 2  ;;  %v1560_v10 = vrot.slane %v5929_v3, 2  ;;  %v1562_v63 = vrot.slane %v5933_v14, 2 }
 0x113   : > { %v1567_v42 = vrot.slane %v5945_v7, 2  ;;  %v1568_v25 = vrot.slane %v5949_v22, 2  ;;  %v1570_v34 = vrot.slane %v5953_v41, 2  ;;  %v1573_v39 = vrot.slane %v5961_v57, 2 }
 0x114   : > { %v1546_v3 = vsel %vm1536_vm2, %v1543_v24, %v1545_v36  ;;  %v1549_v14 = vsel %vm1536_vm2, %v1547_v61, %v1548_v43  ;;  %v1578_v37 = vrot.slane %v5973_v58, 2  ;;  %v1551_v7 = vsel %vm1536_vm2, %v1548_v43, %v1550_v56 }
 0x115   : > { %v1554_v22 = vsel %vm1536_vm2, %v1552_v9, %v1553_v32  ;;  %v1556_v41 = vsel %vm1536_vm2, %v1553_v32, %v1555_v53  ;;  %v1580_v44 = vrot.slane %v5977_v52, 2  ;;  %v1559_v57 = vsel %vm1536_vm2, %v1557_v49, %v1558_v30 }
 0x116   : > { %v1561_v55 = vsel %vm1536_vm2, %v1558_v30, %v1560_v10  ;;  %v1564_v36 = vsel %vm1536_vm2, %v1562_v63, %v1563_v62  ;;  %v1566_v24 = vsel %vm1536_vm2, %v1563_v62, %v1565_v29  ;;  %v1569_v61 = vsel %vm1536_vm2, %v1567_v42, %v1568_v25 }
 0x117   : > { %v1571_v58 = vsel %vm1536_vm2, %v1568_v25, %v1570_v34  ;;  %v1574_v56 = vsel %vm1536_vm2, %v1572_v45, %v1573_v39  ;;  %v1576_v43 = vsel %vm1536_vm2, %v1573_v39, %v1575_v0  ;;  %v1579_v60 = vsel %vm1536_vm2, %v1577_v5, %v1578_v37 }
 0x118   : > { %v1582_v52 = vrot.slane %v5981_v20, 2  ;;  %v1583_v32 = vrot.slane %v5985_v21, 2  ;;  %v1585_v9 = vrot.slane %v5989_v2, 2  ;;  %v1581_v53 = vsel %vm1536_vm2, %v1578_v37, %v1580_v44 }
 0x119   : > { %v1587_v49 = vrot.slane %v5993_v38, 2  ;;  %v1588_v30 = vrot.slane %v5997_v4, 2  ;;  %v1590_v10 = vrot.slane %v6001_v26, 2  ;;  %v1592_v63 = vrot.slane %v6005_v19, 2 }
 0x11a   : > { %v1593_v62 = vrot.slane %v6009_v17, 2  ;;  %v1595_v29 = vrot.slane %v6013_v48, 2  ;;  %v1597_v20 = vrot.slane %v6017_v1, 2  ;;  %v1598_v21 = vrot.slane %v6021_v12, 2 }
 0x11b   : > { %v1600_v2 = vrot.slane %v6025_v46, 2  ;;  %v1602_v42 = vrot.slane %v6029_v33, 2  ;;  %v1603_v38 = vrot.slane %v6033_v40, 2  ;;  %v1605_v4 = vrot.slane %v6037_v47, 2 }
 0x11c   : > { %v1607_v26 = vrot.slane %v6042_v8, 2  ;;  %v1608_v19 = vrot.slane %v6046_v11, 2  ;;  %v1610_v17 = vrot.slane %v6050_v18, 2  ;;  %v1584_v48 = vsel %vm1536_vm2, %v1582_v52, %v1583_v32 }
 0x11d   : > { %v1612_v1 = vrot.slane %v6054_v28, 2  ;;  %v1613_v12 = vrot.slane %v6058_v15, 2  ;;  %v1615_v46 = vrot.slane %v6062_v51, 2  ;;  %v1586_v33 = vsel %vm1536_vm2, %v1583_v32, %v1585_v9  ;;  %v10211_v32 = vld [vmem:[#allocation60_spill] sm:$0xff] }
 0x11e   : > { %v1589_v40 = vsel %vm1536_vm2, %v1587_v49, %v1588_v30  ;;  %v1591_v47 = vsel %vm1536_vm2, %v1588_v30, %v1590_v10  ;;  %v1594_v8 = vsel %vm1536_vm2, %v1592_v63, %v1593_v62  ;;  %v1596_v11 = vsel %vm1536_vm2, %v1593_v62, %v1595_v29 }
 0x11f   : > { %v1599_v18 = vsel %vm1536_vm2, %v1597_v20, %v1598_v21  ;;  %v1601_v25 = vsel %vm1536_vm2, %v1598_v21, %v1600_v2  ;;  %v1604_v28 = vsel %vm1536_vm2, %v1602_v42, %v1603_v38  ;;  %v1606_v15 = vsel %vm1536_vm2, %v1603_v38, %v1605_v4  ;;  %v10246_v4 = vld [vmem:[#allocation78_spill] sm:$0xff] }
 0x120   : > { %v1609_v51 = vsel %vm1536_vm2, %v1607_v26, %v1608_v19  ;;  %v1611_v34 = vsel %vm1536_vm2, %v1608_v19, %v1610_v17  ;;  %v6145_v45 = vadd.f32 %v6067_v35, %v5776_v13  ;;  %v1614_v39 = vsel %vm1536_vm2, %v1612_v1, %v1613_v12  ;;  %v10248_v19 = vld [vmem:[#allocation79_spill] sm:$0xff] }
 0x121   : > { %v1616_v0 = vsel %vm1536_vm2, %v1613_v12, %v1615_v46  ;;  %v6151_v5 = vadd.f32 %v6070_v31, %v5780_v59  ;;  %v6155_v37 = vadd.f32 %v6075_v6, %v5786_v16  ;;  %v6158_v44 = vadd.f32 %v1546_v3, %v5790_v23  ;;  %v10213_v59 = vld [vmem:[#allocation61_spill] sm:$0xff]  ;;  %v10215_v16 = vld [vmem:[#allocation62_spill] sm:$0xff]  ;;  %v10217_v23 = vld [vmem:[#allocation64_spill] sm:$0xff] }
 0x122   : > { %v6161_v52 = vadd.f32 %v1549_v14, %v5793_v54  ;;  %v6164_v13 = vadd.f32 %v1551_v7, %v5796_v50  ;;  %v6167_v35 = vadd.f32 %v1554_v22, %v5799_v27  ;;  %v6170_v9 = vadd.f32 %v1556_v41, %v10211_v32  ;;  %v10219_v54 = vld [vmem:[#allocation65_spill] sm:$0xff]  ;;  %v10221_v50 = vld [vmem:[#allocation66_spill] sm:$0xff]  ;;  %v10223_v27 = vld [vmem:[#allocation67_spill] sm:$0xff] }
 0x123   : > { %v6173_v31 = vadd.f32 %v1559_v57, %v10213_v59  ;;  %v6176_v6 = vadd.f32 %v1561_v55, %v10215_v16  ;;  %v6179_v3 = vadd.f32 %v1564_v36, %v10217_v23  ;;  %v6182_v14 = vadd.f32 %v1566_v24, %v10219_v54  ;;  %v10225_v41 = vld [vmem:[#allocation68_spill] sm:$0xff]  ;;  %v10227_v57 = vld [vmem:[#allocation69_spill] sm:$0xff]  ;;  %v10229_v55 = vld [vmem:[#allocation70_spill] sm:$0xff] }
 0x124   : > { %10210 = vst [vmem:[#allocation58_spill] sm:$0xff] %v6167_v35  ;;  %v6185_v7 = vadd.f32 %v1569_v61, %v10221_v50  ;;  %v6188_v22 = vadd.f32 %v1571_v58, %v10223_v27  ;;  %v6191_v49 = vadd.f32 %v1574_v56, %v10225_v41  ;;  %v6194_v30 = vadd.f32 %v1576_v43, %v10227_v57  ;;  %v10231_v36 = vld [vmem:[#allocation71_spill] sm:$0xff]  ;;  %v10233_v24 = vld [vmem:[#allocation76_spill] sm:$0xff]  ;;  %v10236_v58 = vld [vmem:[#allocation73_spill] sm:$0xff] }
 0x125   : > { %10212 = vst [vmem:[#allocation59_spill] sm:$0xff] %v6170_v9  ;;  %v6197_v10 = vadd.f32 %v1579_v60, %v10229_v55  ;;  %v6200_v63 = vadd.f32 %v1581_v53, %v10231_v36  ;;  %v6203_v62 = vperm.slane %v10233_v24, 5  ;;  %v10234_v61 = vld [vmem:[#allocation72_spill] sm:$0xff]  ;;  %v6209_v20 = vadd.f32 %v1586_v33, %v10236_v58  ;;  %v10238_v56 = vld [vmem:[#allocation74_spill] sm:$0xff]  ;;  %v10240_v43 = vld [vmem:[#allocation75_spill] sm:$0xff] }
 0x126   : > { %10214 = vst [vmem:[#allocation60_spill] sm:$0xff] %v6173_v31  ;;  %v6206_v29 = vadd.f32 %v1584_v48, %v10234_v61  ;;  %v6212_v21 = vadd.f32 %v1589_v40, %v10238_v56  ;;  %v6215_v2 = vadd.f32 %v1591_v47, %v10240_v43  ;;  %v10242_v60 = vld [vmem:[#allocation2_spill] sm:$0xff]  ;;  %v10244_v53 = vld [vmem:[#allocation77_spill] sm:$0xff]  ;;  %v6224_v26 = vadd.f32 %v1599_v18, %v10246_v4  ;;  %v10250_v48 = vld [vmem:[#allocation80_spill] sm:$0xff] }
 0x127   : > { %10216 = vst [vmem:[#allocation61_spill] sm:$0xff] %v6176_v6  ;;  %v6218_v42 = vadd.f32 %v1594_v8, %v10242_v60  ;;  %v6221_v38 = vadd.f32 %v1596_v11, %v10244_v53  ;;  %v6227_v17 = vadd.f32 %v1601_v25, %v10248_v19  ;;  %v6230_v1 = vadd.f32 %v1604_v28, %v10250_v48  ;;  %v10252_v12 = vld [vmem:[#allocation63_spill] sm:$0xff]  ;;  %v10254_v33 = vld [vmem:[#allocation54_spill] sm:$0xff]  ;;  %v10258_v11 = vld [vmem:[#allocation56_spill] sm:$0xff] }
 0x128   : > { %10218 = vst [vmem:[#allocation62_spill] sm:$0xff] %v6179_v3  ;;  %v6233_v46 = vadd.f32 %v1606_v15, %v10252_v12  ;;  %v6236_v40 = vadd.f32 %v1609_v51, %v10254_v33  ;;  %v10256_v47 = vld [vmem:[#allocation55_spill] sm:$0xff]  ;;  %v6242_v32 = vadd.f32 %v1614_v39, %v10258_v11  ;;  %v10260_v18 = vld [vmem:[#allocation57_spill] sm:$0xff]  ;;  %v10263_v28 = vld [vmem:[#allocation6_spill] sm:$0xff] }
 0x129   : > { %10220 = vst [vmem:[#allocation64_spill] sm:$0xff] %v6182_v14  ;;  %v6239_v8 = vadd.f32 %v1611_v34, %v10256_v47  ;;  %v6245_v59 = vadd.f32 %v1616_v0, %v10260_v18  ;;  %v10262_v25 = vld [vmem:[#allocation19_spill] sm:$0xff]  ;;  %v1683_v23 = vmul.f32 %v6203_v62, %v10263_v28  ;;  %v10264_v15 = vld [vmem:[#allocation38_spill] sm:$0xff]  ;;  %v10269_v55 = vld [vmem:[#allocation8_spill] sm:$0xff] }
 0x12a   : > { %10222 = vst [vmem:[#allocation65_spill] sm:$0xff] %v6185_v7  ;;  %v1682_v16 = vmul.f32 %v6203_v62, %v10262_v25  ;;  %v1684_v54 = vmul.f32 %v6203_v62, %v10264_v15  ;;  %v10265_v51 = vld [vmem:[#allocation22_spill] sm:$0xff]  ;;  %v10266_v34 = vld [vmem:[#allocation7_spill] sm:$0xff]  ;;  %v6271_v36 = vmul.f32 %v6203_v62, %v10269_v55  ;;  %v10270_v24 = vld [vmem:[#allocation40_spill] sm:$0xff] }
 0x12b   : > { %10224 = vst [vmem:[#allocation66_spill] sm:$0xff] %v6188_v22  ;;  %v6255_v50 = vmul.f32 %v6203_v62, %v10265_v51  ;;  %v6259_v39 = vmul.f32 %v6203_v62, %v10266_v34  ;;  %v10267_v27 = vld [vmem:[#allocation39_spill] sm:$0xff]  ;;  %v6275_v61 = vmul.f32 %v6203_v62, %v10270_v24  ;;  %v10271_v58 = vld [vmem:[#allocation25_spill] sm:$0xff]  ;;  %v10274_v19 = vld [vmem:[#allocation26_spill] sm:$0xff] }
 0x12c   : > { %10226 = vst [vmem:[#allocation67_spill] sm:$0xff] %v6191_v49  ;;  %v6263_v0 = vmul.f32 %v6203_v62, %v10267_v27  ;;  %v10268_v41 = vld [vmem:[#allocation23_spill] sm:$0xff]  ;;  %v6279_v56 = vmul.f32 %v6203_v62, %v10271_v58  ;;  %v10272_v43 = vld [vmem:[#allocation9_spill] sm:$0xff]  ;;  %v6291_v48 = vmul.f32 %v6203_v62, %v10274_v19  ;;  %v10275_v12 = vld [vmem:[#allocation10_spill] sm:$0xff] }
 0x12d   : > { %10228 = vst [vmem:[#allocation68_spill] sm:$0xff] %v6194_v30  ;;  %v6267_v57 = vmul.f32 %v6203_v62, %v10268_v41  ;;  %v6283_v60 = vmul.f32 %v6203_v62, %v10272_v43  ;;  %v10273_v53 = vld [vmem:[#allocation41_spill] sm:$0xff]  ;;  %v6295_v33 = vmul.f32 %v6203_v62, %v10275_v12  ;;  %v10276_v47 = vld [vmem:[#allocation42_spill] sm:$0xff]  ;;  %v10277_v18 = vld [vmem:[#allocation27_spill] sm:$0xff]  ;;  %v1783_v6 = vrot.slane %v6255_v50, 2 }
 0x12e   : > { %10230 = vst [vmem:[#allocation69_spill] sm:$0xff] %v6197_v10  ;;  %v6287_v4 = vmul.f32 %v6203_v62, %v10273_v53  ;;  %v6299_v11 = vmul.f32 %v6203_v62, %v10276_v47  ;;  %v6303_v25 = vmul.f32 %v6203_v62, %v10277_v18  ;;  %v10278_v28 = vld [vmem:[#allocation11_spill] sm:$0xff]  ;;  %v10280_v43 = vld [vmem:[#allocation28_spill] sm:$0xff]  ;;  %v10283_v55 = vld [vmem:[#allocation29_spill] sm:$0xff]  ;;  %v1786_v31 = vrot.slane %v6263_v0, 2 }
 0x12f   : > { %10232 = vst [vmem:[#allocation70_spill] sm:$0xff] %v6200_v63  ;;  %v6307_v15 = vmul.f32 %v6203_v62, %v10278_v28  ;;  %v10279_v53 = vld [vmem:[#allocation43_spill] sm:$0xff]  ;;  %v6315_v12 = vmul.f32 %v6203_v62, %v10280_v43  ;;  %v10281_v58 = vld [vmem:[#allocation12_spill] sm:$0xff]  ;;  %v6327_v28 = vmul.f32 %v6203_v62, %v10283_v55  ;;  %v10284_v41 = vld [vmem:[#allocation13_spill] sm:$0xff]  ;;  %v1779_v63 = vrot.slane %v1683_v23, 2 }
 0x130   : > { %10235 = vst [vmem:[#allocation71_spill] sm:$0xff] %v6206_v29  ;;  %v6311_v19 = vmul.f32 %v6203_v62, %v10279_v53  ;;  %v6319_v47 = vmul.f32 %v6203_v62, %v10281_v58  ;;  %v10282_v24 = vld [vmem:[#allocation44_spill] sm:$0xff]  ;;  %v6331_v53 = vmul.f32 %v6203_v62, %v10284_v41  ;;  %v10285_v27 = vld [vmem:[#allocation45_spill] sm:$0xff]  ;;  %v10286_v34 = vld [vmem:[#allocation30_spill] sm:$0xff]  ;;  %v1778_v29 = vrot.slane %v1682_v16, 2 }
 0x131   : > { %10237 = vst [vmem:[#allocation76_spill] sm:$0xff] %v6209_v20  ;;  %v6323_v18 = vmul.f32 %v6203_v62, %v10282_v24  ;;  %v6335_v43 = vmul.f32 %v6203_v62, %v10285_v27  ;;  %v6339_v58 = vmul.f32 %v6203_v62, %v10286_v34  ;;  %v10287_v51 = vld [vmem:[#allocation14_spill] sm:$0xff]  ;;  %v10301_v10 = vld [vmem:[#allocation35_spill] sm:$0xff]  ;;  %v10306_v23 = vld [vmem:[#allocation52_spill] sm:$0xff]  ;;  %v1788_v9 = vrot.slane %v6267_v57, 2 }
 0x132   : > { %10239 = vst [vmem:[#allocation72_spill] sm:$0xff] %v6212_v21  ;;  %v6343_v24 = vmul.f32 %v6203_v62, %v10287_v51  ;;  %v10299_v21 = vld [vmem:[#allocation18_spill] sm:$0xff]  ;;  %v6399_v30 = vmul.f32 %v6203_v62, %v10301_v10  ;;  %v10307_v10 = vld [vmem:[#allocation37_spill] sm:$0xff]  ;;  %v10308_v14 = vld [vmem:[#allocation24_spill] sm:$0xff]  ;;  %v1791_v35 = vrot.slane %v6275_v61, 2  ;;  %v1794_v50 = vrot.slane %v6283_v60, 2 }
 0x133   : > { %10241 = vst [vmem:[#allocation73_spill] sm:$0xff] %v6215_v2  ;;  %v10298_v2 = vld [vmem:[#allocation34_spill] sm:$0xff]  ;;  %v10309_v3 = vld [vmem:[#allocation53_spill] sm:$0xff]  ;;  %v1798_v0 = vrot.slane %v6291_v48, 2  ;;  %v1806_v57 = vrot.slane %v6311_v19, 2  ;;  %v1809_v61 = vrot.slane %v6319_v47, 2 }
 0x134   : > { %10243 = vst [vmem:[#allocation74_spill] sm:$0xff] %v6218_v42  ;;  %v10297_v42 = vld [vmem:[#allocation49_spill] sm:$0xff]  ;;  %v10300_v20 = vld [vmem:[#allocation50_spill] sm:$0xff]  ;;  %v1813_v60 = vrot.slane %v6327_v28, 2  ;;  %v1816_v48 = vrot.slane %v6335_v43, 2  ;;  %v1819_v19 = vrot.slane %v6343_v24, 2 }
 0x135   : > { %10245 = vst [vmem:[#allocation75_spill] sm:$0xff] %v6221_v38  ;;  %v10296_v38 = vld [vmem:[#allocation17_spill] sm:$0xff] }
 0x136   : > { %10247 = vst [vmem:[#allocation2_spill] sm:$0xff] %v6224_v26  ;;  %v10295_v26 = vld [vmem:[#allocation33_spill] sm:$0xff] }
 0x137   : > { %10249 = vst [vmem:[#allocation77_spill] sm:$0xff] %v6227_v17  ;;  %v10294_v17 = vld [vmem:[#allocation48_spill] sm:$0xff] }
 0x138   : > { %10251 = vst [vmem:[#allocation78_spill] sm:$0xff] %v6230_v1  ;;  %v10293_v1 = vld [vmem:[#allocation16_spill] sm:$0xff] }
 0x139   : > { %10253 = vst [vmem:[#allocation79_spill] sm:$0xff] %v6233_v46  ;;  %v10292_v46 = vld [vmem:[#allocation32_spill] sm:$0xff] }
 0x13a   : > { %10255 = vst [vmem:[#allocation80_spill] sm:$0xff] %v6236_v40  ;;  %v10291_v40 = vld [vmem:[#allocation47_spill] sm:$0xff]  ;;  %v6363_v51 = vmul.f32 %v6203_v62, %v10292_v46  ;;  %v6383_v46 = vmul.f32 %v6203_v62, %v10297_v42  ;;  %v10302_v42 = vld [vmem:[#allocation20_spill] sm:$0xff] }
 0x13b   : > { %10257 = vst [vmem:[#allocation63_spill] sm:$0xff] %v6239_v8  ;;  %v10290_v8 = vld [vmem:[#allocation15_spill] sm:$0xff]  ;;  %v6359_v34 = vmul.f32 %v6203_v62, %v10291_v40  ;;  %v6379_v40 = vmul.f32 %v6203_v62, %v10296_v38  ;;  %v1781_v38 = vrot.slane %v1684_v54, 2  ;;  %v6403_v49 = vmul.f32 %v6203_v62, %v10302_v42 }
 0x13c   : > { %10259 = vst [vmem:[#allocation54_spill] sm:$0xff] %v6242_v32  ;;  %v10289_v32 = vld [vmem:[#allocation31_spill] sm:$0xff]  ;;  %v6355_v27 = vmul.f32 %v6203_v62, %v10290_v8  ;;  %v6375_v8 = vmul.f32 %v6203_v62, %v10295_v26  ;;  %v6395_v26 = vmul.f32 %v6203_v62, %v10300_v20  ;;  %v10305_v20 = vld [vmem:[#allocation21_spill] sm:$0xff]  ;;  %v6419_v54 = vmul.f32 %v6203_v62, %v10306_v23 }
 0x13d   : > { %10261 = vst [vmem:[#allocation55_spill] sm:$0xff] %v6245_v59  ;;  %v10288_v59 = vld [vmem:[#allocation46_spill] sm:$0xff]  ;;  %v6351_v41 = vmul.f32 %v6203_v62, %v10289_v32  ;;  %v6371_v32 = vmul.f32 %v6203_v62, %v10294_v17  ;;  %v6391_v17 = vmul.f32 %v6203_v62, %v10299_v21  ;;  %v10304_v21 = vld [vmem:[#allocation36_spill] sm:$0xff]  ;;  %v6415_v16 = vmul.f32 %v6203_v62, %v10305_v20 }
 0x13e   : > { %v6347_v55 = vmul.f32 %v6203_v62, %v10288_v59  ;;  %v6367_v59 = vmul.f32 %v6203_v62, %v10293_v1  ;;  %v6387_v1 = vmul.f32 %v6203_v62, %v10298_v2  ;;  %v10303_v2 = vld [vmem:[#allocation51_spill] sm:$0xff]  ;;  %v6411_v7 = vmul.f32 %v6203_v62, %v10304_v21 }
 0x13f   : > { %v6407_v22 = vmul.f32 %v6203_v62, %v10303_v2  ;;  %v6423_v42 = vmul.f32 %v6203_v62, %v10307_v10  ;;  %v6427_v2 = vmul.f32 %v6203_v62, %v10308_v14  ;;  %v6431_v21 = vmul.f32 %v6203_v62, %v10309_v3 }
 0x140   : > { %v1784_v20 = vrot.slane %v6259_v39, 2  ;;  %v6437_v23 = vsel %vm1536_vm2, %v1778_v29, %v1779_v63  ;;  %v6440_v10 = vsel %vm1536_vm2, %v1779_v63, %v1781_v38  ;;  %v1789_v14 = vrot.slane %v6271_v36, 2 }
 0x141   : > { %v1793_v62 = vrot.slane %v6279_v56, 2  ;;  %v1796_v39 = vrot.slane %v6287_v4, 2  ;;  %v1799_v29 = vrot.slane %v6295_v33, 2  ;;  %v1801_v3 = vrot.slane %v6299_v11, 2 }
 0x142   : > { %v1803_v63 = vrot.slane %v6303_v25, 2  ;;  %v1804_v38 = vrot.slane %v6307_v15, 2  ;;  %v1808_v36 = vrot.slane %v6315_v12, 2  ;;  %v1811_v56 = vrot.slane %v6323_v18, 2 }
 0x143   : > { %v1814_v4 = vrot.slane %v6331_v53, 2  ;;  %v1785_v33 = vsel %vm1536_vm2, %v1783_v6, %v1784_v20  ;;  %v1787_v11 = vsel %vm1536_vm2, %v1784_v20, %v1786_v31  ;;  %v1818_v25 = vrot.slane %v6339_v58, 2 }
 0x144   : > { %v1790_v12 = vsel %vm1536_vm2, %v1788_v9, %v1789_v14  ;;  %v1792_v47 = vsel %vm1536_vm2, %v1789_v14, %v1791_v35  ;;  %v1795_v18 = vsel %vm1536_vm2, %v1793_v62, %v1794_v50  ;;  %v1797_v28 = vsel %vm1536_vm2, %v1794_v50, %v1796_v39 }
 0x145   : > { %v1800_v53 = vsel %vm1536_vm2, %v1798_v0, %v1799_v29  ;;  %v1802_v43 = vsel %vm1536_vm2, %v1799_v29, %v1801_v3  ;;  %v1805_v6 = vsel %vm1536_vm2, %v1803_v63, %v1804_v38  ;;  %v1807_v31 = vsel %vm1536_vm2, %v1804_v38, %v1806_v57 }
 0x146   : > { %v1810_v20 = vsel %vm1536_vm2, %v1808_v36, %v1809_v61  ;;  %v1812_v24 = vsel %vm1536_vm2, %v1809_v61, %v1811_v56  ;;  %v1815_v9 = vsel %vm1536_vm2, %v1813_v60, %v1814_v4  ;;  %v1817_v35 = vsel %vm1536_vm2, %v1814_v4, %v1816_v48 }
 0x147   : > { %v1820_v14 = vsel %vm1536_vm2, %v1818_v25, %v1819_v19  ;;  %v1821_v58 = vrot.slane %v6347_v55, 2  ;;  %v1823_v15 = vrot.slane %v6351_v41, 2  ;;  %v1824_v3 = vrot.slane %v6355_v27, 2 }
 0x148   : > { %v1826_v62 = vrot.slane %v6359_v34, 2  ;;  %v1828_v50 = vrot.slane %v6363_v51, 2  ;;  %v1829_v39 = vrot.slane %v6367_v59, 2  ;;  %v1831_v0 = vrot.slane %v6371_v32, 2 }
 0x149   : > { %v1833_v29 = vrot.slane %v6375_v8, 2  ;;  %v1834_v63 = vrot.slane %v6379_v40, 2  ;;  %v1836_v38 = vrot.slane %v6383_v46, 2  ;;  %v1838_v55 = vrot.slane %v6387_v1, 2 }
 0x14a   : > { %v1839_v41 = vrot.slane %v6391_v17, 2  ;;  %v1841_v27 = vrot.slane %v6395_v26, 2  ;;  %v1843_v34 = vrot.slane %v6399_v30, 2  ;;  %v1844_v51 = vrot.slane %v6403_v49, 2 }
 0x14b   : > { %v1846_v59 = vrot.slane %v6407_v22, 2  ;;  %v1848_v32 = vrot.slane %v6411_v7, 2  ;;  %v1849_v8 = vrot.slane %v6415_v16, 2  ;;  %v1851_v40 = vrot.slane %v6419_v54, 2 }
 0x14c   : > { %v1822_v46 = vsel %vm1536_vm2, %v1819_v19, %v1821_v58  ;;  %v1853_v1 = vrot.slane %v6423_v42, 2  ;;  %v1854_v17 = vrot.slane %v6427_v2, 2  ;;  %v1856_v26 = vrot.slane %v6431_v21, 2 }
 0x14d   : > { %v1825_v30 = vsel %vm1536_vm2, %v1823_v15, %v1824_v3  ;;  %v1827_v49 = vsel %vm1536_vm2, %v1824_v3, %v1826_v62  ;;  %v1830_v22 = vsel %vm1536_vm2, %v1828_v50, %v1829_v39  ;;  %v1832_v7 = vsel %vm1536_vm2, %v1829_v39, %v1831_v0  ;;  %v10310_v3 = vld [vmem:[#allocation58_spill] sm:$0xff] }
 0x14e   : > { %v1835_v16 = vsel %vm1536_vm2, %v1833_v29, %v1834_v63  ;;  %v1837_v54 = vsel %vm1536_vm2, %v1834_v63, %v1836_v38  ;;  %v1840_v57 = vsel %vm1536_vm2, %v1838_v55, %v1839_v41  ;;  %v1842_v42 = vsel %vm1536_vm2, %v1839_v41, %v1841_v27  ;;  %v10336_v38 = vld [vmem:[#allocation76_spill] sm:$0xff]  ;;  %v10340_v41 = vld [vmem:[#allocation73_spill] sm:$0xff]  ;;  %v10342_v27 = vld [vmem:[#allocation74_spill] sm:$0xff] }
 0x14f   : > { %v1845_v2 = vsel %vm1536_vm2, %v1843_v34, %v1844_v51  ;;  %v1847_v21 = vsel %vm1536_vm2, %v1844_v51, %v1846_v59  ;;  %v1850_v36 = vsel %vm1536_vm2, %v1848_v32, %v1849_v8  ;;  %v1852_v61 = vsel %vm1536_vm2, %v1849_v8, %v1851_v40  ;;  %v10338_v55 = vld [vmem:[#allocation72_spill] sm:$0xff]  ;;  %v10344_v51 = vld [vmem:[#allocation75_spill] sm:$0xff]  ;;  %v10346_v32 = vld [vmem:[#allocation2_spill] sm:$0xff] }
 0x150   : > { %v1855_v56 = vsel %vm1536_vm2, %v1853_v1, %v1854_v17  ;;  %v1857_v60 = vsel %vm1536_vm2, %v1854_v17, %v1856_v26  ;;  %v6516_v4 = vadd.f32 %v6437_v23, %v6145_v45  ;;  %v6520_v48 = vadd.f32 %v6440_v10, %v6151_v5  ;;  %v10312_v45 = vld [vmem:[#allocation59_spill] sm:$0xff]  ;;  %v10314_v5 = vld [vmem:[#allocation60_spill] sm:$0xff]  ;;  %v10348_v40 = vld [vmem:[#allocation77_spill] sm:$0xff] }
 0x151   : > { %v6523_v25 = vadd.f32 %v1785_v33, %v6155_v37  ;;  %v6526_v19 = vadd.f32 %v1787_v11, %v6158_v44  ;;  %v6529_v58 = vadd.f32 %v1790_v12, %v6161_v52  ;;  %v6532_v15 = vadd.f32 %v1792_v47, %v6164_v13  ;;  %v10316_v37 = vld [vmem:[#allocation61_spill] sm:$0xff]  ;;  %v10318_v44 = vld [vmem:[#allocation62_spill] sm:$0xff]  ;;  %v10320_v52 = vld [vmem:[#allocation64_spill] sm:$0xff] }
 0x152   : > { %v6535_v62 = vadd.f32 %v1795_v18, %v10310_v3  ;;  %v6538_v23 = vadd.f32 %v1797_v28, %v10312_v45  ;;  %v6541_v10 = vadd.f32 %v1800_v53, %v10314_v5  ;;  %v6544_v33 = vadd.f32 %v1802_v43, %v10316_v37  ;;  %v10322_v13 = vld [vmem:[#allocation65_spill] sm:$0xff]  ;;  %v10324_v18 = vld [vmem:[#allocation66_spill] sm:$0xff]  ;;  %v10326_v28 = vld [vmem:[#allocation67_spill] sm:$0xff] }
 0x153   : > { %v6547_v11 = vadd.f32 %v1805_v6, %v10318_v44  ;;  %v6550_v12 = vadd.f32 %v1807_v31, %v10320_v52  ;;  %v6553_v47 = vadd.f32 %v1810_v20, %v10322_v13  ;;  %v6556_v50 = vadd.f32 %v1812_v24, %v10324_v18  ;;  %v10328_v53 = vld [vmem:[#allocation68_spill] sm:$0xff]  ;;  %v10330_v43 = vld [vmem:[#allocation69_spill] sm:$0xff]  ;;  %v10332_v6 = vld [vmem:[#allocation70_spill] sm:$0xff] }
 0x154   : > { %10311 = vst [vmem:[#allocation56_spill] sm:$0xff] %v6535_v62  ;;  %v6559_v39 = vadd.f32 %v1815_v9, %v10326_v28  ;;  %v6562_v0 = vadd.f32 %v1817_v35, %v10328_v53  ;;  %v6565_v29 = vadd.f32 %v1820_v14, %v10330_v43  ;;  %v6568_v63 = vadd.f32 %v1822_v46, %v10332_v6  ;;  %v6573_v31 = vld [vmem:[%s9366_s1 + $0x8] ss:$0 sm:$0xff]  ;;  %v10350_v1 = vld [vmem:[#allocation78_spill] sm:$0xff]  ;;  %v10367_v13 = vld [vmem:[#allocation40_spill] sm:$0xff] }
 0x155   : > { %10313 = vst [vmem:[#allocation57_spill] sm:$0xff] %v6538_v23  ;;  %v10334_v20 = vld [vmem:[#allocation71_spill] sm:$0xff]  ;;  %v6579_v9 = vadd.f32 %v1827_v49, %v10336_v38  ;;  %v6582_v35 = vadd.f32 %v1830_v22, %v10338_v55  ;;  %v6585_v14 = vadd.f32 %v1832_v7, %v10340_v41  ;;  %v6588_v34 = vadd.f32 %v1835_v16, %v10342_v27  ;;  %v10354_v49 = vld [vmem:[#allocation80_spill] sm:$0xff]  ;;  %v10368_v18 = vld [vmem:[#allocation25_spill] sm:$0xff] }
 0x156   : > { %10315 = vst [vmem:[#allocation19_spill] sm:$0xff] %v6541_v10  ;;  %v6576_v24 = vadd.f32 %v1825_v30, %v10334_v20  ;;  %v6591_v59 = vadd.f32 %v1837_v54, %v10344_v51  ;;  %v6594_v8 = vadd.f32 %v1840_v57, %v10346_v32  ;;  %v6597_v46 = vadd.f32 %v1842_v42, %v10348_v40  ;;  %v10352_v26 = vld [vmem:[#allocation79_spill] sm:$0xff]  ;;  %v10358_v54 = vld [vmem:[#allocation54_spill] sm:$0xff]  ;;  %v10369_v53 = vld [vmem:[#allocation9_spill] sm:$0xff] }
 0x157   : > { %10317 = vst [vmem:[#allocation6_spill] sm:$0xff] %v6544_v33  ;;  %v6600_v17 = vadd.f32 %v1845_v2, %v10350_v1  ;;  %v6603_v30 = vadd.f32 %v1847_v21, %v10352_v26  ;;  %v6606_v22 = vadd.f32 %v1850_v36, %v10354_v49  ;;  %v10356_v7 = vld [vmem:[#allocation63_spill] sm:$0xff]  ;;  %v6612_v3 = vadd.f32 %v1855_v56, %v10358_v54  ;;  %v10362_v42 = vld [vmem:[#allocation22_spill] sm:$0xff]  ;;  %v10370_v6 = vld [vmem:[#allocation41_spill] sm:$0xff] }
 0x158   : > { %10319 = vst [vmem:[#allocation38_spill] sm:$0xff] %v6547_v11  ;;  %v6609_v16 = vadd.f32 %v1852_v61, %v10356_v7  ;;  %v10360_v57 = vld [vmem:[#allocation55_spill] sm:$0xff]  ;;  %v1923_v5 = vmul.f32 %v6573_v31, %v10362_v42  ;;  %v10366_v61 = vld [vmem:[#allocation8_spill] sm:$0xff]  ;;  %v6637_v28 = vmul.f32 %v6573_v31, %v10368_v18  ;;  %v6641_v43 = vmul.f32 %v6573_v31, %v10369_v53  ;;  %v10371_v38 = vld [vmem:[#allocation26_spill] sm:$0xff] }
 0x159   : > { %10321 = vst [vmem:[#allocation58_spill] sm:$0xff] %v6550_v12  ;;  %v6615_v45 = vadd.f32 %v1857_v60, %v10360_v57  ;;  %v10363_v2 = vld [vmem:[#allocation7_spill] sm:$0xff]  ;;  %v6629_v56 = vmul.f32 %v6573_v31, %v10366_v61  ;;  %v6633_v60 = vmul.f32 %v6573_v31, %v10367_v13  ;;  %v6645_v20 = vmul.f32 %v6573_v31, %v10370_v6  ;;  %v10372_v41 = vld [vmem:[#allocation10_spill] sm:$0xff]  ;;  %v10377_v57 = vld [vmem:[#allocation28_spill] sm:$0xff] }
 0x15a   : > { %10323 = vst [vmem:[#allocation59_spill] sm:$0xff] %v6553_v47  ;;  %v1924_v37 = vmul.f32 %v6573_v31, %v10363_v2  ;;  %v10364_v21 = vld [vmem:[#allocation39_spill] sm:$0xff]  ;;  %v6649_v55 = vmul.f32 %v6573_v31, %v10371_v38  ;;  %v6653_v27 = vmul.f32 %v6573_v31, %v10372_v41  ;;  %v10373_v51 = vld [vmem:[#allocation42_spill] sm:$0xff]  ;;  %v6673_v42 = vmul.f32 %v6573_v31, %v10377_v57  ;;  %v10378_v2 = vld [vmem:[#allocation12_spill] sm:$0xff] }
 0x15b   : > { %10325 = vst [vmem:[#allocation60_spill] sm:$0xff] %v6556_v50  ;;  %v1925_v44 = vmul.f32 %v6573_v31, %v10364_v21  ;;  %v10365_v36 = vld [vmem:[#allocation23_spill] sm:$0xff]  ;;  %v6657_v32 = vmul.f32 %v6573_v31, %v10373_v51  ;;  %v6677_v21 = vmul.f32 %v6573_v31, %v10378_v2  ;;  %v10380_v13 = vld [vmem:[#allocation29_spill] sm:$0xff]  ;;  %v10383_v51 = vld [vmem:[#allocation30_spill] sm:$0xff]  ;;  %v2027_v10 = vrot.slane %v6633_v60, 2 }
 0x15c   : > { %10327 = vst [vmem:[#allocation61_spill] sm:$0xff] %v6559_v39  ;;  %v6625_v52 = vmul.f32 %v6573_v31, %v10365_v36  ;;  %v10374_v40 = vld [vmem:[#allocation27_spill] sm:$0xff]  ;;  %v10379_v36 = vld [vmem:[#allocation44_spill] sm:$0xff]  ;;  %v6685_v18 = vmul.f32 %v6573_v31, %v10380_v13  ;;  %v10381_v53 = vld [vmem:[#allocation13_spill] sm:$0xff]  ;;  %v2029_v23 = vrot.slane %v6637_v28, 2  ;;  %v2032_v62 = vrot.slane %v6645_v20, 2 }
 0x15d   : > { %10329 = vst [vmem:[#allocation62_spill] sm:$0xff] %v6562_v0  ;;  %v6661_v1 = vmul.f32 %v6573_v31, %v10374_v40  ;;  %v10375_v26 = vld [vmem:[#allocation11_spill] sm:$0xff]  ;;  %v6681_v61 = vmul.f32 %v6573_v31, %v10379_v36  ;;  %v6689_v6 = vmul.f32 %v6573_v31, %v10381_v53  ;;  %v10382_v38 = vld [vmem:[#allocation45_spill] sm:$0xff]  ;;  %v6697_v40 = vmul.f32 %v6573_v31, %v10383_v51  ;;  %v10385_v57 = vld [vmem:[#allocation46_spill] sm:$0xff] }
 0x15e   : > { %10331 = vst [vmem:[#allocation64_spill] sm:$0xff] %v6565_v29  ;;  %v6665_v49 = vmul.f32 %v6573_v31, %v10375_v26  ;;  %v10376_v7 = vld [vmem:[#allocation43_spill] sm:$0xff]  ;;  %v6693_v41 = vmul.f32 %v6573_v31, %v10382_v38  ;;  %v10384_v26 = vld [vmem:[#allocation14_spill] sm:$0xff]  ;;  %v6705_v2 = vmul.f32 %v6573_v31, %v10385_v57  ;;  %v10401_v29 = vld [vmem:[#allocation36_spill] sm:$0xff]  ;;  %v2024_v33 = vrot.slane %v6625_v52, 2 }
 0x15f   : > { %10333 = vst [vmem:[#allocation65_spill] sm:$0xff] %v6568_v63  ;;  %v6669_v54 = vmul.f32 %v6573_v31, %v10376_v7  ;;  %v6701_v7 = vmul.f32 %v6573_v31, %v10384_v26  ;;  %v10386_v36 = vld [vmem:[#allocation31_spill] sm:$0xff]  ;;  %v2020_v63 = vrot.slane %v1924_v37, 2  ;;  %v6769_v0 = vmul.f32 %v6573_v31, %v10401_v29  ;;  %v10406_v37 = vld [vmem:[#allocation53_spill] sm:$0xff] }
 0x160   : > { %10335 = vst [vmem:[#allocation66_spill] sm:$0xff] %v6576_v24  ;;  %v6709_v13 = vmul.f32 %v6573_v31, %v10386_v36  ;;  %v10387_v53 = vld [vmem:[#allocation15_spill] sm:$0xff]  ;;  %v2019_v24 = vrot.slane %v1923_v5, 2  ;;  %v6789_v29 = vmul.f32 %v6573_v31, %v10406_v37  ;;  %v10409_v11 = vld [vmem:[#allocation5_spill] sm:$0xff]  ;;  %v2037_v52 = vrot.slane %v6657_v32, 2 }
 0x161   : > { %10337 = vst [vmem:[#allocation67_spill] sm:$0xff] %v6579_v9  ;;  %v6713_v38 = vmul.f32 %v6573_v31, %v10387_v53  ;;  %v10400_v9 = vld [vmem:[#allocation51_spill] sm:$0xff]  ;;  %v2042_v60 = vrot.slane %v6669_v54, 2  ;;  %v2045_v28 = vrot.slane %v6677_v21, 2  ;;  %v2049_v20 = vrot.slane %v6685_v18, 2 }
 0x162   : > { %10339 = vst [vmem:[#allocation68_spill] sm:$0xff] %v6582_v35  ;;  %v10399_v35 = vld [vmem:[#allocation20_spill] sm:$0xff]  ;;  %v10408_v12 = vld [vmem:[#allocation3_spill] sm:$0xff]  ;;  %v6807_v37 = vsel %vm1536_vm2, %v2019_v24, %v2020_v63  ;;  %v2040_v24 = vrot.slane %v6665_v49, 2  ;;  %v2054_v32 = vrot.slane %v6697_v40, 2  ;;  %v2057_v49 = vrot.slane %v6705_v2, 2 }
 0x163   : > { %10341 = vst [vmem:[#allocation69_spill] sm:$0xff] %v6585_v14  ;;  %v10398_v14 = vld [vmem:[#allocation35_spill] sm:$0xff]  ;;  %v2059_v21 = vrot.slane %v6709_v13, 2 }
 0x164   : > { %10343 = vst [vmem:[#allocation70_spill] sm:$0xff] %v6588_v34  ;;  %v10397_v34 = vld [vmem:[#allocation50_spill] sm:$0xff]  ;;  %v2043_v2 = vsel %vm1536_vm2, %v2040_v24, %v2042_v60 }
 0x165   : > { %10345 = vst [vmem:[#allocation71_spill] sm:$0xff] %v6591_v59  ;;  %v10396_v59 = vld [vmem:[#allocation18_spill] sm:$0xff] }
 0x166   : > { %10347 = vst [vmem:[#allocation76_spill] sm:$0xff] %v6594_v8  ;;  %v10395_v8 = vld [vmem:[#allocation34_spill] sm:$0xff] }
 0x167   : > { %10349 = vst [vmem:[#allocation72_spill] sm:$0xff] %v6597_v46  ;;  %v10394_v46 = vld [vmem:[#allocation49_spill] sm:$0xff] }
 0x168   : > { %10351 = vst [vmem:[#allocation73_spill] sm:$0xff] %v6600_v17  ;;  %v10393_v17 = vld [vmem:[#allocation17_spill] sm:$0xff] }
 0x169   : > { %10353 = vst [vmem:[#allocation74_spill] sm:$0xff] %v6603_v30  ;;  %v10392_v30 = vld [vmem:[#allocation33_spill] sm:$0xff] }
 0x16a   : > { %10355 = vst [vmem:[#allocation75_spill] sm:$0xff] %v6606_v22  ;;  %v10391_v22 = vld [vmem:[#allocation48_spill] sm:$0xff]  ;;  %v6733_v53 = vmul.f32 %v6573_v31, %v10392_v30  ;;  %v6753_v30 = vmul.f32 %v6573_v31, %v10397_v34  ;;  %v10402_v34 = vld [vmem:[#allocation21_spill] sm:$0xff] }
 0x16b   : > { %10357 = vst [vmem:[#allocation2_spill] sm:$0xff] %v6609_v16  ;;  %v10390_v16 = vld [vmem:[#allocation16_spill] sm:$0xff]  ;;  %v6729_v36 = vmul.f32 %v6573_v31, %v10391_v22  ;;  %v6749_v22 = vmul.f32 %v6573_v31, %v10396_v59  ;;  %v2022_v59 = vrot.slane %v1925_v44, 2  ;;  %v6773_v39 = vmul.f32 %v6573_v31, %v10402_v34 }
 0x16c   : > { %10359 = vst [vmem:[#allocation77_spill] sm:$0xff] %v6612_v3  ;;  %v10389_v3 = vld [vmem:[#allocation32_spill] sm:$0xff]  ;;  %v6725_v57 = vmul.f32 %v6573_v31, %v10390_v16  ;;  %v6745_v16 = vmul.f32 %v6573_v31, %v10395_v8  ;;  %v6765_v8 = vmul.f32 %v6573_v31, %v10400_v9 }
 0x16d   : > { %10361 = vst [vmem:[#allocation78_spill] sm:$0xff] %v6615_v45  ;;  %v10388_v45 = vld [vmem:[#allocation47_spill] sm:$0xff]  ;;  %v6721_v26 = vmul.f32 %v6573_v31, %v10389_v3  ;;  %v6741_v3 = vmul.f32 %v6573_v31, %v10394_v46  ;;  %v6761_v46 = vmul.f32 %v6573_v31, %v10399_v35  ;;  %v10404_v35 = vld [vmem:[#allocation37_spill] sm:$0xff]  ;;  %v10405_v9 = vld [vmem:[#allocation24_spill] sm:$0xff] }
 0x16e   : > { %v6717_v51 = vmul.f32 %v6573_v31, %v10388_v45  ;;  %v6737_v45 = vmul.f32 %v6573_v31, %v10393_v17  ;;  %v6757_v17 = vmul.f32 %v6573_v31, %v10398_v14  ;;  %v10403_v14 = vld [vmem:[#allocation52_spill] sm:$0xff]  ;;  %v6781_v47 = vmul.f32 %v6573_v31, %v10404_v35 }
 0x16f   : > { %v6777_v50 = vmul.f32 %v6573_v31, %v10403_v14  ;;  %v6785_v5 = vmul.f32 %v6573_v31, %v10405_v9  ;;  %v10407_v44 = vld [vmem:[#allocation4_spill] sm:$0xff]  ;;  %v6797_v14 = vmul.f32 %v6573_v31, %v10408_v12  ;;  %v6801_v35 = vmul.f32 %v6573_v31, %v10409_v11 }
 0x170   : > { %v6793_v34 = vmul.f32 %v6573_v31, %v10407_v44  ;;  %v2025_v9 = vrot.slane %v6629_v56, 2  ;;  %v6810_v44 = vsel %vm1536_vm2, %v2020_v63, %v2022_v59  ;;  %v2030_v12 = vrot.slane %v6641_v43, 2 }
 0x171   : > { %v2034_v11 = vrot.slane %v6649_v55, 2  ;;  %v2035_v31 = vrot.slane %v6653_v27, 2  ;;  %v2039_v56 = vrot.slane %v6661_v1, 2  ;;  %v2044_v63 = vrot.slane %v6673_v42, 2 }
 0x172   : > { %v2047_v43 = vrot.slane %v6681_v61, 2  ;;  %v2050_v55 = vrot.slane %v6689_v6, 2  ;;  %v2052_v27 = vrot.slane %v6693_v41, 2  ;;  %v2055_v1 = vrot.slane %v6701_v7, 2 }
 0x173   : > { %v2026_v54 = vsel %vm1536_vm2, %v2024_v33, %v2025_v9  ;;  %v2028_v42 = vsel %vm1536_vm2, %v2025_v9, %v2027_v10  ;;  %v2060_v61 = vrot.slane %v6713_v38, 2  ;;  %v2031_v18 = vsel %vm1536_vm2, %v2029_v23, %v2030_v12 }
 0x174   : > { %v2033_v6 = vsel %vm1536_vm2, %v2030_v12, %v2032_v62  ;;  %v2036_v41 = vsel %vm1536_vm2, %v2034_v11, %v2035_v31  ;;  %v2038_v40 = vsel %vm1536_vm2, %v2035_v31, %v2037_v52  ;;  %v2041_v7 = vsel %vm1536_vm2, %v2039_v56, %v2040_v24 }
 0x175   : > { %v2046_v33 = vsel %vm1536_vm2, %v2044_v63, %v2045_v28  ;;  %v2048_v10 = vsel %vm1536_vm2, %v2045_v28, %v2047_v43  ;;  %v2051_v13 = vsel %vm1536_vm2, %v2049_v20, %v2050_v55  ;;  %v2053_v38 = vsel %vm1536_vm2, %v2050_v55, %v2052_v27 }
 0x176   : > { %v2056_v23 = vsel %vm1536_vm2, %v2054_v32, %v2055_v1  ;;  %v2058_v62 = vsel %vm1536_vm2, %v2055_v1, %v2057_v49  ;;  %v2061_v59 = vsel %vm1536_vm2, %v2059_v21, %v2060_v61  ;;  %v2062_v9 = vrot.slane %v6717_v51, 2 }
 0x177   : > { %v2064_v12 = vrot.slane %v6721_v26, 2  ;;  %v2065_v11 = vrot.slane %v6725_v57, 2  ;;  %v2067_v31 = vrot.slane %v6729_v36, 2  ;;  %v2069_v52 = vrot.slane %v6733_v53, 2 }
 0x178   : > { %v2070_v56 = vrot.slane %v6737_v45, 2  ;;  %v2072_v24 = vrot.slane %v6741_v3, 2  ;;  %v2074_v60 = vrot.slane %v6745_v16, 2  ;;  %v2075_v63 = vrot.slane %v6749_v22, 2 }
 0x179   : > { %v2077_v28 = vrot.slane %v6753_v30, 2  ;;  %v2079_v51 = vrot.slane %v6757_v17, 2  ;;  %v2080_v26 = vrot.slane %v6761_v46, 2  ;;  %v2082_v57 = vrot.slane %v6765_v8, 2 }
 0x17a   : > { %v2084_v36 = vrot.slane %v6769_v0, 2  ;;  %v2085_v53 = vrot.slane %v6773_v39, 2  ;;  %v2087_v45 = vrot.slane %v6777_v50, 2  ;;  %v2089_v3 = vrot.slane %v6781_v47, 2 }
 0x17b   : > { %v2090_v16 = vrot.slane %v6785_v5, 2  ;;  %v2092_v22 = vrot.slane %v6789_v29, 2  ;;  %v2063_v30 = vsel %vm1536_vm2, %v2060_v61, %v2062_v9  ;;  %v2094_v17 = vrot.slane %v6793_v34, 2 }
 0x17c   : > { %v2095_v46 = vrot.slane %v6797_v14, 2  ;;  %v2097_v8 = vrot.slane %v6801_v35, 2  ;;  %v2066_v0 = vsel %vm1536_vm2, %v2064_v12, %v2065_v11  ;;  %v2068_v39 = vsel %vm1536_vm2, %v2065_v11, %v2067_v31  ;;  %v10410_v11 = vld [vmem:[#allocation56_spill] sm:$0xff] }
 0x17d   : > { %v2071_v50 = vsel %vm1536_vm2, %v2069_v52, %v2070_v56  ;;  %v2073_v47 = vsel %vm1536_vm2, %v2070_v56, %v2072_v24  ;;  %v2076_v5 = vsel %vm1536_vm2, %v2074_v60, %v2075_v63  ;;  %v2078_v29 = vsel %vm1536_vm2, %v2075_v63, %v2077_v28  ;;  %v10411_v52 = vld [vmem:[#allocation57_spill] sm:$0xff]  ;;  %v10412_v24 = vld [vmem:[#allocation19_spill] sm:$0xff]  ;;  %v10413_v63 = vld [vmem:[#allocation6_spill] sm:$0xff] }
 0x17e   : > { %v2081_v43 = vsel %vm1536_vm2, %v2079_v51, %v2080_v26  ;;  %v2083_v34 = vsel %vm1536_vm2, %v2080_v26, %v2082_v57  ;;  %v2086_v14 = vsel %vm1536_vm2, %v2084_v36, %v2085_v53  ;;  %v2088_v35 = vsel %vm1536_vm2, %v2085_v53, %v2087_v45  ;;  %v10415_v51 = vld [vmem:[#allocation58_spill] sm:$0xff]  ;;  %v10421_v26 = vld [vmem:[#allocation65_spill] sm:$0xff] }
 0x17f   : > { %v2091_v20 = vsel %vm1536_vm2, %v2089_v3, %v2090_v16  ;;  %v2093_v55 = vsel %vm1536_vm2, %v2090_v16, %v2092_v22  ;;  %v2096_v27 = vsel %vm1536_vm2, %v2094_v17, %v2095_v46  ;;  %v2098_v32 = vsel %vm1536_vm2, %v2095_v46, %v2097_v8  ;;  %v10429_v22 = vld [vmem:[#allocation72_spill] sm:$0xff]  ;;  %v10430_v17 = vld [vmem:[#allocation73_spill] sm:$0xff]  ;;  %v10431_v8 = vld [vmem:[#allocation74_spill] sm:$0xff] }
 0x180   : > { %v2131_v1 = vadd.f32 %v6807_v37, %v6516_v4  ;;  %v2132_v49 = vadd.f32 %v6810_v44, %v6520_v48  ;;  %v2133_v21 = vadd.f32 %v2026_v54, %v6523_v25  ;;  %v2134_v61 = vadd.f32 %v2028_v42, %v6526_v19  ;;  %v10414_v4 = vld [vmem:[#allocation38_spill] sm:$0xff]  ;;  %v10416_v44 = vld [vmem:[#allocation59_spill] sm:$0xff]  ;;  %v10417_v54 = vld [vmem:[#allocation60_spill] sm:$0xff] }
 0x181   : > { %v2135_v9 = vadd.f32 %v2031_v18, %v6529_v58  ;;  %v2136_v12 = vadd.f32 %v2033_v6, %v6532_v15  ;;  %v2137_v31 = vadd.f32 %v2036_v41, %v10410_v11  ;;  %v2138_v56 = vadd.f32 %v2038_v40, %v10411_v52  ;;  %v10418_v42 = vld [vmem:[#allocation61_spill] sm:$0xff]  ;;  %v10419_v18 = vld [vmem:[#allocation62_spill] sm:$0xff]  ;;  %v10420_v6 = vld [vmem:[#allocation64_spill] sm:$0xff] }
 0x182   : > { %v2139_v60 = vadd.f32 %v2041_v7, %v10412_v24  ;;  %v2140_v28 = vadd.f32 %v2043_v2, %v10413_v63  ;;  %v2141_v37 = vadd.f32 %v2046_v33, %v10414_v4  ;;  %v2142_v48 = vadd.f32 %v2048_v10, %v10415_v51  ;;  %v6907_v7 = vld [vmem:[%s9367_s2] ss:$0 sm:$0xff]  ;;  %v10423_v10 = vld [vmem:[#allocation67_spill] sm:$0xff]  ;;  %v10434_v63 = vld [vmem:[#allocation77_spill] sm:$0xff] }
 0x183   : > { %v2143_v25 = vadd.f32 %v2051_v13, %v10416_v44  ;;  %v2144_v19 = vadd.f32 %v2053_v38, %v10417_v54  ;;  %v2145_v58 = vadd.f32 %v2056_v23, %v10418_v42  ;;  %v2146_v15 = vadd.f32 %v2058_v62, %v10419_v18  ;;  %v10422_v2 = vld [vmem:[#allocation66_spill] sm:$0xff]  ;;  %v10424_v13 = vld [vmem:[#allocation68_spill] sm:$0xff]  ;;  %v10425_v38 = vld [vmem:[#allocation69_spill] sm:$0xff] }
 0x184   : > { %v2147_v41 = vadd.f32 %v2061_v59, %v10420_v6  ;;  %v2148_v40 = vadd.f32 %v2063_v30, %v10421_v26  ;;  %v2149_v33 = vadd.f32 %v2066_v0, %v10422_v2  ;;  %v2150_v57 = vadd.f32 %v2068_v39, %v10423_v10  ;;  %v10426_v23 = vld [vmem:[#allocation70_spill] sm:$0xff]  ;;  %v10427_v62 = vld [vmem:[#allocation71_spill] sm:$0xff]  ;;  %v10428_v59 = vld [vmem:[#allocation76_spill] sm:$0xff] }
 0x185   : > { %v2151_v36 = vadd.f32 %v2071_v50, %v10424_v13  ;;  %v2152_v53 = vadd.f32 %v2073_v47, %v10425_v38  ;;  %v2153_v45 = vadd.f32 %v2076_v5, %v10426_v23  ;;  %v2154_v3 = vadd.f32 %v2078_v29, %v10427_v62  ;;  %v10432_v52 = vld [vmem:[#allocation75_spill] sm:$0xff]  ;;  %v10433_v24 = vld [vmem:[#allocation2_spill] sm:$0xff] }
 0x186   : > { %v2155_v16 = vadd.f32 %v2081_v43, %v10428_v59  ;;  %v2156_v30 = vadd.f32 %v2083_v34, %v10429_v22  ;;  %v2157_v46 = vadd.f32 %v2086_v14, %v10430_v17  ;;  %v2158_v11 = vadd.f32 %v2088_v35, %v10431_v8  ;;  %v10435_v4 = vld [vmem:[#allocation78_spill] sm:$0xff] }
 0x187   : > { %v2159_v0 = vadd.f32 %v2091_v20, %v10432_v52  ;;  %v2160_v39 = vadd.f32 %v2093_v55, %v10433_v24  ;;  %v2161_v50 = vadd.f32 %v2096_v27, %v10434_v63  ;;  %v2162_v47 = vadd.f32 %v2098_v32, %v10435_v4 }
 0x188   : > { %v6924_v5 = vadd.f32 %v6907_v7, %v2131_v1  ;;  %v6927_v29 = vadd.f32 %v6907_v7, %v2132_v49  ;;  %v6930_v43 = vadd.f32 %v6907_v7, %v2133_v21  ;;  %v6933_v34 = vadd.f32 %v6907_v7, %v2134_v61 }
 0x189   : > { %v6936_v14 = vadd.f32 %v6907_v7, %v2135_v9  ;;  %v6939_v35 = vadd.f32 %v6907_v7, %v2136_v12  ;;  %v6942_v20 = vadd.f32 %v6907_v7, %v2137_v31  ;;  %v6945_v55 = vadd.f32 %v6907_v7, %v2138_v56 }
 0x18a   : > { %10436 = vst [vmem:[#allocation79_spill] sm:$0xff] %v6924_v5  ;;  %v6948_v27 = vadd.f32 %v6907_v7, %v2139_v60  ;;  %v6951_v32 = vadd.f32 %v6907_v7, %v2140_v28  ;;  %v6954_v1 = vadd.f32 %v6907_v7, %v2141_v37  ;;  %v6957_v49 = vadd.f32 %v6907_v7, %v2142_v48 }
 0x18b   : > { %10437 = vst [vmem:[#allocation80_spill] sm:$0xff] %v6927_v29  ;;  %v6960_v21 = vadd.f32 %v6907_v7, %v2143_v25  ;;  %v6963_v61 = vadd.f32 %v6907_v7, %v2144_v19  ;;  %v6966_v9 = vadd.f32 %v6907_v7, %v2145_v58  ;;  %v6969_v12 = vadd.f32 %v6907_v7, %v2146_v15 }
 0x18c   : > { %10438 = vst [vmem:[#allocation63_spill] sm:$0xff] %v6930_v43  ;;  %v6972_v31 = vadd.f32 %v6907_v7, %v2147_v41  ;;  %v6975_v56 = vadd.f32 %v6907_v7, %v2148_v40  ;;  %v6978_v60 = vadd.f32 %v6907_v7, %v2149_v33  ;;  %v6981_v28 = vadd.f32 %v6907_v7, %v2150_v57 }
 0x18d   : > { %10439 = vst [vmem:[#allocation54_spill] sm:$0xff] %v6933_v34  ;;  %v6984_v37 = vadd.f32 %v6907_v7, %v2151_v36  ;;  %v6987_v51 = vadd.f32 %v6907_v7, %v2152_v53  ;;  %v6990_v48 = vadd.f32 %v6907_v7, %v2153_v45  ;;  %v6993_v44 = vadd.f32 %v6907_v7, %v2154_v3 }
 0x18e   : > { %10440 = vst [vmem:[#allocation55_spill] sm:$0xff] %v6936_v14  ;;  %v6996_v25 = vadd.f32 %v6907_v7, %v2155_v16  ;;  %v6999_v54 = vmul.f32 0.70710677, %v6924_v5  ;;  %v7002_v19 = vadd.f32 %v6907_v7, %v2156_v30  ;;  %v7005_v42 = vmul.f32 0.70710677, %v6927_v29 }
 0x18f   : > { %10441 = vst [vmem:[#allocation22_spill] sm:$0xff] %v6939_v35  ;;  %v7008_v58 = vmul.f32 0.70710677, %v6930_v43  ;;  %v7011_v18 = vmul.f32 0.70710677, %v6933_v34  ;;  %v7014_v15 = vadd.f32 %v6907_v7, %v2157_v46  ;;  %v7026_v40 = vadd.f32 %v6907_v7, %v2158_v11 }
 0x190   : > { %10442 = vst [vmem:[#allocation7_spill] sm:$0xff] %v6942_v20  ;;  %v7017_v6 = vmul.f32 0.70710677, %v6936_v14  ;;  %v7020_v41 = vmul.f32 0.70710677, %v6939_v35  ;;  %v7038_v57 = vadd.f32 %v6907_v7, %v2159_v0  ;;  %v7050_v53 = vadd.f32 %v6907_v7, %v2160_v39 }
 0x191   : > { %10443 = vst [vmem:[#allocation39_spill] sm:$0xff] %v6945_v55  ;;  %v7023_v26 = vmul.f32 0.70710677, %v6942_v20  ;;  %v7029_v2 = vmul.f32 0.70710677, %v6945_v55  ;;  %v7062_v3 = vadd.f32 %v6907_v7, %v2161_v50  ;;  %v7074_v30 = vadd.f32 %v6907_v7, %v2162_v47 }
 0x192   : > { %10444 = vst [vmem:[#allocation23_spill] sm:$0xff] %v6948_v27  ;;  %v7032_v33 = vmul.f32 0.70710677, %v6948_v27  ;;  %v7035_v10 = vmul.f32 0.70710677, %v6951_v32 }
 0x193   : > { %10445 = vst [vmem:[#allocation8_spill] sm:$0xff] %v6951_v32  ;;  %v7041_v13 = vmul.f32 0.70710677, %v6954_v1  ;;  %v7044_v36 = vmul.f32 0.70710677, %v6957_v49 }
 0x194   : > { %10446 = vst [vmem:[#allocation40_spill] sm:$0xff] %v6954_v1  ;;  %v7047_v38 = vmul.f32 0.70710677, %v6960_v21  ;;  %v7053_v23 = vmul.f32 0.70710677, %v6963_v61 }
 0x195   : > { %10447 = vst [vmem:[#allocation25_spill] sm:$0xff] %v6957_v49  ;;  %v7056_v45 = vmul.f32 0.70710677, %v6966_v9  ;;  %v7059_v62 = vmul.f32 0.70710677, %v6969_v12 }
 0x196   : > { %10448 = vst [vmem:[#allocation9_spill] sm:$0xff] %v6960_v21  ;;  %v7065_v59 = vmul.f32 0.70710677, %v6972_v31  ;;  %v7068_v16 = vmul.f32 0.70710677, %v6975_v56 }
 0x197   : > { %10449 = vst [vmem:[#allocation41_spill] sm:$0xff] %v6963_v61  ;;  %v7071_v22 = vmul.f32 0.70710677, %v6978_v60  ;;  %v7077_v17 = vmul.f32 0.70710677, %v6981_v28 }
 0x198   : > { %10450 = vst [vmem:[#allocation26_spill] sm:$0xff] %v6966_v9  ;;  %v7080_v46 = vmul.f32 0.70710677, %v6984_v37  ;;  %v7083_v8 = vmul.f32 0.70710677, %v6987_v51 }
 0x199   : > { %10451 = vst [vmem:[#allocation10_spill] sm:$0xff] %v6969_v12  ;;  %v7086_v11 = vmul.f32 0.70710677, %v6990_v48  ;;  %v7089_v52 = vmul.f32 0.70710677, %v6993_v44 }
 0x19a   : > { %10452 = vst [vmem:[#allocation42_spill] sm:$0xff] %v6972_v31  ;;  %v7092_v0 = vmul.f32 0.70710677, %v6996_v25  ;;  %v7095_v7 = vmul.f32 0.70710677, %v7002_v19 }
 0x19b   : > { %10453 = vst [vmem:[#allocation27_spill] sm:$0xff] %v6975_v56  ;;  %v7098_v24 = vmul.f32 0.70710677, %v7014_v15  ;;  %v7101_v39 = vmul.f32 0.70710677, %v7026_v40 }
 0x19c   : > { %10454 = vst [vmem:[#allocation11_spill] sm:$0xff] %v6978_v60  ;;  %v7104_v63 = vmul.f32 0.70710677, %v7038_v57  ;;  %v7107_v50 = vmul.f32 0.70710677, %v7050_v53 }
 0x19d   : > { %10455 = vst [vmem:[#allocation43_spill] sm:$0xff] %v6981_v28  ;;  %v7110_v4 = vmul.f32 0.70710677, %v7062_v3  ;;  %v7113_v47 = vmul.f32 0.70710677, %v7074_v30 }
 0x19e   : > { %10456 = vst [vmem:[#allocation28_spill] sm:$0xff] %v6984_v37  ;;  %v7149_v37 = vand.u32 2147483647, %v7044_v36  ;;  %v7152_v28 = vand.u32 2147483647, %v7047_v38 }
 0x19f   : > { %10457 = vst [vmem:[#allocation12_spill] sm:$0xff] %v6987_v51  ;;  %v7146_v51 = vand.u32 2147483647, %v7041_v13  ;;  %v7155_v60 = vand.u32 2147483647, %v7053_v23 }
 0x1a0   : > { %10458 = vst [vmem:[#allocation44_spill] sm:$0xff] %v6990_v48  ;;  %v7143_v48 = vand.u32 2147483647, %v7035_v10  ;;  %v7158_v56 = vand.u32 2147483647, %v7056_v45 }
 0x1a1   : > { %10459 = vst [vmem:[#allocation29_spill] sm:$0xff] %v6993_v44  ;;  %v7140_v44 = vand.u32 2147483647, %v7032_v33  ;;  %v7161_v31 = vand.u32 2147483647, %v7059_v62 }
 0x1a2   : > { %10460 = vst [vmem:[#allocation13_spill] sm:$0xff] %v6996_v25  ;;  %v7137_v25 = vand.u32 2147483647, %v7029_v2  ;;  %v7164_v12 = vand.u32 2147483647, %v7065_v59 }
 0x1a3   : > { %10461 = vst [vmem:[#allocation45_spill] sm:$0xff] %v6999_v54  ;;  %v7167_v9 = vand.u32 2147483647, %v7068_v16  ;;  %v7170_v61 = vand.u32 2147483647, %v7071_v22 }
 0x1a4   : > { %10462 = vst [vmem:[#allocation30_spill] sm:$0xff] %v7002_v19  ;;  %v7116_v19 = vand.u32 2147483647, %v6999_v54  ;;  %v7173_v21 = vand.u32 2147483647, %v7077_v17 }
 0x1a5   : > { %10463 = vst [vmem:[#allocation14_spill] sm:$0xff] %v7005_v42  ;;  %v7176_v49 = vand.u32 2147483647, %v7080_v46  ;;  %v7179_v1 = vand.u32 2147483647, %v7083_v8 }
 0x1a6   : > { %10464 = vst [vmem:[#allocation46_spill] sm:$0xff] %v7008_v58  ;;  %v7182_v32 = vand.u32 2147483647, %v7086_v11  ;;  %v7185_v27 = vand.u32 2147483647, %v7089_v52 }
 0x1a7   : > { %10465 = vst [vmem:[#allocation31_spill] sm:$0xff] %v7011_v18  ;;  %v7188_v55 = vand.u32 2147483647, %v7092_v0  ;;  %v7191_v20 = vand.u32 2147483647, %v7095_v7 }
 0x1a8   : > { %10466 = vst [vmem:[#allocation15_spill] sm:$0xff] %v7014_v15  ;;  %v7119_v15 = vand.u32 2147483647, %v7005_v42  ;;  %v7194_v35 = vand.u32 2147483647, %v7098_v24 }
 0x1a9   : > { %10467 = vst [vmem:[#allocation47_spill] sm:$0xff] %v7017_v6  ;;  %v7197_v14 = vand.u32 2147483647, %v7101_v39  ;;  %v7200_v34 = vand.u32 2147483647, %v7104_v63 }
 0x1aa   : > { %10468 = vst [vmem:[#allocation32_spill] sm:$0xff] %v7020_v41  ;;  %v7203_v43 = vand.u32 2147483647, %v7107_v50  ;;  %v7206_v29 = vand.u32 2147483647, %v7110_v4 }
 0x1ab   : > { %10469 = vst [vmem:[#allocation16_spill] sm:$0xff] %v7023_v26  ;;  %v2262_v5 = vmul.f32 0.3275911, %v7116_v19  ;;  %v2290_v42 = vmul.f32 0.3275911, %v7200_v34 }
 0x1ac   : > { %10470 = vst [vmem:[#allocation48_spill] sm:$0xff] %v7026_v40  ;;  %v7122_v40 = vand.u32 2147483647, %v7008_v58  ;;  %v2291_v54 = vmul.f32 0.3275911, %v7203_v43 }
 0x1ad   : > { %10471 = vst [vmem:[#allocation33_spill] sm:$0xff] %v7029_v2  ;;  %v2286_v2 = vmul.f32 0.3275911, %v7188_v55 }
 0x1ae   : > { %10472 = vst [vmem:[#allocation17_spill] sm:$0xff] %v7032_v33  ;;  %v2284_v33 = vmul.f32 0.3275911, %v7182_v32 }
 0x1af   : > { %10473 = vst [vmem:[#allocation49_spill] sm:$0xff] %v7035_v10  ;;  %v2282_v10 = vmul.f32 0.3275911, %v7176_v49 }
 0x1b0   : > { %10474 = vst [vmem:[#allocation34_spill] sm:$0xff] %v7038_v57  ;;  %v7125_v57 = vand.u32 2147483647, %v7011_v18  ;;  %v2289_v18 = vmul.f32 0.3275911, %v7197_v14 }
 0x1b1   : > { %10475 = vst [vmem:[#allocation18_spill] sm:$0xff] %v7041_v13  ;;  %v2281_v13 = vmul.f32 0.3275911, %v7173_v21 }
 0x1b2   : > { %10476 = vst [vmem:[#allocation50_spill] sm:$0xff] %v7044_v36  ;;  %v2279_v36 = vmul.f32 0.3275911, %v7167_v9 }
 0x1b3   : > { %10477 = vst [vmem:[#allocation35_spill] sm:$0xff] %v7047_v38  ;;  %v2278_v38 = vmul.f32 0.3275911, %v7164_v12 }
 0x1b4   : > { %10478 = vst [vmem:[#allocation20_spill] sm:$0xff] %v7050_v53  ;;  %v7128_v53 = vand.u32 2147483647, %v7017_v6  ;;  %v2288_v6 = vmul.f32 0.3275911, %v7194_v35 }
 0x1b5   : > { %10479 = vst [vmem:[#allocation51_spill] sm:$0xff] %v7053_v23  ;;  %v2277_v23 = vmul.f32 0.3275911, %v7161_v31 }
 0x1b6   : > { %10480 = vst [vmem:[#allocation36_spill] sm:$0xff] %v7056_v45 }
 0x1b7   : > { %10481 = vst [vmem:[#allocation21_spill] sm:$0xff] %v7059_v62  ;;  %v2276_v62 = vmul.f32 0.3275911, %v7158_v56 }
 0x1b8   : > { %10482 = vst [vmem:[#allocation52_spill] sm:$0xff] %v7062_v3  ;;  %v7131_v3 = vand.u32 2147483647, %v7020_v41 }
 0x1b9   : > { %10483 = vst [vmem:[#allocation37_spill] sm:$0xff] %v7065_v59  ;;  %v2275_v59 = vmul.f32 0.3275911, %v7155_v60 }
 0x1ba   : > { %10484 = vst [vmem:[#allocation24_spill] sm:$0xff] %v7068_v16 }
 0x1bb   : > { %10485 = vst [vmem:[#allocation53_spill] sm:$0xff] %v7071_v22  ;;  %v2274_v22 = vmul.f32 0.3275911, %v7152_v28 }
 0x1bc   : > { %10486 = vst [vmem:[#allocation4_spill] sm:$0xff] %v7074_v30  ;;  %v7134_v30 = vand.u32 2147483647, %v7023_v26  ;;  %v2287_v26 = vmul.f32 0.3275911, %v7191_v20 }
 0x1bd   : > { %10487 = vst [vmem:[#allocation3_spill] sm:$0xff] %v7077_v17  ;;  %v2273_v17 = vmul.f32 0.3275911, %v7149_v37 }
 0x1be   : > { %10488 = vst [vmem:[#allocation5_spill] sm:$0xff] %v7080_v46  ;;  %v7222_v46 = vadd.f32 1.0, %v2262_v5  ;;  %v2280_v5 = vmul.f32 0.3275911, %v7170_v61 }
 0x1bf   : > { %10489 = vst [vmem:[#allocation56_spill] sm:$0xff] %v7083_v8  ;;  %v2271_v8 = vmul.f32 0.3275911, %v7143_v48 }
 0x1c0   : > { %10490 = vst [vmem:[#allocation57_spill] sm:$0xff] %v7086_v11  ;;  %v2270_v11 = vmul.f32 0.3275911, %v7140_v44  ;;  %3794 = vrcp.f32 %v7222_v46  ;;  %vm2331_vm3 = vweird.f32 %v7222_v46 }
 0x1c1   : > { %10491 = vst [vmem:[#allocation19_spill] sm:$0xff] %v7089_v52  ;;  %v2267_v52 = vmul.f32 0.3275911, %v7131_v3 }
 0x1c2   : > { %10492 = vst [vmem:[#allocation6_spill] sm:$0xff] %v7092_v0  ;;  %v2264_v0 = vmul.f32 0.3275911, %v7122_v40 }
 0x1c3   : > { %10493 = vst [vmem:[#allocation38_spill] sm:$0xff] %v7095_v7  ;;  %v7210_v7 = vand.u32 2147483647, %v7113_v47 }
 0x1c4   : > { %10494 = vst [vmem:[#allocation58_spill] sm:$0xff] %v7098_v24  ;;  %v2263_v24 = vmul.f32 0.3275911, %v7119_v15  ;;  %v7230_v45 = vadd.f32 1.0, %v2264_v0  ;;  %v2285_v0 = vmul.f32 0.3275911, %v7185_v27 }
 0x1c5   : > { %10495 = vst [vmem:[#allocation59_spill] sm:$0xff] %v7101_v39  ;;  %v2265_v39 = vmul.f32 0.3275911, %v7125_v57 }
 0x1c6   : > { %10496 = vst [vmem:[#allocation60_spill] sm:$0xff] %v7104_v63  ;;  %v2266_v63 = vmul.f32 0.3275911, %v7128_v53  ;;  %v7226_v16 = vadd.f32 1.0, %v2263_v24  ;;  %v2283_v24 = vmul.f32 0.3275911, %v7179_v1  ;;  %vm2361_vm5 = vweird.f32 %v7230_v45 }
 0x1c7   : > { %10497 = vst [vmem:[#allocation61_spill] sm:$0xff] %v7107_v50  ;;  %v2268_v50 = vmul.f32 0.3275911, %v7134_v30  ;;  %v7245_v41 = vadd.f32 1.0, %v2265_v39 }
 0x1c8   : > { %10498 = vst [vmem:[#allocation62_spill] sm:$0xff] %v7110_v4  ;;  %v2269_v4 = vmul.f32 0.3275911, %v7137_v25  ;;  %3796 = vrcp.f32 %v7226_v16  ;;  %v7250_v58 = vadd.f32 1.0, %v2266_v63  ;;  %v7266_v63 = vadd.f32 1.0, %v2271_v8 }
 0x1c9   : > { %10499 = vst [vmem:[#allocation64_spill] sm:$0xff] %v7113_v47  ;;  %v2272_v47 = vmul.f32 0.3275911, %v7146_v51  ;;  %3798 = vrcp.f32 %v7230_v45  ;;  %v7258_v39 = vadd.f32 1.0, %v2268_v50  ;;  %v7284_v8 = vadd.f32 1.0, %v2277_v23 }
 0x1ca   : > { %10500 = vst [vmem:[#allocation65_spill] sm:$0xff] %v7116_v19  ;;  %3800 = vrcp.f32 %v7245_v41  ;;  %vm2346_vm4 = vweird.f32 %v7226_v16  ;;  %vm2376_vm6 = vweird.f32 %v7245_v41  ;;  %vm2391_vm12 = vweird.f32 %v7250_v58 }
 0x1cb   : > { %10501 = vst [vmem:[#allocation66_spill] sm:$0xff] %v7119_v15  ;;  %3802 = vrcp.f32 %v7250_v58 }
 0x1cc   : > { %10502 = vst [vmem:[#allocation67_spill] sm:$0xff] %v7122_v40 }
 0x1cd   : > { %10503 = vst [vmem:[#allocation68_spill] sm:$0xff] %v7125_v57 }
 0x1ce   : > { %10504 = vst [vmem:[#allocation69_spill] sm:$0xff] %v7128_v53 }
 0x1cf   : > { %10505 = vst [vmem:[#allocation70_spill] sm:$0xff] %v7131_v3 }
 0x1d0   : > { %10506 = vst [vmem:[#allocation71_spill] sm:$0xff] %v7134_v30 }
 0x1d1   : > { %10507 = vst [vmem:[#allocation76_spill] sm:$0xff] %v7137_v25 }
 0x1d2   : > { %10508 = vst [vmem:[#allocation72_spill] sm:$0xff] %v7140_v44 }
 0x1d3   : > { %10509 = vst [vmem:[#allocation73_spill] sm:$0xff] %v7143_v48  ;;  %v2382_v48 = vand.u32 2147483648, %v7245_v41 }
 0x1d4   : > { %10510 = vst [vmem:[#allocation74_spill] sm:$0xff] %v7146_v51 }
 0x1d5   : > { %10511 = vst [vmem:[#allocation75_spill] sm:$0xff] %v7149_v37 }
 0x1d6   : > { %10512 = vst [vmem:[#allocation2_spill] sm:$0xff] %v7152_v28 }
 0x1d7   : > { %10513 = vst [vmem:[#allocation77_spill] sm:$0xff] %v7155_v60  ;;  %v2365_v60 = vand.u32 2147483647, %v7230_v45 }
 0x1d8   : > { %10514 = vst [vmem:[#allocation78_spill] sm:$0xff] %v7158_v56 }
 0x1d9   : > { %10515 = vst [vmem:[#allocation81_spill] sm:$0xff] %v7161_v31  ;;  %vm7368_vm10 = vcmp.eq.f32.partialorder %v2365_v60, 8.507059e+37  ;;  %v2395_v60 = vand.u32 2147483647, %v7250_v58 }
 0x1da   : > { %10516 = vst [vmem:[#allocation82_spill] sm:$0xff] %v7164_v12  ;;  %v2337_v12 = vand.u32 2147483648, %v7222_v46 }
 0x1db   : > { %10517 = vst [vmem:[#allocation83_spill] sm:$0xff] %v7167_v9 }
 0x1dc   : > { %10518 = vst [vmem:[#allocation84_spill] sm:$0xff] %v7170_v61  ;;  %v7324_v61 = vadd.f32 1.0, %v2291_v54  ;;  %v2367_v54 = vand.u32 2147483648, %v7230_v45  ;;  %v7345_v51 = vor.u32 1.1754944e-38, %v2337_v12 }
 0x1dd   : > { %10519 = vst [vmem:[#allocation85_spill] sm:$0xff] %v7173_v21  ;;  %v7322_v21 = vadd.f32 1.0, %v2290_v42 }
 0x1de   : > { %10520 = vst [vmem:[#allocation86_spill] sm:$0xff] %v7176_v49  ;;  %v7297_v49 = vadd.f32 1.0, %v2283_v24  ;;  %v7318_v24 = vadd.f32 1.0, %v2289_v18  ;;  %v2352_v18 = vand.u32 2147483648, %v7226_v16  ;;  %v2368_v30 = vor.u32 1.1754944e-38, %v2367_v54 }
 0x1df   : > { %10521 = vst [vmem:[#allocation87_spill] sm:$0xff] %v7179_v1  ;;  %v7262_v1 = vadd.f32 1.0, %v2269_v4  ;;  %v7280_v4 = vadd.f32 1.0, %v2275_v59  ;;  %v7299_v59 = vadd.f32 1.0, %v2284_v33  ;;  %v7316_v33 = vadd.f32 1.0, %v2288_v6 }
 0x1e0   : > { %10522 = vst [vmem:[#allocation88_spill] sm:$0xff] %v7182_v32  ;;  %v7260_v32 = vpop.eup %3794  ;;  %v2335_v6 = vand.u32 2147483647, %v7222_v46  ;;  %v2397_v54 = vand.u32 2147483648, %v7250_v58 }
 0x1e1   : > { %10523 = vst [vmem:[#allocation89_spill] sm:$0xff] %v7185_v27  ;;  %v7254_v27 = vadd.f32 1.0, %v2267_v52  ;;  %v7271_v52 = vadd.f32 1.0, %v2272_v47  ;;  %v7289_v47 = vadd.f32 1.0, %v2279_v36  ;;  %v2327_v23 = vmul.f32 %v7260_v32, %v7222_v46 }
 0x1e2   : > { %10524 = vst [vmem:[#allocation90_spill] sm:$0xff] %v7188_v55  ;;  %v2292_v55 = vmul.f32 0.3275911, %v7206_v29  ;;  %vm2332_vm7 = vweird.f32 %v7260_v32  ;;  %vm7360_vm8 = vcmp.eq.f32.partialorder %v2335_v6, 8.507059e+37 }
 0x1e3   : > { %10525 = vst [vmem:[#allocation91_spill] sm:$0xff] %v7191_v20  ;;  %v2293_v20 = vmul.f32 0.3275911, %v7210_v7  ;;  %3804 = vrcp.f32 %v7254_v27  ;;  %vm7387_vm14 = vmor %vm2331_vm3, %vm2332_vm7  ;;  %vm2406_vm15 = vweird.f32 %v7254_v27  ;;  %vm7420_vm7 = vcmp.eq.f32.partialorder %v2395_v60, 8.507059e+37 }
 0x1e4   : > { %10526 = vst [vmem:[#allocation92_spill] sm:$0xff] %v7194_v35  ;;  %v7264_v35 = vadd.f32 1.0, %v2270_v11  ;;  %v7282_v11 = vadd.f32 1.0, %v2276_v62  ;;  %v7301_v62 = vadd.f32 1.0, %v2285_v0  ;;  %3806 = vrcp.f32 %v7258_v39 }
 0x1e5   : > { %10527 = vst [vmem:[#allocation93_spill] sm:$0xff] %v7197_v14  ;;  %v7295_v14 = vadd.f32 1.0, %v2282_v10  ;;  %v7312_v10 = vadd.f32 1.0, %v2286_v2  ;;  %v7326_v9 = vadd.f32 1.0, %v2292_v55  ;;  %v7331_v2 = vadd.f32 1.0, %v2293_v20 }
 0x1e6   : > { %10528 = vst [vmem:[#allocation94_spill] sm:$0xff] %v7200_v34  ;;  %v7269_v34 = vpop.eup %3796  ;;  %v2350_v55 = vand.u32 2147483647, %v7226_v16  ;;  %3808 = vrcp.f32 %v7262_v1 }
 0x1e7   : > { %10529 = vst [vmem:[#allocation95_spill] sm:$0xff] %v7203_v43  ;;  %v7273_v43 = vadd.f32 1.0, %v2273_v17  ;;  %v7278_v50 = vpop.eup %3798  ;;  %v7291_v17 = vadd.f32 1.0, %v2280_v5  ;;  %v7314_v5 = vadd.f32 1.0, %v2287_v26  ;;  %v2328_v26 = vsub.f32 1.0, %v2327_v23 }
 0x1e8   : > { %10530 = vst [vmem:[#allocation96_spill] sm:$0xff] %v7206_v29  ;;  %v7275_v29 = vadd.f32 1.0, %v2274_v22  ;;  %v7293_v22 = vadd.f32 1.0, %v2281_v13  ;;  %v2357_v36 = vmul.f32 %v7278_v50, %v7230_v45  ;;  %v7310_v13 = vpop.eup %3800  ;;  %vm7364_vm9 = vcmp.eq.f32.partialorder %v2350_v55, 8.507059e+37 }
 0x1e9   : > { %10531 = vst [vmem:[#allocation97_spill] sm:$0xff] %v7210_v7  ;;  %v7287_v7 = vadd.f32 1.0, %v2278_v38  ;;  %v2342_v38 = vmul.f32 %v7269_v34, %v7226_v16  ;;  %v7320_v0 = vpop.eup %3802  ;;  %v2372_v28 = vmul.f32 %v7310_v13, %v7245_v41  ;;  %v2329_v44 = vmul.f32 %v7260_v32, %v2328_v26 }
 0x1ea   : > { %v7329_v31 = vpop.eup %3804  ;;  %v2358_v42 = vsub.f32 1.0, %v2357_v36  ;;  %v2387_v20 = vmul.f32 %v7320_v0, %v7250_v58  ;;  %v2380_v36 = vand.u32 2147483647, %v7245_v41  ;;  %vm2347_vm11 = vweird.f32 %v7269_v34 }
 0x1eb   : > { %v2343_v56 = vsub.f32 1.0, %v2342_v38  ;;  %v7343_v37 = vpop.eup %3806  ;;  %v2402_v23 = vmul.f32 %v7329_v31, %v7254_v27  ;;  %v7351_v38 = vor.u32 1.1754944e-38, %v2352_v18  ;;  %v2373_v26 = vsub.f32 1.0, %v2372_v28  ;;  %vm7396_vm0 = vmor %vm2346_vm4, %vm2347_vm11 }
 0x1ec   : > { %v2359_v25 = vmul.f32 %v7278_v50, %v2358_v42  ;;  %v2388_v57 = vsub.f32 1.0, %v2387_v20  ;;  %vm2362_vm13 = vweird.f32 %v7278_v50  ;;  %v7378_v42 = vor.u32 1.1754944e-38, %v2382_v48 }
 0x1ed   : > { %v2344_v12 = vmul.f32 %v7269_v34, %v2343_v56  ;;  %v2417_v56 = vmul.f32 %v7343_v37, %v7258_v39  ;;  %v2403_v6 = vsub.f32 1.0, %v2402_v23  ;;  %v2330_v28 = vadd.f32 %v7260_v32, %v2329_v44  ;;  %vm7411_vm2 = vmor %vm2361_vm5, %vm2362_vm13 }
 0x1ee   : > { %v2360_v23 = vadd.f32 %v7278_v50, %v2359_v25  ;;  %v2374_v44 = vmul.f32 %v7310_v13, %v2373_v26  ;;  %vm7401_vm1 = vcmp.eq.f32.partialorder %v2380_v36, 8.507059e+37  ;;  %v2389_v40 = vmul.f32 %v7320_v0, %v2388_v57  ;;  %v7425_v26 = vpop.eup %3808 }
 0x1ef   : > { %v2345_v20 = vadd.f32 %v7269_v34, %v2344_v12  ;;  %v2418_v15 = vsub.f32 1.0, %v2417_v56  ;;  %3810 = vrcp.f32 %v7264_v35  ;;  %vm2377_vm3 = vweird.f32 %v7310_v13 }
 0x1f0   : > { %v2404_v16 = vmul.f32 %v7329_v31, %v2403_v6  ;;  %v2410_v36 = vand.u32 2147483647, %v7254_v27  ;;  %3812 = vrcp.f32 %v7266_v63  ;;  %vm2392_vm4 = vweird.f32 %v7320_v0  ;;  %vm7443_vm11 = vmor %vm2376_vm6, %vm2377_vm3 }
 0x1f1   : > { %v2398_v12 = vor.u32 1.1754944e-38, %v2397_v54  ;;  %v2412_v45 = vand.u32 2147483648, %v7254_v27  ;;  %v2334_v56 = vsel %vm7387_vm14, %v7260_v32, %v2330_v28  ;;  %v2349_v6 = vsel %vm7396_vm0, %v7269_v34, %v2345_v20  ;;  %vm7451_vm13 = vmor %vm2391_vm12, %vm2392_vm4 }
 0x1f2   : > { %vm2407_vm5 = vweird.f32 %v7329_v31  ;;  %3814 = vrcp.f32 %v7271_v52  ;;  %v2364_v60 = vsel %vm7411_vm2, %v7278_v50, %v2360_v23  ;;  %v2375_v54 = vadd.f32 %v7310_v13, %v2374_v44 }
 0x1f3   : > { %v2390_v34 = vadd.f32 %v7320_v0, %v2389_v40  ;;  %v2419_v28 = vmul.f32 %v7343_v37, %v2418_v15  ;;  %v2405_v50 = vadd.f32 %v7329_v31, %v2404_v16  ;;  %vm7456_vm14 = vcmp.eq.f32.partialorder %v2410_v36, 8.507059e+37  ;;  %vm7466_vm0 = vmor %vm2406_vm15, %vm2407_vm5 }
 0x1f4   : > { %vm2421_vm6 = vweird.f32 %v7258_v39  ;;  %v2425_v41 = vand.u32 2147483647, %v7258_v39  ;;  %v2413_v15 = vor.u32 1.1754944e-38, %v2412_v45  ;;  %vm2422_vm12 = vweird.f32 %v7343_v37 }
 0x1f5   : > { %v7462_v23 = vpop.eup %3810  ;;  %v2432_v40 = vmul.f32 %v7425_v26, %v7262_v1  ;;  %3816 = vrcp.f32 %v7273_v43  ;;  %v7479_v44 = vsel %vm7360_vm8, %v7345_v51, %v2334_v56  ;;  %v7484_v27 = vsel %vm7364_vm9, %v7351_v38, %v2349_v6  ;;  %vm7506_vm8 = vmor %vm2421_vm6, %vm2422_vm12 }
 0x1f6   : > { %v7474_v48 = vpop.eup %3812  ;;  %v7488_v25 = vsel %vm7368_vm10, %v2368_v30, %v2364_v60  ;;  %v2427_v16 = vand.u32 2147483648, %v7258_v39  ;;  %v2379_v36 = vsel %vm7443_vm11, %v7310_v13, %v2375_v54  ;;  %v2394_v51 = vsel %vm7451_vm13, %v7320_v0, %v2390_v34 }
 0x1f7   : > { %v2420_v3 = vadd.f32 %v7343_v37, %v2419_v28  ;;  %3818 = vrcp.f32 %v7275_v29  ;;  %v2409_v53 = vsel %vm7466_vm0, %v7329_v31, %v2405_v50  ;;  %vm7510_vm9 = vcmp.eq.f32.partialorder %v2425_v41, 8.507059e+37 }
 0x1f8   : > { %v7499_v38 = vpop.eup %3814  ;;  %v2440_v0 = vand.u32 2147483647, %v7262_v1  ;;  %v2442_v18 = vand.u32 2147483648, %v7262_v1  ;;  %v2433_v45 = vsub.f32 1.0, %v2432_v40  ;;  %v2447_v56 = vmul.f32 %v7462_v23, %v7264_v35 }
 0x1f9   : > { %v2462_v31 = vmul.f32 %v7474_v48, %v7266_v63  ;;  %3820 = vrcp.f32 %v7280_v4  ;;  %v7524_v39 = vsel %vm7401_vm1, %v7378_v42, %v2379_v36  ;;  %v7528_v6 = vsel %vm7420_vm7, %v2398_v12, %v2394_v51 }
 0x1fa   : > { %10560 = vst [vmem:[#allocation98_spill] sm:$0xff] %v7524_v39  ;;  %v2428_v60 = vor.u32 1.1754944e-38, %v2427_v16  ;;  %v2457_v54 = vand.u32 2147483648, %v7264_v35  ;;  %v2424_v34 = vsel %vm7506_vm8, %v7343_v37, %v2420_v3  ;;  %vm2436_vm10 = vweird.f32 %v7262_v1 }
 0x1fb   : > { %10561 = vst [vmem:[#allocation99_spill] sm:$0xff] %v7528_v6  ;;  %v7531_v32 = vpop.eup %3816  ;;  %v2472_v28 = vand.u32 2147483648, %v7266_v63  ;;  %v2477_v42 = vmul.f32 %v7499_v38, %v7271_v52  ;;  %v7542_v46 = vsel %vm7456_vm14, %v2413_v15, %v2409_v53  ;;  %v2443_v57 = vor.u32 1.1754944e-38, %v2442_v18 }
 0x1fc   : > { %10562 = vst [vmem:[#allocation100_spill] sm:$0xff] %v7542_v46  ;;  %vm2451_vm15 = vweird.f32 %v7264_v35  ;;  %v2455_v12 = vand.u32 2147483647, %v7264_v35  ;;  %v2434_v37 = vmul.f32 %v7425_v26, %v2433_v45  ;;  %vm7549_vm1 = vcmp.eq.f32.partialorder %v2440_v0, 8.507059e+37 }
 0x1fd   : > { %v7546_v55 = vpop.eup %3818  ;;  %v2448_v41 = vsub.f32 1.0, %v2447_v56  ;;  %v2463_v58 = vsub.f32 1.0, %v2462_v31  ;;  %vm2466_vm2 = vweird.f32 %v7266_v63  ;;  %v7556_v20 = vsel %vm7510_vm9, %v2428_v60, %v2424_v34 }
 0x1fe   : > { %v7558_v15 = vor.u32 1.1754944e-38, %v2457_v54  ;;  %v2470_v40 = vand.u32 2147483647, %v7266_v63  ;;  %v2492_v16 = vmul.f32 %v7531_v32, %v7273_v43  ;;  %vm2437_vm3 = vweird.f32 %v7425_v26 }
 0x1ff   : > { %v7563_v36 = vpop.eup %3820  ;;  %v7566_v51 = vor.u32 1.1754944e-38, %v2472_v28  ;;  %v2478_v3 = vsub.f32 1.0, %v2477_v42  ;;  %vm2481_vm4 = vweird.f32 %v7271_v52  ;;  %vm2452_vm7 = vweird.f32 %v7462_v23  ;;  %vm7580_vm11 = vmor %vm2436_vm10, %vm2437_vm3 }
 0x200   : > { %v2485_v53 = vand.u32 2147483647, %v7271_v52  ;;  %v2487_v30 = vand.u32 2147483648, %v7271_v52  ;;  %v2507_v13 = vmul.f32 %v7546_v55, %v7275_v29  ;;  %v2435_v0 = vadd.f32 %v7425_v26, %v2434_v37  ;;  %vm7613_vm12 = vmor %vm2451_vm15, %vm2452_vm7 }
 0x201   : > { %v2449_v18 = vmul.f32 %v7462_v23, %v2448_v41  ;;  %v2464_v45 = vmul.f32 %v7474_v48, %v2463_v58  ;;  %vm2496_vm5 = vweird.f32 %v7273_v43  ;;  %vm7584_vm13 = vcmp.eq.f32.partialorder %v2455_v12, 8.507059e+37 }
 0x202   : > { %vm7588_vm14 = vcmp.eq.f32.partialorder %v2470_v40, 8.507059e+37  ;;  %v2493_v54 = vsub.f32 1.0, %v2492_v16  ;;  %v2500_v34 = vand.u32 2147483647, %v7273_v43  ;;  %v2522_v28 = vmul.f32 %v7563_v36, %v7280_v4 }
 0x203   : > { %3822 = vrcp.f32 %v7282_v11  ;;  %vm2467_vm6 = vweird.f32 %v7474_v48  ;;  %v2479_v1 = vmul.f32 %v7499_v38, %v2478_v3  ;;  %v2502_v42 = vand.u32 2147483648, %v7273_v43 }
 0x204   : > { %3824 = vrcp.f32 %v7284_v8  ;;  %vm7600_vm0 = vcmp.eq.f32.partialorder %v2485_v53, 8.507059e+37  ;;  %v2488_v37 = vor.u32 1.1754944e-38, %v2487_v30  ;;  %v2508_v41 = vsub.f32 1.0, %v2507_v13  ;;  %vm7621_vm9 = vmor %vm2466_vm2, %vm2467_vm6 }
 0x205   : > { %v2515_v58 = vand.u32 2147483647, %v7275_v29  ;;  %v2439_v40 = vsel %vm7580_vm11, %v7425_v26, %v2435_v0  ;;  %v2450_v16 = vadd.f32 %v7462_v23, %v2449_v18  ;;  %v2465_v53 = vadd.f32 %v7474_v48, %v2464_v45 }
 0x206   : > { %vm2482_vm8 = vweird.f32 %v7499_v38  ;;  %v2494_v26 = vmul.f32 %v7531_v32, %v2493_v54  ;;  %vm7626_vm10 = vcmp.eq.f32.partialorder %v2500_v34, 8.507059e+37  ;;  %v2523_v35 = vsub.f32 1.0, %v2522_v28 }
 0x207   : > { %3826 = vrcp.f32 %v7287_v7  ;;  %v2480_v0 = vadd.f32 %v7499_v38, %v2479_v1  ;;  %v2503_v18 = vor.u32 1.1754944e-38, %v2502_v42  ;;  %vm2511_vm15 = vweird.f32 %v7275_v29  ;;  %vm7642_vm2 = vmor %vm2481_vm4, %vm2482_vm8 }
 0x208   : > { %v2517_v63 = vand.u32 2147483648, %v7275_v29  ;;  %v7638_v56 = vsel %vm7549_vm1, %v2443_v57, %v2439_v40  ;;  %vm2497_vm3 = vweird.f32 %v7531_v32  ;;  %v2509_v34 = vmul.f32 %v7546_v55, %v2508_v41 }
 0x209   : > { %v7634_v45 = vpop.eup %3822  ;;  %10579 = vst [vmem:[#allocation101_spill] sm:$0xff] %v7638_v56  ;;  %vm7648_vm7 = vcmp.eq.f32.partialorder %v2515_v58, 8.507059e+37  ;;  %v2454_v57 = vsel %vm7613_vm12, %v7462_v23, %v2450_v16  ;;  %v2469_v52 = vsel %vm7621_vm9, %v7474_v48, %v2465_v53  ;;  %v2530_v50 = vand.u32 2147483647, %v7280_v4  ;;  %vm7671_vm4 = vmor %vm2496_vm5, %vm2497_vm3 }
 0x20a   : > { %v7652_v1 = vpop.eup %3824  ;;  %3828 = vrcp.f32 %v7289_v47  ;;  %v2495_v42 = vadd.f32 %v7531_v32, %v2494_v26  ;;  %vm2512_vm1 = vweird.f32 %v7546_v55  ;;  %v2524_v41 = vmul.f32 %v7563_v36, %v2523_v35 }
 0x20b   : > { %v2532_v58 = vand.u32 2147483648, %v7280_v4  ;;  %v2484_v23 = vsel %vm7642_vm2, %v7499_v38, %v2480_v0  ;;  %v2518_v40 = vor.u32 1.1754944e-38, %v2517_v63  ;;  %v2537_v16 = vmul.f32 %v7634_v45, %v7282_v11  ;;  %vm7699_vm5 = vmor %vm2511_vm15, %vm2512_vm1 }
 0x20c   : > { %3830 = vrcp.f32 %v7291_v17  ;;  %v2510_v53 = vadd.f32 %v7546_v55, %v2509_v34  ;;  %vm2526_vm11 = vweird.f32 %v7280_v4  ;;  %vm2527_vm6 = vweird.f32 %v7563_v36 }
 0x20d   : > { %v7678_v3 = vpop.eup %3826  ;;  %v2552_v43 = vmul.f32 %v7652_v1, %v7284_v8  ;;  %v7688_v38 = vsel %vm7584_vm13, %v7558_v15, %v2454_v57  ;;  %v7693_v30 = vsel %vm7588_vm14, %v7566_v51, %v2469_v52  ;;  %vm7703_vm12 = vcmp.eq.f32.partialorder %v2530_v50, 8.507059e+37  ;;  %vm7718_vm13 = vmor %vm2526_vm11, %vm2527_vm6 }
 0x20e   : > { %10586 = vst [vmem:[#allocation102_spill] sm:$0xff] %v7688_v38  ;;  %v2547_v15 = vand.u32 2147483648, %v7282_v11  ;;  %v7710_v31 = vsel %vm7600_vm0, %v2488_v37, %v2484_v23  ;;  %v2499_v51 = vsel %vm7671_vm4, %v7531_v32, %v2495_v42  ;;  %v2525_v29 = vadd.f32 %v7563_v36, %v2524_v41 }
 0x20f   : > { %10587 = vst [vmem:[#allocation103_spill] sm:$0xff] %v7693_v30  ;;  %v2533_v60 = vor.u32 1.1754944e-38, %v2532_v58  ;;  %v2538_v63 = vsub.f32 1.0, %v2537_v16  ;;  %v2545_v54 = vand.u32 2147483647, %v7282_v11  ;;  %v2567_v12 = vmul.f32 %v7678_v3, %v7287_v7 }
 0x210   : > { %10592 = vst [vmem:[#allocation104_spill] sm:$0xff] %v7710_v31  ;;  %v7716_v35 = vpop.eup %3828  ;;  %3832 = vrcp.f32 %v7293_v22  ;;  %v2514_v32 = vsel %vm7699_vm5, %v7546_v55, %v2510_v53  ;;  %vm2541_vm14 = vweird.f32 %v7282_v11  ;;  %v2553_v37 = vsub.f32 1.0, %v2552_v43 }
 0x211   : > { %v2560_v34 = vand.u32 2147483647, %v7284_v8  ;;  %v7735_v52 = vsel %vm7626_vm10, %v2503_v18, %v2499_v51  ;;  %v2548_v50 = vor.u32 1.1754944e-38, %v2547_v15  ;;  %vm2556_vm0 = vweird.f32 %v7284_v8 }
 0x212   : > { %v7731_v57 = vpop.eup %3830  ;;  %10595 = vst [vmem:[#allocation105_spill] sm:$0xff] %v7735_v52  ;;  %v2562_v42 = vand.u32 2147483648, %v7284_v8  ;;  %v2529_v55 = vsel %vm7718_vm13, %v7563_v36, %v2525_v29  ;;  %vm2571_vm8 = vweird.f32 %v7287_v7  ;;  %v2575_v41 = vand.u32 2147483647, %v7287_v7 }
 0x213   : > { %v2582_v58 = vmul.f32 %v7716_v35, %v7289_v47  ;;  %v7748_v13 = vsel %vm7648_vm7, %v2518_v40, %v2514_v32  ;;  %v2539_v18 = vmul.f32 %v7634_v45, %v2538_v63  ;;  %vm7751_vm9 = vcmp.eq.f32.partialorder %v2545_v54, 8.507059e+37 }
 0x214   : > { %10596 = vst [vmem:[#allocation106_spill] sm:$0xff] %v7748_v13  ;;  %v2568_v48 = vsub.f32 1.0, %v2567_v12  ;;  %v2577_v36 = vand.u32 2147483648, %v7287_v7  ;;  %v2554_v16 = vmul.f32 %v7652_v1, %v2553_v37  ;;  %vm7757_vm10 = vcmp.eq.f32.partialorder %v2560_v34, 8.507059e+37 }
 0x215   : > { %v2597_v28 = vmul.f32 %v7731_v57, %v7291_v17  ;;  %3834 = vrcp.f32 %v7295_v14  ;;  %v7768_v43 = vsel %vm7703_vm12, %v2533_v60, %v2529_v55  ;;  %vm2542_vm15 = vweird.f32 %v7634_v45 }
 0x216   : > { %v7764_v40 = vpop.eup %3832  ;;  %10601 = vst [vmem:[#allocation107_spill] sm:$0xff] %v7768_v43  ;;  %vm2557_vm2 = vweird.f32 %v7652_v1  ;;  %v2563_v4 = vor.u32 1.1754944e-38, %v2562_v42  ;;  %v2583_v15 = vsub.f32 1.0, %v2582_v58  ;;  %v2590_v51 = vand.u32 2147483647, %v7289_v47  ;;  %vm7784_vm7 = vmor %vm2541_vm14, %vm2542_vm15 }
 0x217   : > { %v2592_v29 = vand.u32 2147483648, %v7289_v47  ;;  %3836 = vrcp.f32 %v7297_v49  ;;  %v2540_v0 = vadd.f32 %v7634_v45, %v2539_v18  ;;  %v2569_v63 = vmul.f32 %v7678_v3, %v2568_v48  ;;  %vm7796_vm4 = vmor %vm2556_vm0, %vm2557_vm2 }
 0x218   : > { %vm7777_vm3 = vcmp.eq.f32.partialorder %v2575_v41, 8.507059e+37  ;;  %v2578_v60 = vor.u32 1.1754944e-38, %v2577_v36  ;;  %3838 = vrcp.f32 %v7299_v59  ;;  %v2555_v12 = vadd.f32 %v7652_v1, %v2554_v16 }
 0x219   : > { %vm2586_vm1 = vweird.f32 %v7289_v47  ;;  %v2598_v32 = vsub.f32 1.0, %v2597_v28  ;;  %v2612_v37 = vmul.f32 %v7764_v40, %v7293_v22  ;;  %vm2572_vm11 = vweird.f32 %v7678_v3 }
 0x21a   : > { %vm2601_vm6 = vweird.f32 %v7291_v17  ;;  %v2605_v11 = vand.u32 2147483647, %v7291_v17  ;;  %v2607_v42 = vand.u32 2147483648, %v7291_v17  ;;  %v2584_v41 = vmul.f32 %v7716_v35, %v2583_v15  ;;  %vm7827_vm13 = vmor %vm2571_vm8, %vm2572_vm11 }
 0x21b   : > { %v7804_v55 = vpop.eup %3834  ;;  %vm7807_vm5 = vcmp.eq.f32.partialorder %v2590_v51, 8.507059e+37  ;;  %v2593_v8 = vor.u32 1.1754944e-38, %v2592_v29  ;;  %v2622_v18 = vand.u32 2147483648, %v7293_v22  ;;  %v2544_v48 = vsel %vm7784_vm7, %v7634_v45, %v2540_v0 }
 0x21c   : > { %v2570_v36 = vadd.f32 %v7678_v3, %v2569_v63  ;;  %vm2587_vm12 = vweird.f32 %v7716_v35  ;;  %v2620_v16 = vand.u32 2147483647, %v7293_v22  ;;  %v2559_v15 = vsel %vm7796_vm4, %v7652_v1, %v2555_v12 }
 0x21d   : > { %v7818_v28 = vpop.eup %3836  ;;  %v2599_v45 = vmul.f32 %v7731_v57, %v2598_v32  ;;  %v2613_v29 = vsub.f32 1.0, %v2612_v37  ;;  %3840 = vrcp.f32 %v7301_v62  ;;  %vm7835_vm14 = vcmp.eq.f32.partialorder %v2605_v11, 8.507059e+37  ;;  %vm7859_vm15 = vmor %vm2586_vm1, %vm2587_vm12 }
 0x21e   : > { %v7833_v0 = vpop.eup %3838  ;;  %v2608_v1 = vor.u32 1.1754944e-38, %v2607_v42  ;;  %vm2616_vm0 = vweird.f32 %v7293_v22  ;;  %v2627_v7 = vmul.f32 %v7804_v55, %v7295_v14  ;;  %v7844_v54 = vsel %vm7751_vm9, %v2548_v50, %v2544_v48 }
 0x21f   : > { %10614 = vst [vmem:[#allocation108_spill] sm:$0xff] %v7844_v54  ;;  %v2585_v12 = vadd.f32 %v7716_v35, %v2584_v41  ;;  %vm2602_vm8 = vweird.f32 %v7731_v57  ;;  %v2623_v32 = vor.u32 1.1754944e-38, %v2622_v18  ;;  %v7850_v37 = vsel %vm7757_vm10, %v2563_v4, %v2559_v15 }
 0x220   : > { %10615 = vst [vmem:[#allocation109_spill] sm:$0xff] %v7850_v37  ;;  %v2574_v34 = vsel %vm7827_vm13, %v7678_v3, %v2570_v36  ;;  %v2637_v23 = vand.u32 2147483648, %v7295_v14  ;;  %v2642_v11 = vmul.f32 %v7818_v28, %v7297_v49  ;;  %v2600_v53 = vadd.f32 %v7731_v57, %v2599_v45  ;;  %vm7877_vm10 = vmor %vm2601_vm6, %vm2602_vm8 }
 0x221   : > { %v2614_v4 = vmul.f32 %v7764_v40, %v2613_v29  ;;  %vm7868_vm9 = vcmp.eq.f32.partialorder %v2620_v16, 8.507059e+37  ;;  %v2657_v47 = vmul.f32 %v7833_v0, %v7299_v59  ;;  %3842 = vrcp.f32 %v7312_v10 }
 0x222   : > { %v2628_v41 = vsub.f32 1.0, %v2627_v7  ;;  %vm2631_vm2 = vweird.f32 %v7295_v14  ;;  %v2635_v18 = vand.u32 2147483647, %v7295_v14  ;;  %3844 = vrcp.f32 %v7314_v5 }
 0x223   : > { %v7884_v48 = vpop.eup %3840  ;;  %v7888_v36 = vsel %vm7777_vm3, %v2578_v60, %v2574_v34  ;;  %v2589_v17 = vsel %vm7859_vm15, %v7716_v35, %v2585_v12  ;;  %vm2617_vm7 = vweird.f32 %v7764_v40  ;;  %v2652_v16 = vand.u32 2147483648, %v7297_v49 }
 0x224   : > { %10622 = vst [vmem:[#allocation110_spill] sm:$0xff] %v7888_v36  ;;  %v7895_v15 = vor.u32 1.1754944e-38, %v2637_v23  ;;  %v2643_v51 = vsub.f32 1.0, %v2642_v11  ;;  %vm2646_vm1 = vweird.f32 %v7297_v49  ;;  %v2650_v45 = vand.u32 2147483647, %v7297_v49  ;;  %vm7910_vm3 = vmor %vm2616_vm0, %vm2617_vm7 }
 0x225   : > { %v2604_v26 = vsel %vm7877_vm10, %v7731_v57, %v2600_v53  ;;  %v2615_v60 = vadd.f32 %v7764_v40, %v2614_v4  ;;  %v2658_v29 = vsub.f32 1.0, %v2657_v47  ;;  %3846 = vrcp.f32 %v7316_v33 }
 0x226   : > { %v7906_v35 = vsel %vm7807_vm5, %v2593_v8, %v2589_v17  ;;  %v2629_v12 = vmul.f32 %v7804_v55, %v2628_v41  ;;  %vm7915_vm4 = vcmp.eq.f32.partialorder %v2635_v18, 8.507059e+37  ;;  %vm2661_vm11 = vweird.f32 %v7299_v59 }
 0x227   : > { %10623 = vst [vmem:[#allocation111_spill] sm:$0xff] %v7906_v35  ;;  %v2672_v57 = vmul.f32 %v7884_v48, %v7301_v62  ;;  %v7922_v58 = vpop.eup %3842  ;;  %vm2632_vm6 = vweird.f32 %v7804_v55  ;;  %v2653_v22 = vor.u32 1.1754944e-38, %v2652_v16  ;;  %v2665_v8 = vand.u32 2147483647, %v7299_v59 }
 0x228   : > { %3848 = vrcp.f32 %v7318_v24  ;;  %v7927_v50 = vpop.eup %3844  ;;  %v7931_v23 = vsel %vm7835_vm14, %v2608_v1, %v2604_v26  ;;  %v2644_v11 = vmul.f32 %v7818_v28, %v2643_v51  ;;  %vm7934_vm5 = vcmp.eq.f32.partialorder %v2650_v45, 8.507059e+37  ;;  %vm7956_vm14 = vmor %vm2631_vm2, %vm2632_vm6 }
 0x229   : > { %10628 = vst [vmem:[#allocation112_spill] sm:$0xff] %v7931_v23  ;;  %v2667_v4 = vand.u32 2147483648, %v7299_v59  ;;  %vm2676_vm12 = vweird.f32 %v7301_v62  ;;  %v2619_v47 = vsel %vm7910_vm3, %v7764_v40, %v2615_v60  ;;  %v2659_v3 = vmul.f32 %v7833_v0, %v2658_v29 }
 0x22a   : > { %v2680_v63 = vand.u32 2147483647, %v7301_v62  ;;  %v2682_v1 = vand.u32 2147483648, %v7301_v62  ;;  %v2630_v41 = vadd.f32 %v7804_v55, %v2629_v12  ;;  %vm2647_vm13 = vweird.f32 %v7818_v28 }
 0x22b   : > { %v2673_v18 = vsub.f32 1.0, %v2672_v57  ;;  %v2687_v17 = vmul.f32 %v7922_v58, %v7312_v10  ;;  %v7950_v16 = vpop.eup %3846  ;;  %vm2662_vm0 = vweird.f32 %v7833_v0  ;;  %vm7961_vm8 = vcmp.eq.f32.partialorder %v2665_v8, 8.507059e+37  ;;  %vm7978_vm10 = vmor %vm2646_vm1, %vm2647_vm13 }
 0x22c   : > { %v2702_v45 = vmul.f32 %v7927_v50, %v7314_v5  ;;  %3850 = vrcp.f32 %v7322_v21  ;;  %v7970_v26 = vsel %vm7868_vm9, %v2623_v32, %v2619_v47  ;;  %v2645_v14 = vadd.f32 %v7818_v28, %v2644_v11  ;;  %vm7992_vm9 = vmor %vm2661_vm11, %vm2662_vm0 }
 0x22d   : > { %10635 = vst [vmem:[#allocation113_spill] sm:$0xff] %v7970_v26  ;;  %v2668_v60 = vor.u32 1.1754944e-38, %v2667_v4  ;;  %vm2691_vm15 = vweird.f32 %v7312_v10  ;;  %v2660_v12 = vadd.f32 %v7833_v0, %v2659_v3  ;;  %v2683_v57 = vor.u32 1.1754944e-38, %v2682_v1 }
 0x22e   : > { %v7974_v29 = vpop.eup %3848  ;;  %v2695_v42 = vand.u32 2147483647, %v7312_v10  ;;  %v2697_v32 = vand.u32 2147483648, %v7312_v10  ;;  %v2634_v8 = vsel %vm7956_vm14, %v7804_v55, %v2630_v41  ;;  %v2674_v11 = vmul.f32 %v7884_v48, %v2673_v18 }
 0x22f   : > { %vm7997_vm2 = vcmp.eq.f32.partialorder %v2680_v63, 8.507059e+37  ;;  %v2688_v47 = vsub.f32 1.0, %v2687_v17  ;;  %v2717_v3 = vmul.f32 %v7950_v16, %v7316_v33  ;;  %vm2677_vm7 = vweird.f32 %v7884_v48 }
 0x230   : > { %v2703_v55 = vsub.f32 1.0, %v2702_v45  ;;  %v2710_v1 = vand.u32 2147483647, %v7314_v5  ;;  %3852 = vrcp.f32 %v7324_v61  ;;  %v2649_v59 = vsel %vm7978_vm10, %v7818_v28, %v2645_v14 }
 0x231   : > { %v2712_v63 = vand.u32 2147483648, %v7314_v5  ;;  %v2732_v41 = vmul.f32 %v7974_v29, %v7318_v24  ;;  %3854 = vrcp.f32 %v7326_v9  ;;  %v8018_v17 = vsel %vm7915_vm4, %v7895_v15, %v2634_v8  ;;  %vm8040_vm4 = vmor %vm2676_vm12, %vm2677_vm7 }
 0x232   : > { %v8013_v18 = vpop.eup %3850  ;;  %10642 = vst [vmem:[#allocation114_spill] sm:$0xff] %v8018_v17  ;;  %v2664_v40 = vsel %vm7992_vm9, %v7833_v0, %v2660_v12  ;;  %vm2706_vm1 = vweird.f32 %v7314_v5  ;;  %3856 = vrcp.f32 %v7331_v2  ;;  %v2675_v28 = vadd.f32 %v7884_v48, %v2674_v11 }
 0x233   : > { %v2689_v45 = vmul.f32 %v7922_v58, %v2688_v47  ;;  %vm8027_vm3 = vcmp.eq.f32.partialorder %v2695_v42, 8.507059e+37  ;;  %v2718_v7 = vsub.f32 1.0, %v2717_v3  ;;  %v2725_v15 = vand.u32 2147483647, %v7316_v33 }
 0x234   : > { %v8034_v34 = vsel %vm7934_vm5, %v2653_v22, %v2649_v59  ;;  %v2698_v12 = vor.u32 1.1754944e-38, %v2697_v32  ;;  %v2704_v42 = vmul.f32 %v7927_v50, %v2703_v55  ;;  %v2727_v8 = vand.u32 2147483648, %v7316_v33 }
 0x235   : > { %10645 = vst [vmem:[#allocation115_spill] sm:$0xff] %v8034_v34  ;;  %vm2692_vm11 = vweird.f32 %v7922_v58  ;;  %vm8047_vm6 = vcmp.eq.f32.partialorder %v2710_v1, 8.507059e+37  ;;  %v2713_v22 = vor.u32 1.1754944e-38, %v2712_v63  ;;  %v2733_v53 = vsub.f32 1.0, %v2732_v41 }
 0x236   : > { %v2747_v62 = vmul.f32 %v8013_v18, %v7322_v21  ;;  %v8053_v11 = vpop.eup %3852  ;;  %v8057_v32 = vsel %vm7961_vm8, %v2668_v60, %v2664_v40  ;;  %vm2707_vm5 = vweird.f32 %v7927_v50  ;;  %vm2721_vm12 = vweird.f32 %v7316_v33  ;;  %vm8079_vm14 = vmor %vm2691_vm15, %vm2692_vm11 }
 0x237   : > { %10650 = vst [vmem:[#allocation116_spill] sm:$0xff] %v8057_v32  ;;  %v2740_v47 = vand.u32 2147483647, %v7318_v24  ;;  %v8062_v3 = vpop.eup %3854  ;;  %v2679_v55 = vsel %vm8040_vm4, %v7884_v48, %v2675_v28  ;;  %v2690_v1 = vadd.f32 %v7922_v58, %v2689_v45  ;;  %v2719_v59 = vmul.f32 %v7950_v16, %v2718_v7  ;;  %vm8088_vm8 = vmor %vm2706_vm1, %vm2707_vm5 }
 0x238   : > { %vm8069_vm13 = vcmp.eq.f32.partialorder %v2725_v15, 8.507059e+37  ;;  %v8073_v60 = vpop.eup %3856  ;;  %v2705_v48 = vadd.f32 %v7927_v50, %v2704_v42  ;;  %v2728_v41 = vor.u32 1.1754944e-38, %v2727_v8  ;;  %vm2736_vm0 = vweird.f32 %v7318_v24 }
 0x239   : > { %v2742_v40 = vand.u32 2147483648, %v7318_v24  ;;  %vm2722_vm10 = vweird.f32 %v7950_v16  ;;  %v2734_v10 = vmul.f32 %v7974_v29, %v2733_v53  ;;  %v2748_v45 = vsub.f32 1.0, %v2747_v62 }
 0x23a   : > { %v2762_v7 = vmul.f32 %v8053_v11, %v7324_v61  ;;  %v8098_v15 = vsel %vm7997_vm2, %v2683_v57, %v2679_v55  ;;  %vm8100_vm15 = vcmp.eq.f32.partialorder %v2740_v47, 8.507059e+37  ;;  %v2755_v5 = vand.u32 2147483647, %v7322_v21  ;;  %vm8119_vm2 = vmor %vm2721_vm12, %vm2722_vm10 }
 0x23b   : > { %10657 = vst [vmem:[#allocation117_spill] sm:$0xff] %v8098_v15  ;;  %v2777_v42 = vmul.f32 %v8062_v3, %v7326_v9  ;;  %v2694_v8 = vsel %vm8079_vm14, %v7922_v58, %v2690_v1  ;;  %v2720_v53 = vadd.f32 %v7950_v16, %v2719_v59  ;;  %vm2737_vm9 = vweird.f32 %v7974_v29 }
 0x23c   : > { %v2792_v57 = vmul.f32 %v8073_v60, %v7331_v2  ;;  %v2709_v4 = vsel %vm8088_vm8, %v7927_v50, %v2705_v48  ;;  %v2743_v47 = vor.u32 1.1754944e-38, %v2742_v40  ;;  %vm2751_vm7 = vweird.f32 %v7322_v21  ;;  %vm8134_vm1 = vmor %vm2736_vm0, %vm2737_vm9 }
 0x23d   : > { %v2757_v58 = vand.u32 2147483648, %v7322_v21  ;;  %v2735_v55 = vadd.f32 %v7974_v29, %v2734_v10  ;;  %v2749_v1 = vmul.f32 %v8013_v18, %v2748_v45  ;;  %v2763_v59 = vsub.f32 1.0, %v2762_v7 }
 0x23e   : > { %v2770_v63 = vand.u32 2147483647, %v7324_v61  ;;  %v8130_v50 = vsel %vm8027_vm3, %v2698_v12, %v2694_v8  ;;  %vm8138_vm4 = vcmp.eq.f32.partialorder %v2755_v5, 8.507059e+37  ;;  %v2772_v40 = vand.u32 2147483648, %v7324_v61 }
 0x23f   : > { %10662 = vst [vmem:[#allocation118_spill] sm:$0xff] %v8130_v50  ;;  %v2778_v28 = vsub.f32 1.0, %v2777_v42  ;;  %v2724_v10 = vsel %vm8119_vm2, %v7950_v16, %v2720_v53  ;;  %vm2752_vm3 = vweird.f32 %v8013_v18  ;;  %v2785_v14 = vand.u32 2147483647, %v7326_v9 }
 0x240   : > { %v2793_v24 = vsub.f32 1.0, %v2792_v57  ;;  %v8150_v12 = vsel %vm8047_vm6, %v2713_v22, %v2709_v4  ;;  %v2758_v45 = vor.u32 1.1754944e-38, %v2757_v58  ;;  %vm2766_vm11 = vweird.f32 %v7324_v61  ;;  %vm8170_vm6 = vmor %vm2751_vm7, %vm2752_vm3 }
 0x241   : > { %10667 = vst [vmem:[#allocation119_spill] sm:$0xff] %v8150_v12  ;;  %vm2781_vm5 = vweird.f32 %v7326_v9  ;;  %v2739_v7 = vsel %vm8134_vm1, %v7974_v29, %v2735_v55  ;;  %v2750_v16 = vadd.f32 %v8013_v18, %v2749_v1  ;;  %v2764_v5 = vmul.f32 %v8053_v11, %v2763_v59 }
 0x242   : > { %vm8159_vm12 = vcmp.eq.f32.partialorder %v2770_v63, 8.507059e+37  ;;  %v2787_v49 = vand.u32 2147483648, %v7326_v9  ;;  %v8166_v22 = vsel %vm8069_vm13, %v2728_v41, %v2724_v10  ;;  %v2779_v29 = vmul.f32 %v8062_v3, %v2778_v28 }
 0x243   : > { %10670 = vst [vmem:[#allocation120_spill] sm:$0xff] %v8166_v22  ;;  %v2800_v53 = vand.u32 2147483647, %v7331_v2  ;;  %v2802_v57 = vand.u32 2147483648, %v7331_v2  ;;  %vm2767_vm14 = vweird.f32 %v8053_v11  ;;  %v2773_v4 = vor.u32 1.1754944e-38, %v2772_v40 }
 0x244   : > { %vm8178_vm0 = vcmp.eq.f32.partialorder %v2785_v14, 8.507059e+37  ;;  %v2794_v51 = vmul.f32 %v8073_v60, %v2793_v24  ;;  %v8185_v21 = vsel %vm8100_vm15, %v2743_v47, %v2739_v7  ;;  %vm2782_vm13 = vweird.f32 %v8062_v3  ;;  %vm8197_vm9 = vmor %vm2766_vm11, %vm2767_vm14 }
 0x245   : > { %10675 = vst [vmem:[#allocation121_spill] sm:$0xff] %v8185_v21  ;;  %vm2796_vm8 = vweird.f32 %v7331_v2  ;;  %v2806_v41 = vmul.f32 1.0614054, %v7479_v44  ;;  %v2754_v58 = vsel %vm8170_vm6, %v8013_v18, %v2750_v16  ;;  %v2765_v55 = vadd.f32 %v8053_v11, %v2764_v5  ;;  %vm8209_vm2 = vmor %vm2781_vm5, %vm2782_vm13 }
 0x246   : > { %v2788_v1 = vor.u32 1.1754944e-38, %v2787_v49  ;;  %vm2797_vm10 = vweird.f32 %v8073_v60  ;;  %v2780_v47 = vadd.f32 %v8062_v3, %v2779_v29  ;;  %vm8202_vm15 = vcmp.eq.f32.partialorder %v2800_v53, 8.507059e+37 }
 0x247   : > { %v2803_v63 = vor.u32 1.1754944e-38, %v2802_v57  ;;  %v2807_v18 = vmul.f32 1.0614054, %v7484_v27  ;;  %v2795_v61 = vadd.f32 %v8073_v60, %v2794_v51  ;;  %v2808_v40 = vmul.f32 1.0614054, %v7488_v25  ;;  %vm8223_vm7 = vmor %vm2796_vm8, %vm2797_vm10 }
 0x248   : > { %v2809_v28 = vmul.f32 1.0614054, %v7524_v39  ;;  %v2810_v10 = vmul.f32 1.0614054, %v7528_v6  ;;  %v8219_v14 = vsel %vm8138_vm4, %v2758_v45, %v2754_v58  ;;  %v2811_v24 = vmul.f32 1.0614054, %v7542_v46 }
 0x249   : > { %10682 = vst [vmem:[#allocation122_spill] sm:$0xff] %v8219_v14  ;;  %v2812_v7 = vmul.f32 1.0614054, %v7556_v20  ;;  %v2813_v16 = vmul.f32 1.0614054, %v7638_v56  ;;  %v2769_v5 = vsel %vm8197_vm9, %v8053_v11, %v2765_v55  ;;  %v2784_v49 = vsel %vm8209_vm2, %v8062_v3, %v2780_v47 }
 0x24a   : > { %v2814_v48 = vmul.f32 1.0614054, %v7688_v38  ;;  %v2815_v45 = vmul.f32 1.0614054, %v7693_v30  ;;  %v2816_v2 = vmul.f32 1.0614054, %v7710_v31  ;;  %v2799_v11 = vsel %vm8223_vm7, %v8073_v60, %v2795_v61 }
 0x24b   : > { %v2817_v8 = vmul.f32 1.0614054, %v7735_v52  ;;  %v2818_v29 = vmul.f32 1.0614054, %v7748_v13  ;;  %v2819_v53 = vmul.f32 1.0614054, %v7768_v43  ;;  %v8250_v55 = vsel %vm8159_vm12, %v2773_v4, %v2769_v5 }
 0x24c   : > { %v2820_v57 = vmul.f32 1.0614054, %v7844_v54  ;;  %v2821_v51 = vmul.f32 1.0614054, %v7850_v37  ;;  %v2822_v58 = vmul.f32 1.0614054, %v7888_v36  ;;  %v8257_v33 = vsel %vm8178_vm0, %v2788_v1, %v2784_v49 }
 0x24d   : > { %10685 = vst [vmem:[#allocation123_spill] sm:$0xff] %v8250_v55  ;;  %v2823_v3 = vmul.f32 1.0614054, %v7906_v35  ;;  %v2824_v0 = vmul.f32 1.0614054, %v7931_v23  ;;  %v8264_v42 = vsel %vm8202_vm15, %v2803_v63, %v2799_v11 }
 0x24e   : > { %v2825_v47 = vmul.f32 1.0614054, %v7970_v26  ;;  %10686 = vst [vmem:[#allocation124_spill] sm:$0xff] %v8257_v33  ;;  %v2826_v60 = vmul.f32 1.0614054, %v8018_v17 }
 0x24f   : > { %v2827_v61 = vmul.f32 1.0614054, %v8034_v34  ;;  %v2828_v9 = vmul.f32 1.0614054, %v8057_v32  ;;  %10687 = vst [vmem:[#allocation125_spill] sm:$0xff] %v8264_v42 }
 0x250   : > { %v2829_v4 = vmul.f32 1.0614054, %v8098_v15  ;;  %v2830_v5 = vmul.f32 1.0614054, %v8130_v50  ;;  %v2831_v19 = vmul.f32 1.0614054, %v8150_v12 }
 0x251   : > { %v2832_v62 = vmul.f32 1.0614054, %v8166_v22  ;;  %v2833_v1 = vmul.f32 1.0614054, %v8185_v21  ;;  %v2834_v49 = vmul.f32 1.0614054, %v8219_v14 }
 0x252   : > { %v2835_v34 = vmul.f32 1.0614054, %v8250_v55  ;;  %v2836_v32 = vmul.f32 1.0614054, %v8257_v33  ;;  %v2838_v17 = vadd.f32 -1.4531521, %v2806_v41 }
 0x253   : > { %v2837_v59 = vmul.f32 1.0614054, %v8264_v42  ;;  %v2839_v63 = vadd.f32 -1.4531521, %v2807_v18  ;;  %v2840_v11 = vadd.f32 -1.4531521, %v2808_v40 }
 0x254   : > { %v2841_v15 = vadd.f32 -1.4531521, %v2809_v28  ;;  %v2842_v26 = vadd.f32 -1.4531521, %v2810_v10  ;;  %v2843_v50 = vadd.f32 -1.4531521, %v2811_v24  ;;  %v2870_v14 = vmul.f32 %v2838_v17, %v7479_v44 }
 0x255   : > { %v2844_v23 = vadd.f32 -1.4531521, %v2812_v7  ;;  %v2845_v12 = vadd.f32 -1.4531521, %v2813_v16  ;;  %v2846_v35 = vadd.f32 -1.4531521, %v2814_v48  ;;  %v2871_v41 = vmul.f32 %v2839_v63, %v7484_v27 }
 0x256   : > { %v2847_v22 = vadd.f32 -1.4531521, %v2815_v45  ;;  %v2848_v36 = vadd.f32 -1.4531521, %v2816_v2  ;;  %v2849_v21 = vadd.f32 -1.4531521, %v2817_v8  ;;  %v2872_v40 = vmul.f32 %v2840_v11, %v7488_v25 }
 0x257   : > { %v2850_v37 = vadd.f32 -1.4531521, %v2818_v29  ;;  %v2851_v55 = vadd.f32 -1.4531521, %v2819_v53  ;;  %v2852_v54 = vadd.f32 -1.4531521, %v2820_v57  ;;  %v2873_v7 = vmul.f32 %v2841_v15, %v7524_v39 }
 0x258   : > { %v2853_v33 = vadd.f32 -1.4531521, %v2821_v51  ;;  %v2854_v42 = vadd.f32 -1.4531521, %v2822_v58  ;;  %v2855_v18 = vadd.f32 -1.4531521, %v2823_v3  ;;  %v2874_v17 = vmul.f32 %v2842_v26, %v7528_v6 }
 0x259   : > { %v2856_v28 = vadd.f32 -1.4531521, %v2824_v0  ;;  %v2857_v10 = vadd.f32 -1.4531521, %v2825_v47  ;;  %v2858_v24 = vadd.f32 -1.4531521, %v2826_v60  ;;  %v2875_v53 = vmul.f32 %v2843_v50, %v7542_v46 }
 0x25a   : > { %v2859_v16 = vadd.f32 -1.4531521, %v2827_v61  ;;  %v2860_v48 = vadd.f32 -1.4531521, %v2828_v9  ;;  %v2861_v45 = vadd.f32 -1.4531521, %v2829_v4  ;;  %v2876_v3 = vmul.f32 %v2844_v23, %v7556_v20 }
 0x25b   : > { %v2862_v2 = vadd.f32 -1.4531521, %v2830_v5  ;;  %v2863_v8 = vadd.f32 -1.4531521, %v2831_v19  ;;  %v2864_v29 = vadd.f32 -1.4531521, %v2832_v62  ;;  %v2877_v60 = vmul.f32 %v2845_v12, %v7638_v56 }
 0x25c   : > { %v2865_v57 = vadd.f32 -1.4531521, %v2833_v1  ;;  %v2866_v51 = vadd.f32 -1.4531521, %v2834_v49  ;;  %v2867_v58 = vadd.f32 -1.4531521, %v2835_v34  ;;  %v2878_v15 = vmul.f32 %v2846_v35, %v7688_v38 }
 0x25d   : > { %v2868_v0 = vadd.f32 -1.4531521, %v2836_v32  ;;  %v2869_v47 = vadd.f32 -1.4531521, %v2837_v59  ;;  %v2879_v61 = vmul.f32 %v2847_v22, %v7693_v30  ;;  %v2880_v26 = vmul.f32 %v2848_v36, %v7710_v31  ;;  %v10688_v4 = vld [vmem:[#allocation108_spill] sm:$0xff]  ;;  %v10689_v5 = vld [vmem:[#allocation109_spill] sm:$0xff] }
 0x25e   : > { %v2881_v19 = vmul.f32 %v2849_v21, %v7735_v52  ;;  %v2882_v9 = vmul.f32 %v2850_v37, %v7748_v13  ;;  %v2883_v50 = vmul.f32 %v2851_v55, %v7768_v43  ;;  %v2884_v34 = vmul.f32 %v2852_v54, %v10688_v4  ;;  %v10690_v32 = vld [vmem:[#allocation110_spill] sm:$0xff]  ;;  %v10691_v1 = vld [vmem:[#allocation111_spill] sm:$0xff]  ;;  %v10692_v49 = vld [vmem:[#allocation112_spill] sm:$0xff] }
 0x25f   : > { %v2885_v23 = vmul.f32 %v2853_v33, %v10689_v5  ;;  %v2886_v62 = vmul.f32 %v2854_v42, %v10690_v32  ;;  %v2887_v12 = vmul.f32 %v2855_v18, %v10691_v1  ;;  %v2888_v35 = vmul.f32 %v2856_v28, %v10692_v49  ;;  %v10693_v59 = vld [vmem:[#allocation113_spill] sm:$0xff]  ;;  %v10694_v63 = vld [vmem:[#allocation114_spill] sm:$0xff]  ;;  %v10695_v11 = vld [vmem:[#allocation115_spill] sm:$0xff] }
 0x260   : > { %v2889_v22 = vmul.f32 %v2857_v10, %v10693_v59  ;;  %v2890_v36 = vmul.f32 %v2858_v24, %v10694_v63  ;;  %v2891_v21 = vmul.f32 %v2859_v16, %v10695_v11  ;;  %v10696_v52 = vld [vmem:[#allocation116_spill] sm:$0xff]  ;;  %v10697_v13 = vld [vmem:[#allocation117_spill] sm:$0xff]  ;;  %v2902_v43 = vadd.f32 1.4214138, %v2870_v14  ;;  %v10698_v54 = vld [vmem:[#allocation118_spill] sm:$0xff] }
 0x261   : > { %v2892_v37 = vmul.f32 %v2860_v48, %v10696_v52  ;;  %v2893_v55 = vmul.f32 %v2861_v45, %v10697_v13  ;;  %v2894_v4 = vmul.f32 %v2862_v2, %v10698_v54  ;;  %v10699_v33 = vld [vmem:[#allocation119_spill] sm:$0xff]  ;;  %v10700_v42 = vld [vmem:[#allocation120_spill] sm:$0xff]  ;;  %v2903_v18 = vadd.f32 1.4214138, %v2871_v41  ;;  %v10701_v1 = vld [vmem:[#allocation121_spill] sm:$0xff] }
 0x262   : > { %v2895_v5 = vmul.f32 %v2863_v8, %v10699_v33  ;;  %v2896_v32 = vmul.f32 %v2864_v29, %v10700_v42  ;;  %v2897_v28 = vmul.f32 %v2865_v57, %v10701_v1  ;;  %v10702_v49 = vld [vmem:[#allocation122_spill] sm:$0xff]  ;;  %v10703_v59 = vld [vmem:[#allocation123_spill] sm:$0xff]  ;;  %v2904_v63 = vadd.f32 1.4214138, %v2872_v40  ;;  %v10704_v16 = vld [vmem:[#allocation124_spill] sm:$0xff] }
 0x263   : > { %v2898_v10 = vmul.f32 %v2866_v51, %v10702_v49  ;;  %v2899_v24 = vmul.f32 %v2867_v58, %v10703_v59  ;;  %v2900_v11 = vmul.f32 %v2868_v0, %v10704_v16  ;;  %v10705_v48 = vld [vmem:[#allocation125_spill] sm:$0xff]  ;;  %v2905_v45 = vadd.f32 1.4214138, %v2873_v7 }
 0x264   : > { %v2901_v52 = vmul.f32 %v2869_v47, %v10705_v48  ;;  %v2906_v14 = vadd.f32 1.4214138, %v2874_v17  ;;  %v2907_v13 = vadd.f32 1.4214138, %v2875_v53  ;;  %v2908_v2 = vadd.f32 1.4214138, %v2876_v3 }
 0x265   : > { %v2909_v54 = vadd.f32 1.4214138, %v2877_v60  ;;  %v2934_v8 = vmul.f32 %v2902_v43, %v7479_v44  ;;  %v2910_v29 = vadd.f32 1.4214138, %v2878_v15  ;;  %v2911_v41 = vadd.f32 1.4214138, %v2879_v61 }
 0x266   : > { %v2912_v42 = vadd.f32 1.4214138, %v2880_v26  ;;  %v2935_v57 = vmul.f32 %v2903_v18, %v7484_v27  ;;  %v2913_v51 = vadd.f32 1.4214138, %v2881_v19  ;;  %v2914_v49 = vadd.f32 1.4214138, %v2882_v9 }
 0x267   : > { %v2915_v58 = vadd.f32 1.4214138, %v2883_v50  ;;  %v2936_v40 = vmul.f32 %v2904_v63, %v7488_v25  ;;  %v2916_v0 = vadd.f32 1.4214138, %v2884_v34  ;;  %v2917_v16 = vadd.f32 1.4214138, %v2885_v23 }
 0x268   : > { %v2918_v47 = vadd.f32 1.4214138, %v2886_v62  ;;  %v2937_v7 = vmul.f32 %v2905_v45, %v7524_v39  ;;  %v2919_v17 = vadd.f32 1.4214138, %v2887_v12  ;;  %v2920_v53 = vadd.f32 1.4214138, %v2888_v35 }
 0x269   : > { %v2921_v3 = vadd.f32 1.4214138, %v2889_v22  ;;  %v2938_v43 = vmul.f32 %v2906_v14, %v7528_v6  ;;  %v2922_v60 = vadd.f32 1.4214138, %v2890_v36  ;;  %v2923_v15 = vadd.f32 1.4214138, %v2891_v21 }
 0x26a   : > { %v2924_v61 = vadd.f32 1.4214138, %v2892_v37  ;;  %v2939_v26 = vmul.f32 %v2907_v13, %v7542_v46  ;;  %v2925_v19 = vadd.f32 1.4214138, %v2893_v55  ;;  %v2926_v9 = vadd.f32 1.4214138, %v2894_v4 }
 0x26b   : > { %v2927_v50 = vadd.f32 1.4214138, %v2895_v5  ;;  %v2940_v63 = vmul.f32 %v2908_v2, %v7556_v20  ;;  %v2928_v34 = vadd.f32 1.4214138, %v2896_v32  ;;  %v2929_v23 = vadd.f32 1.4214138, %v2897_v28 }
 0x26c   : > { %v2930_v62 = vadd.f32 1.4214138, %v2898_v10  ;;  %v2941_v18 = vmul.f32 %v2909_v54, %v7638_v56  ;;  %v2931_v12 = vadd.f32 1.4214138, %v2899_v24  ;;  %v2932_v35 = vadd.f32 1.4214138, %v2900_v11 }
 0x26d   : > { %v2933_v22 = vadd.f32 1.4214138, %v2901_v52  ;;  %v2942_v45 = vmul.f32 %v2910_v29, %v7688_v38  ;;  %v2943_v36 = vmul.f32 %v2911_v41, %v7693_v30  ;;  %v2944_v21 = vmul.f32 %v2912_v42, %v7710_v31  ;;  %v10706_v13 = vld [vmem:[#allocation105_spill] sm:$0xff]  ;;  %v10707_v4 = vld [vmem:[#allocation106_spill] sm:$0xff]  ;;  %v10708_v55 = vld [vmem:[#allocation107_spill] sm:$0xff] }
 0x26e   : > { %v2945_v37 = vmul.f32 %v2913_v51, %v10706_v13  ;;  %v2946_v5 = vmul.f32 %v2914_v49, %v10707_v4  ;;  %v2947_v14 = vmul.f32 %v2915_v58, %v10708_v55  ;;  %v10709_v32 = vld [vmem:[#allocation108_spill] sm:$0xff]  ;;  %v10710_v10 = vld [vmem:[#allocation109_spill] sm:$0xff]  ;;  %v10711_v54 = vld [vmem:[#allocation110_spill] sm:$0xff]  ;;  %v2966_v55 = vadd.f32 -0.28449672, %v2934_v8 }
 0x26f   : > { %v2948_v28 = vmul.f32 %v2916_v0, %v10709_v32  ;;  %v2949_v2 = vmul.f32 %v2917_v16, %v10710_v10  ;;  %v2950_v24 = vmul.f32 %v2918_v47, %v10711_v54  ;;  %v10712_v11 = vld [vmem:[#allocation111_spill] sm:$0xff]  ;;  %v10713_v56 = vld [vmem:[#allocation112_spill] sm:$0xff]  ;;  %v10714_v38 = vld [vmem:[#allocation113_spill] sm:$0xff]  ;;  %v2959_v16 = vmul.f32 %v2927_v50, %v10699_v33 }
 0x270   : > { %v2951_v52 = vmul.f32 %v2919_v17, %v10712_v11  ;;  %v2952_v29 = vmul.f32 %v2920_v53, %v10713_v56  ;;  %v2953_v41 = vmul.f32 %v2921_v3, %v10714_v38  ;;  %v10715_v30 = vld [vmem:[#allocation114_spill] sm:$0xff]  ;;  %v10716_v31 = vld [vmem:[#allocation115_spill] sm:$0xff]  ;;  %v10717_v13 = vld [vmem:[#allocation116_spill] sm:$0xff]  ;;  %v2967_v17 = vadd.f32 -0.28449672, %v2935_v57 }
 0x271   : > { %v2954_v42 = vmul.f32 %v2922_v60, %v10715_v30  ;;  %v2955_v51 = vmul.f32 %v2923_v15, %v10716_v31  ;;  %v2956_v49 = vmul.f32 %v2924_v61, %v10717_v13  ;;  %v10718_v4 = vld [vmem:[#allocation117_spill] sm:$0xff]  ;;  %v10719_v0 = vld [vmem:[#allocation118_spill] sm:$0xff]  ;;  %v10720_v47 = vld [vmem:[#allocation120_spill] sm:$0xff]  ;;  %v2961_v53 = vmul.f32 %v2929_v23, %v10701_v1 }
 0x272   : > { %v2957_v58 = vmul.f32 %v2925_v19, %v10718_v4  ;;  %v2958_v32 = vmul.f32 %v2926_v9, %v10719_v0  ;;  %v2960_v54 = vmul.f32 %v2928_v34, %v10720_v47  ;;  %v10721_v56 = vld [vmem:[#allocation122_spill] sm:$0xff]  ;;  %v2963_v60 = vmul.f32 %v2931_v12, %v10703_v59  ;;  %v10722_v15 = vld [vmem:[#allocation124_spill] sm:$0xff] }
 0x273   : > { %v2962_v3 = vmul.f32 %v2930_v62, %v10721_v56  ;;  %v2968_v30 = vadd.f32 -0.28449672, %v2936_v40  ;;  %v2964_v31 = vmul.f32 %v2932_v35, %v10722_v15  ;;  %v2965_v61 = vmul.f32 %v2933_v22, %v10705_v48 }
 0x274   : > { %v2969_v19 = vadd.f32 -0.28449672, %v2937_v7  ;;  %v2970_v8 = vadd.f32 -0.28449672, %v2938_v43  ;;  %v2971_v4 = vadd.f32 -0.28449672, %v2939_v26  ;;  %v2998_v50 = vmul.f32 %v2966_v55, %v7479_v44 }
 0x275   : > { %v2972_v9 = vadd.f32 -0.28449672, %v2940_v63  ;;  %v2973_v0 = vadd.f32 -0.28449672, %v2941_v18  ;;  %v2974_v34 = vadd.f32 -0.28449672, %v2942_v45  ;;  %v2999_v23 = vmul.f32 %v2967_v17, %v7484_v27 }
 0x276   : > { %v2975_v57 = vadd.f32 -0.28449672, %v2943_v36  ;;  %v2976_v47 = vadd.f32 -0.28449672, %v2944_v21  ;;  %v2977_v62 = vadd.f32 -0.28449672, %v2945_v37  ;;  %v3000_v40 = vmul.f32 %v2968_v30, %v7488_v25 }
 0x277   : > { %v2978_v56 = vadd.f32 -0.28449672, %v2946_v5  ;;  %v2979_v12 = vadd.f32 -0.28449672, %v2947_v14  ;;  %v2980_v35 = vadd.f32 -0.28449672, %v2948_v28  ;;  %v3001_v7 = vmul.f32 %v2969_v19, %v7524_v39 }
 0x278   : > { %v2981_v15 = vadd.f32 -0.28449672, %v2949_v2  ;;  %v2982_v22 = vadd.f32 -0.28449672, %v2950_v24  ;;  %v2983_v43 = vadd.f32 -0.28449672, %v2951_v52  ;;  %v3002_v18 = vmul.f32 %v2970_v8, %v7528_v6 }
 0x279   : > { %v2984_v26 = vadd.f32 -0.28449672, %v2952_v29  ;;  %v2985_v63 = vadd.f32 -0.28449672, %v2953_v41  ;;  %v2986_v45 = vadd.f32 -0.28449672, %v2954_v42  ;;  %v3003_v55 = vmul.f32 %v2971_v4, %v7542_v46 }
 0x27a   : > { %v2987_v36 = vadd.f32 -0.28449672, %v2955_v51  ;;  %v2988_v21 = vadd.f32 -0.28449672, %v2956_v49  ;;  %v2989_v37 = vadd.f32 -0.28449672, %v2957_v58  ;;  %v3004_v30 = vmul.f32 %v2972_v9, %v7556_v20 }
 0x27b   : > { %v2990_v5 = vadd.f32 -0.28449672, %v2958_v32  ;;  %v2991_v14 = vadd.f32 -0.28449672, %v2959_v16  ;;  %v2992_v28 = vadd.f32 -0.28449672, %v2960_v54 }
 0x27c   : > { %v2993_v2 = vadd.f32 -0.28449672, %v2961_v53  ;;  %v2994_v24 = vadd.f32 -0.28449672, %v2962_v3  ;;  %v10723_v17 = vld [vmem:[#allocation101_spill] sm:$0xff]  ;;  %v10724_v39 = vld [vmem:[#allocation102_spill] sm:$0xff]  ;;  %v3013_v3 = vmul.f32 %v2981_v15, %v10710_v10 }
 0x27d   : > { %v3005_v19 = vmul.f32 %v2973_v0, %v10723_v17  ;;  %v2995_v52 = vadd.f32 -0.28449672, %v2963_v60  ;;  %v2996_v29 = vadd.f32 -0.28449672, %v2964_v31  ;;  %v2997_v41 = vadd.f32 -0.28449672, %v2965_v61 }
 0x27e   : > { %v3006_v8 = vmul.f32 %v2974_v34, %v10724_v39  ;;  %v10725_v42 = vld [vmem:[#allocation103_spill] sm:$0xff]  ;;  %v10726_v49 = vld [vmem:[#allocation104_spill] sm:$0xff]  ;;  %v10727_v4 = vld [vmem:[#allocation105_spill] sm:$0xff]  ;;  %v3015_v31 = vmul.f32 %v2983_v43, %v10712_v11  ;;  %v3023_v15 = vmul.f32 %v2991_v14, %v10699_v33  ;;  %v3025_v43 = vmul.f32 %v2993_v2, %v10701_v1 }
 0x27f   : > { %v3007_v51 = vmul.f32 %v2975_v57, %v10725_v42  ;;  %v3008_v6 = vmul.f32 %v2976_v47, %v10726_v49  ;;  %v3009_v58 = vmul.f32 %v2977_v62, %v10727_v4  ;;  %v10728_v32 = vld [vmem:[#allocation106_spill] sm:$0xff]  ;;  %v10729_v46 = vld [vmem:[#allocation107_spill] sm:$0xff]  ;;  %v10730_v54 = vld [vmem:[#allocation108_spill] sm:$0xff]  ;;  %v3017_v57 = vmul.f32 %v2985_v63, %v10714_v38 }
 0x280   : > { %v3010_v16 = vmul.f32 %v2978_v56, %v10728_v32  ;;  %v3011_v9 = vmul.f32 %v2979_v12, %v10729_v46  ;;  %v3012_v53 = vmul.f32 %v2980_v35, %v10730_v54  ;;  %v10731_v0 = vld [vmem:[#allocation110_spill] sm:$0xff]  ;;  %v10732_v61 = vld [vmem:[#allocation112_spill] sm:$0xff]  ;;  %v10734_v49 = vld [vmem:[#allocation115_spill] sm:$0xff]  ;;  %v3020_v56 = vmul.f32 %v2988_v21, %v10717_v13 }
 0x281   : > { %v3014_v60 = vmul.f32 %v2982_v22, %v10731_v0  ;;  %v3016_v34 = vmul.f32 %v2984_v26, %v10732_v61  ;;  %v10733_v42 = vld [vmem:[#allocation114_spill] sm:$0xff]  ;;  %v3019_v62 = vmul.f32 %v2987_v36, %v10734_v49  ;;  %v10735_v32 = vld [vmem:[#allocation117_spill] sm:$0xff]  ;;  %v10737_v10 = vld [vmem:[#allocation120_spill] sm:$0xff]  ;;  %v3030_v11 = vadd.f32 0.2548296, %v2998_v50 }
 0x282   : > { %v3018_v47 = vmul.f32 %v2986_v45, %v10733_v42  ;;  %v3021_v12 = vmul.f32 %v2989_v37, %v10735_v32  ;;  %v10736_v46 = vld [vmem:[#allocation118_spill] sm:$0xff]  ;;  %v3024_v22 = vmul.f32 %v2992_v28, %v10737_v10  ;;  %v3027_v63 = vmul.f32 %v2995_v52, %v10703_v59  ;;  %v10739_v36 = vld [vmem:[#allocation124_spill] sm:$0xff] }
 0x283   : > { %v3022_v35 = vmul.f32 %v2990_v5, %v10736_v46  ;;  %v10738_v26 = vld [vmem:[#allocation122_spill] sm:$0xff]  ;;  %v3031_v45 = vadd.f32 0.2548296, %v2999_v23  ;;  %v3032_v42 = vadd.f32 0.2548296, %v3000_v40  ;;  %v3028_v49 = vmul.f32 %v2996_v29, %v10739_v36 }
 0x284   : > { %v3026_v61 = vmul.f32 %v2994_v24, %v10738_v26  ;;  %v3033_v21 = vadd.f32 0.2548296, %v3001_v7  ;;  %v3034_v13 = vadd.f32 0.2548296, %v3002_v18  ;;  %v3035_v37 = vadd.f32 0.2548296, %v3003_v55 }
 0x285   : > { %v3029_v5 = vmul.f32 %v2997_v41, %v10705_v48  ;;  %v3036_v46 = vadd.f32 0.2548296, %v3004_v30  ;;  %v3037_v14 = vadd.f32 0.2548296, %v3005_v19  ;;  %v3038_v33 = vadd.f32 0.2548296, %v3006_v8 }
 0x286   : > { %v3039_v28 = vadd.f32 0.2548296, %v3007_v51  ;;  %v3040_v10 = vadd.f32 0.2548296, %v3008_v6  ;;  %v3041_v2 = vadd.f32 0.2548296, %v3009_v58  ;;  %v8372_v50 = vmul.f32 %v3030_v11, %v7479_v44 }
 0x287   : > { %v3042_v24 = vadd.f32 0.2548296, %v3010_v16  ;;  %v3043_v52 = vadd.f32 0.2548296, %v3011_v9  ;;  %v3044_v23 = vadd.f32 0.2548296, %v3012_v53  ;;  %v8375_v40 = vmul.f32 %v3031_v45, %v7484_v27 }
 0x288   : > { %v3045_v7 = vadd.f32 0.2548296, %v3013_v3  ;;  %v3046_v18 = vadd.f32 0.2548296, %v3014_v60  ;;  %v3047_v55 = vadd.f32 0.2548296, %v3015_v31  ;;  %v8378_v29 = vmul.f32 %v3032_v42, %v7488_v25 }
 0x289   : > { %v3048_v30 = vadd.f32 0.2548296, %v3016_v34  ;;  %v3049_v19 = vadd.f32 0.2548296, %v3017_v57  ;;  %v3050_v41 = vadd.f32 0.2548296, %v3018_v47  ;;  %v8396_v34 = vmul.f32 %v3036_v46, %v7556_v20 }
 0x28a   : > { %v10740_v6 = vld [vmem:[#allocation98_spill] sm:$0xff]  ;;  %v3051_v44 = vadd.f32 0.2548296, %v3019_v62  ;;  %v3052_v11 = vadd.f32 0.2548296, %v3020_v56  ;;  %v10741_v58 = vld [vmem:[#allocation99_spill] sm:$0xff] }
 0x28b   : > { %v8381_v8 = vmul.f32 %v3033_v21, %v10740_v6  ;;  %v3053_v51 = vadd.f32 0.2548296, %v3021_v12  ;;  %v8384_v16 = vmul.f32 %v3034_v13, %v10741_v58  ;;  %v3054_v27 = vadd.f32 0.2548296, %v3022_v35  ;;  %v10742_v3 = vld [vmem:[#allocation100_spill] sm:$0xff]  ;;  %v10743_v62 = vld [vmem:[#allocation65_spill] sm:$0xff] }
 0x28c   : > { %v3055_v9 = vadd.f32 0.2548296, %v3023_v15  ;;  %v3056_v53 = vadd.f32 0.2548296, %v3024_v22  ;;  %v8387_v60 = vmul.f32 %v3035_v37, %v10742_v3  ;;  %v8389_v25 = vadd.f32 0.2548296, %v3025_v43 }
 0x28d   : > { %v8391_v42 = vadd.f32 0.2548296, %v3026_v61  ;;  %v8393_v31 = vadd.f32 0.2548296, %v3027_v63  ;;  %v8398_v57 = vadd.f32 0.2548296, %v3028_v49  ;;  %v8403_v13 = vmul.f32 %v3037_v14, %v10723_v17 }
 0x28e   : > { %v8400_v47 = vadd.f32 0.2548296, %v3029_v5  ;;  %v3094_v56 = vsub.f32 0.0, %v10743_v62  ;;  %v8407_v12 = vmul.f32 %v3038_v33, %v10724_v39  ;;  %v10744_v35 = vld [vmem:[#allocation103_spill] sm:$0xff]  ;;  %v10745_v15 = vld [vmem:[#allocation104_spill] sm:$0xff]  ;;  %v10747_v46 = vld [vmem:[#allocation66_spill] sm:$0xff]  ;;  %v8417_v49 = vmul.f32 %v3041_v2, %v10727_v4 }
 0x28f   : > { %v8410_v61 = vmul.f32 %v3039_v28, %v10744_v35  ;;  %v8413_v22 = vmul.f32 %v3040_v10, %v10745_v15  ;;  %v3095_v20 = vsub.f32 0.0, %v10747_v46  ;;  %v10749_v43 = vld [vmem:[#allocation106_spill] sm:$0xff]  ;;  %v10751_v17 = vld [vmem:[#allocation107_spill] sm:$0xff]  ;;  %v8427_v33 = vmul.f32 %v3044_v23, %v10730_v54  ;;  %v10755_v37 = vld [vmem:[#allocation109_spill] sm:$0xff] }
 0x290   : > { %10748 = vst [vmem:[#allocation123_spill] sm:$0xff] %v8417_v49  ;;  %v8420_v63 = vmul.f32 %v3042_v24, %v10749_v43  ;;  %v8423_v45 = vmul.f32 %v3043_v52, %v10751_v17  ;;  %v10753_v21 = vld [vmem:[#allocation67_spill] sm:$0xff]  ;;  %v8430_v5 = vmul.f32 %v3045_v7, %v10755_v37  ;;  %v8433_v10 = vmul.f32 %v3046_v18, %v10731_v0  ;;  %v10758_v14 = vld [vmem:[#allocation68_spill] sm:$0xff]  ;;  %v10763_v52 = vld [vmem:[#allocation69_spill] sm:$0xff] }
 0x291   : > { %10746 = vst [vmem:[#allocation121_spill] sm:$0xff] %v8413_v22  ;;  %v3096_v39 = vsub.f32 0.0, %v10753_v21  ;;  %v3097_v4 = vsub.f32 0.0, %v10758_v14  ;;  %v10759_v28 = vld [vmem:[#allocation111_spill] sm:$0xff]  ;;  %v10761_v24 = vld [vmem:[#allocation112_spill] sm:$0xff]  ;;  %v3098_v58 = vsub.f32 0.0, %v10763_v52  ;;  %v3126_v3 = vmul.f32 %v3094_v56, %v10743_v62 }
 0x292   : > { %10750 = vst [vmem:[#allocation125_spill] sm:$0xff] %v8420_v63  ;;  %v8437_v2 = vmul.f32 %v3047_v55, %v10759_v28  ;;  %v8440_v6 = vmul.f32 %v3048_v30, %v10761_v24  ;;  %v8445_v54 = vmul.f32 %v3049_v19, %v10714_v38  ;;  %v10765_v23 = vld [vmem:[#allocation114_spill] sm:$0xff]  ;;  %v3127_v35 = vmul.f32 %v3095_v20, %v10747_v46  ;;  %v10768_v15 = vld [vmem:[#allocation115_spill] sm:$0xff]  ;;  %v10770_v43 = vld [vmem:[#allocation116_spill] sm:$0xff] }
 0x293   : > { %10752 = vst [vmem:[#allocation113_spill] sm:$0xff] %v8423_v45  ;;  %v8448_v7 = vmul.f32 %v3050_v41, %v10765_v23  ;;  %v10767_v0 = vld [vmem:[#allocation70_spill] sm:$0xff]  ;;  %v8453_v55 = vmul.f32 %v3051_v44, %v10768_v15  ;;  %v8456_v30 = vmul.f32 %v3052_v11, %v10770_v43  ;;  %v10772_v17 = vld [vmem:[#allocation71_spill] sm:$0xff]  ;;  %v3128_v62 = vmul.f32 %v3096_v39, %v10753_v21  ;;  %v10776_v56 = vld [vmem:[#allocation76_spill] sm:$0xff] }
 0x294   : > { %10754 = vst [vmem:[#allocation101_spill] sm:$0xff] %v8427_v33  ;;  %v3099_v18 = vsub.f32 0.0, %v10767_v0  ;;  %v3100_v37 = vsub.f32 0.0, %v10772_v17  ;;  %v8461_v38 = vmul.f32 %v3053_v51, %v10735_v32  ;;  %v10774_v19 = vld [vmem:[#allocation118_spill] sm:$0xff]  ;;  %v3101_v28 = vsub.f32 0.0, %v10776_v56  ;;  %v10777_v20 = vld [vmem:[#allocation119_spill] sm:$0xff] }
 0x295   : > { %10756 = vst [vmem:[#allocation102_spill] sm:$0xff] %v8430_v5  ;;  %v8464_v41 = vmul.f32 %v3054_v27, %v10774_v19  ;;  %v3129_v46 = vmul.f32 %v3097_v4, %v10758_v14  ;;  %v8469_v44 = vmul.f32 %v3055_v9, %v10777_v20  ;;  %v10779_v24 = vld [vmem:[#allocation72_spill] sm:$0xff]  ;;  %v3130_v23 = vmul.f32 %v3098_v58, %v10763_v52  ;;  %v10782_v32 = vld [vmem:[#allocation73_spill] sm:$0xff]  ;;  %v10783_v19 = vld [vmem:[#allocation74_spill] sm:$0xff] }
 0x296   : > { %10757 = vst [vmem:[#allocation105_spill] sm:$0xff] %v8433_v10  ;;  %v3102_v11 = vsub.f32 0.0, %v10779_v24  ;;  %v3158_v15 = vmul.f32 1.442695, %v3126_v3  ;;  %v10780_v43 = vld [vmem:[#allocation120_spill] sm:$0xff]  ;;  %v3103_v51 = vsub.f32 0.0, %v10782_v32  ;;  %v3131_v27 = vmul.f32 %v3099_v18, %v10767_v0 }
 0x297   : > { %10760 = vst [vmem:[#allocation108_spill] sm:$0xff] %v8437_v2  ;;  %v8474_v21 = vmul.f32 %v3056_v53, %v10780_v43  ;;  %v3160_v39 = vmul.f32 1.442695, %v3127_v35  ;;  %v3132_v9 = vmul.f32 %v3100_v37, %v10772_v17  ;;  %v3162_v4 = vmul.f32 1.442695, %v3128_v62  ;;  %v10785_v20 = vld [vmem:[#allocation2_spill] sm:$0xff] }
 0x298   : > { %10762 = vst [vmem:[#allocation110_spill] sm:$0xff] %v8440_v6  ;;  %v3133_v58 = vmul.f32 %v3101_v28, %v10776_v56  ;;  %v3164_v53 = vmul.f32 1.442695, %v3129_v46  ;;  %v10787_v3 = vld [vmem:[#allocation78_spill] sm:$0xff]  ;;  %3858 = vpow2.f32 %v3158_v15  ;;  %v3166_v0 = vmul.f32 1.442695, %v3130_v23 }
 0x299   : > { %10764 = vst [vmem:[#allocation117_spill] sm:$0xff] %v8445_v54  ;;  %v3108_v43 = vsub.f32 0.0, %v10787_v3  ;;  %v10788_v18 = vld [vmem:[#allocation81_spill] sm:$0xff]  ;;  %3860 = vpow2.f32 %v3160_v39  ;;  %v3168_v17 = vmul.f32 1.442695, %v3131_v27  ;;  %v10789_v37 = vld [vmem:[#allocation82_spill] sm:$0xff] }
 0x29a   : > { %10766 = vst [vmem:[#allocation122_spill] sm:$0xff] %v8448_v7  ;;  %v3109_v35 = vsub.f32 0.0, %v10788_v18  ;;  %v3110_v62 = vsub.f32 0.0, %v10789_v37  ;;  %3862 = vpow2.f32 %v3162_v4  ;;  %v3170_v54 = vmul.f32 1.442695, %v3132_v9  ;;  %v10790_v56 = vld [vmem:[#allocation83_spill] sm:$0xff] }
 0x29b   : > { %10769 = vst [vmem:[#allocation124_spill] sm:$0xff] %v8453_v55  ;;  %v3135_v55 = vmul.f32 %v3103_v51, %v10782_v32  ;;  %v3111_v28 = vsub.f32 0.0, %v10790_v56  ;;  %3864 = vpow2.f32 %v3164_v53  ;;  %v10792_v51 = vld [vmem:[#allocation85_spill] sm:$0xff]  ;;  %v10793_v9 = vld [vmem:[#allocation86_spill] sm:$0xff]  ;;  %v10794_v53 = vld [vmem:[#allocation87_spill] sm:$0xff] }
 0x29c   : > { %10771 = vst [vmem:[#allocation98_spill] sm:$0xff] %v8456_v30  ;;  %v10786_v30 = vld [vmem:[#allocation77_spill] sm:$0xff]  ;;  %3866 = vpow2.f32 %v3166_v0  ;;  %v3113_v27 = vsub.f32 0.0, %v10792_v51  ;;  %v3114_v4 = vsub.f32 0.0, %v10793_v9 }
 0x29d   : > { %10773 = vst [vmem:[#allocation99_spill] sm:$0xff] %v8461_v38  ;;  %v10784_v38 = vld [vmem:[#allocation75_spill] sm:$0xff]  ;;  %v3107_v52 = vsub.f32 0.0, %v10786_v30  ;;  %3868 = vpow2.f32 %v3168_v17 }
 0x29e   : > { %10775 = vst [vmem:[#allocation100_spill] sm:$0xff] %v8464_v41  ;;  %v3104_v41 = vsub.f32 0.0, %v10783_v19  ;;  %v3105_v14 = vsub.f32 0.0, %v10784_v38  ;;  %3870 = vpow2.f32 %v3170_v54  ;;  %v10796_v54 = vld [vmem:[#allocation89_spill] sm:$0xff] }
 0x29f   : > { %10778 = vst [vmem:[#allocation65_spill] sm:$0xff] %v8469_v44  ;;  %v3106_v44 = vsub.f32 0.0, %v10785_v20  ;;  %v3139_v39 = vmul.f32 %v3107_v52, %v10786_v30  ;;  %v10795_v30 = vld [vmem:[#allocation88_spill] sm:$0xff]  ;;  %v3142_v52 = vmul.f32 %v3110_v62, %v10789_v37  ;;  %v10798_v37 = vld [vmem:[#allocation91_spill] sm:$0xff] }
 0x2a0   : > { %10781 = vst [vmem:[#allocation103_spill] sm:$0xff] %v8474_v21  ;;  %v3134_v21 = vmul.f32 %v3102_v11, %v10779_v24  ;;  %v3136_v7 = vmul.f32 %v3104_v41, %v10783_v19  ;;  %v3137_v46 = vmul.f32 %v3105_v14, %v10784_v38  ;;  %v3172_v24 = vmul.f32 1.442695, %v3133_v58  ;;  %v10791_v11 = vld [vmem:[#allocation84_spill] sm:$0xff]  ;;  %v8496_v19 = vpop.eup %3858 }
 0x2a1   : > { %v3112_v23 = vsub.f32 0.0, %v10791_v11  ;;  %v3138_v15 = vmul.f32 %v3106_v44, %v10785_v20  ;;  %v3176_v41 = vmul.f32 1.442695, %v3135_v55  ;;  %v3140_v38 = vmul.f32 %v3108_v43, %v10787_v3  ;;  %v8500_v58 = vpop.eup %3860 }
 0x2a2   : > { %v3174_v32 = vmul.f32 1.442695, %v3134_v21  ;;  %v3178_v14 = vmul.f32 1.442695, %v3136_v7  ;;  %v3115_v44 = vsub.f32 0.0, %v10794_v53  ;;  %v3141_v21 = vmul.f32 %v3109_v35, %v10788_v18  ;;  %v8504_v0 = vpop.eup %3862  ;;  %v10797_v18 = vld [vmem:[#allocation90_spill] sm:$0xff] }
 0x2a3   : > { %3872 = vpow2.f32 %v3172_v24  ;;  %v3180_v20 = vmul.f32 1.442695, %v3137_v46  ;;  %v3116_v55 = vsub.f32 0.0, %v10795_v30  ;;  %v3182_v17 = vmul.f32 1.442695, %v3138_v15  ;;  %v8508_v6 = vpop.eup %3864 }
 0x2a4   : > { %3874 = vpow2.f32 %v3174_v32  ;;  %v3117_v7 = vsub.f32 0.0, %v10796_v54  ;;  %v3143_v3 = vmul.f32 %v3111_v28, %v10790_v56  ;;  %v3184_v43 = vmul.f32 1.442695, %v3139_v39  ;;  %v8512_v2 = vpop.eup %3866  ;;  %v10799_v56 = vld [vmem:[#allocation92_spill] sm:$0xff] }
 0x2a5   : > { %3876 = vpow2.f32 %v3176_v41  ;;  %v3118_v35 = vsub.f32 0.0, %v10797_v18  ;;  %v3144_v46 = vmul.f32 %v3112_v23, %v10791_v11  ;;  %v3186_v24 = vmul.f32 1.442695, %v3140_v38  ;;  %v8516_v10 = vpop.eup %3868  ;;  %v10800_v11 = vld [vmem:[#allocation93_spill] sm:$0xff] }
 0x2a6   : > { %3878 = vpow2.f32 %v3178_v14  ;;  %v3119_v62 = vsub.f32 0.0, %v10798_v37  ;;  %v3145_v15 = vmul.f32 %v3113_v27, %v10792_v51  ;;  %v3188_v32 = vmul.f32 1.442695, %v3141_v21  ;;  %v8520_v5 = vpop.eup %3870  ;;  %v10801_v51 = vld [vmem:[#allocation94_spill] sm:$0xff] }
 0x2a7   : > { %3880 = vpow2.f32 %v3180_v20  ;;  %v3120_v28 = vsub.f32 0.0, %v10799_v56  ;;  %v3146_v39 = vmul.f32 %v3114_v4, %v10793_v9  ;;  %v3190_v41 = vmul.f32 1.442695, %v3142_v52  ;;  %v10803_v9 = vld [vmem:[#allocation95_spill] sm:$0xff] }
 0x2a8   : > { %3882 = vpow2.f32 %v3182_v17  ;;  %v3121_v23 = vsub.f32 0.0, %v10800_v11  ;;  %v3147_v38 = vmul.f32 %v3115_v44, %v10794_v53  ;;  %v3192_v14 = vmul.f32 1.442695, %v3143_v3  ;;  %v10804_v53 = vld [vmem:[#allocation96_spill] sm:$0xff] }
 0x2a9   : > { %v8524_v33 = vpop.eup %3872  ;;  %3884 = vpow2.f32 %v3184_v43  ;;  %v3122_v27 = vsub.f32 0.0, %v10801_v51  ;;  %v3148_v21 = vmul.f32 %v3116_v55, %v10795_v30  ;;  %v3194_v20 = vmul.f32 1.442695, %v3144_v46  ;;  %v10805_v30 = vld [vmem:[#allocation97_spill] sm:$0xff] }
 0x2aa   : > { %v8528_v45 = vpop.eup %3874  ;;  %3886 = vpow2.f32 %v3186_v24  ;;  %v3123_v4 = vsub.f32 0.0, %v10803_v9  ;;  %v3149_v52 = vmul.f32 %v3117_v7, %v10796_v54  ;;  %v3196_v17 = vmul.f32 1.442695, %v3145_v15 }
 0x2ab   : > { %v8532_v63 = vpop.eup %3876  ;;  %3888 = vpow2.f32 %v3188_v32  ;;  %v3124_v44 = vsub.f32 0.0, %v10804_v53  ;;  %v3150_v3 = vmul.f32 %v3118_v35, %v10797_v18  ;;  %v3198_v43 = vmul.f32 1.442695, %v3146_v39 }
 0x2ac   : > { %10802 = vst [vmem:[#allocation104_spill] sm:$0xff] %v8532_v63  ;;  %v8536_v49 = vpop.eup %3878  ;;  %3890 = vpow2.f32 %v3190_v41  ;;  %v3125_v55 = vsub.f32 0.0, %v10805_v30  ;;  %v3151_v46 = vmul.f32 %v3119_v62, %v10798_v37  ;;  %v3200_v24 = vmul.f32 1.442695, %v3147_v38 }
 0x2ad   : > { %v8540_v22 = vpop.eup %3880  ;;  %3892 = vpow2.f32 %v3192_v14  ;;  %v8546_v54 = vmul.f32 %v8389_v25, %v10701_v1  ;;  %v3152_v7 = vmul.f32 %v3120_v28, %v10799_v56  ;;  %v3202_v15 = vmul.f32 1.442695, %v3148_v21 }
 0x2ae   : > { %v3883_v63 = vpop.eup %3882  ;;  %3894 = vpow2.f32 %v3194_v20  ;;  %v8551_v35 = vmul.f32 %v8391_v42, %v10738_v26  ;;  %v3153_v32 = vmul.f32 %v3121_v23, %v10800_v11  ;;  %v3204_v37 = vmul.f32 1.442695, %v3149_v52 }
 0x2af   : > { %v3885_v18 = vpop.eup %3884  ;;  %3896 = vpow2.f32 %v3196_v17  ;;  %v3154_v39 = vmul.f32 %v3122_v27, %v10801_v51  ;;  %v3155_v41 = vmul.f32 %v3123_v4, %v10803_v9  ;;  %v3206_v1 = vmul.f32 1.442695, %v3150_v3  ;;  %v10810_v17 = vld [vmem:[#allocation123_spill] sm:$0xff] }
 0x2b0   : > { %v3887_v62 = vpop.eup %3886  ;;  %3898 = vpow2.f32 %v3198_v43  ;;  %v3156_v56 = vmul.f32 %v3124_v44, %v10804_v53  ;;  %v3157_v28 = vmul.f32 %v3125_v55, %v10805_v30  ;;  %v3208_v38 = vmul.f32 1.442695, %v3151_v46  ;;  %v10818_v46 = vld [vmem:[#allocation102_spill] sm:$0xff] }
 0x2b1   : > { %v3889_v25 = vpop.eup %3888  ;;  %3900 = vpow2.f32 %v3200_v24  ;;  %v8560_v42 = vmul.f32 %v8393_v31, %v10703_v59  ;;  %v3210_v11 = vmul.f32 1.442695, %v3152_v7  ;;  %v8564_v23 = vmul.f32 %v8496_v19, %v8372_v50 }
 0x2b2   : > { %v3891_v26 = vpop.eup %3890  ;;  %3902 = vpow2.f32 %v3202_v15  ;;  %v8568_v51 = vmul.f32 %v8398_v57, %v10739_v36  ;;  %v3212_v27 = vmul.f32 1.442695, %v3153_v32  ;;  %v8572_v21 = vmul.f32 %v8500_v58, %v8375_v40  ;;  %v10861_v15 = vld [vmem:[#allocation5_spill] sm:$0xff] }
 0x2b3   : > { %v3893_v14 = vpop.eup %3892  ;;  %3904 = vpow2.f32 %v3204_v37  ;;  %v8576_v59 = vmul.f32 %v8400_v47, %v10705_v48  ;;  %v3214_v31 = vmul.f32 1.442695, %v3154_v39  ;;  %v3216_v50 = vmul.f32 1.442695, %v3155_v41 }
 0x2b4   : > { %v3895_v20 = vpop.eup %3894  ;;  %3906 = vpow2.f32 %v3206_v1  ;;  %v3218_v9 = vmul.f32 1.442695, %v3156_v56  ;;  %v3220_v4 = vmul.f32 1.442695, %v3157_v28  ;;  %v8580_v36 = vmul.f32 %v8504_v0, %v8378_v29  ;;  %v10820_v56 = vld [vmem:[#allocation105_spill] sm:$0xff] }
 0x2b5   : > { %v3897_v19 = vpop.eup %3896  ;;  %3908 = vpow2.f32 %v3208_v38  ;;  %v8584_v40 = vmul.f32 %v8508_v6, %v8381_v8  ;;  %v8588_v48 = vmul.f32 %v8512_v2, %v8384_v16  ;;  %v9686_v47 = vsub.f32 1.0, %v8564_v23  ;;  %v10806_v6 = vld [vmem:[#allocation104_spill] sm:$0xff] }
 0x2b6   : > { %v3899_v57 = vpop.eup %3898  ;;  %3910 = vpow2.f32 %v3210_v11  ;;  %v8593_v52 = vmul.f32 %v8516_v10, %v8387_v60  ;;  %v8597_v29 = vmul.f32 %v8520_v5, %v8396_v34  ;;  %v9687_v0 = vsub.f32 1.0, %v8572_v21  ;;  %v10808_v34 = vld [vmem:[#allocation121_spill] sm:$0xff]  ;;  %v10824_v11 = vld [vmem:[#allocation110_spill] sm:$0xff] }
 0x2b7   : > { %v3901_v58 = vpop.eup %3900  ;;  %3912 = vpow2.f32 %v3212_v27  ;;  %v8602_v16 = vmul.f32 %v8524_v33, %v8403_v13  ;;  %v8606_v2 = vmul.f32 %v8528_v45, %v8407_v12  ;;  %v8610_v60 = vmul.f32 %v10806_v6, %v8410_v61  ;;  %v10812_v13 = vld [vmem:[#allocation125_spill] sm:$0xff]  ;;  %v10828_v6 = vld [vmem:[#allocation122_spill] sm:$0xff] }
 0x2b8   : > { %v3903_v8 = vpop.eup %3902  ;;  %3914 = vpow2.f32 %v3214_v31  ;;  %v8614_v5 = vmul.f32 %v8536_v49, %v10808_v34  ;;  %v8618_v53 = vmul.f32 %v8540_v22, %v10810_v17  ;;  %v8621_v33 = vmul.f32 %v3883_v63, %v10812_v13  ;;  %v10814_v12 = vld [vmem:[#allocation113_spill] sm:$0xff]  ;;  %v10830_v17 = vld [vmem:[#allocation124_spill] sm:$0xff] }
 0x2b9   : > { %10807 = vst [vmem:[#allocation66_spill] sm:$0xff] %v8610_v60  ;;  %v3905_v10 = vpop.eup %3904  ;;  %3916 = vpow2.f32 %v3216_v50  ;;  %v8624_v45 = vmul.f32 %v3885_v18, %v10814_v12  ;;  %v9688_v61 = vsub.f32 1.0, %v8580_v36  ;;  %v9689_v3 = vsub.f32 1.0, %v8584_v40  ;;  %v10816_v49 = vld [vmem:[#allocation101_spill] sm:$0xff]  ;;  %v10860_v18 = vld [vmem:[#allocation3_spill] sm:$0xff] }
 0x2ba   : > { %10809 = vst [vmem:[#allocation106_spill] sm:$0xff] %v8614_v5  ;;  %v3907_v44 = vpop.eup %3906  ;;  %3918 = vpow2.f32 %v3218_v9  ;;  %v8629_v30 = vmul.f32 %v3887_v62, %v10816_v49  ;;  %v9690_v22 = vsub.f32 1.0, %v8588_v48  ;;  %v9691_v55 = vsub.f32 1.0, %v8593_v52  ;;  %v10826_v9 = vld [vmem:[#allocation117_spill] sm:$0xff] }
 0x2bb   : > { %10811 = vst [vmem:[#allocation107_spill] sm:$0xff] %v8618_v53  ;;  %v3909_v43 = vpop.eup %3908  ;;  %3920 = vpow2.f32 %v3220_v4  ;;  %v8634_v24 = vmul.f32 %v3889_v25, %v10818_v46  ;;  %v9692_v7 = vsub.f32 1.0, %v8597_v29  ;;  %v8644_v28 = vmul.f32 %v3891_v26, %v10820_v56  ;;  %v10822_v25 = vld [vmem:[#allocation108_spill] sm:$0xff] }
 0x2bc   : > { %10813 = vst [vmem:[#allocation67_spill] sm:$0xff] %v8621_v33  ;;  %v3911_v63 = vpop.eup %3910  ;;  %v8647_v38 = vmul.f32 %v3893_v14, %v10822_v25  ;;  %v8650_v27 = vmul.f32 %v3895_v20, %v10824_v11  ;;  %v8654_v4 = vmul.f32 %v3897_v19, %v10826_v9  ;;  %v8657_v34 = vmul.f32 %v3899_v57, %v10828_v6  ;;  %v10832_v14 = vld [vmem:[#allocation98_spill] sm:$0xff]  ;;  %v10834_v20 = vld [vmem:[#allocation99_spill] sm:$0xff]  ;;  %v10836_v56 = vld [vmem:[#allocation100_spill] sm:$0xff] }
 0x2bd   : > { %10815 = vst [vmem:[#allocation109_spill] sm:$0xff] %v8624_v45  ;;  %v3913_v32 = vpop.eup %3912  ;;  %v8660_v13 = vmul.f32 %v3901_v58, %v10830_v17  ;;  %v8664_v49 = vmul.f32 %v3903_v8, %v10832_v14  ;;  %v8667_v46 = vmul.f32 %v3905_v10, %v10834_v20  ;;  %v8670_v25 = vmul.f32 %v3907_v44, %v10836_v56  ;;  %v10838_v57 = vld [vmem:[#allocation65_spill] sm:$0xff]  ;;  %v10839_v58 = vld [vmem:[#allocation103_spill] sm:$0xff]  ;;  %v10875_v26 = vld [vmem:[#allocation60_spill] sm:$0xff] }
 0x2be   : > { %10817 = vst [vmem:[#allocation68_spill] sm:$0xff] %v8629_v30  ;;  %v3915_v1 = vpop.eup %3914  ;;  %v8674_v9 = vmul.f32 %v3909_v43, %v10838_v57  ;;  %v8677_v6 = vmul.f32 %v3911_v63, %v10839_v58  ;;  %v8680_v17 = vmul.f32 %v3913_v32, %v8546_v54  ;;  %v10842_v57 = vld [vmem:[#allocation14_spill] sm:$0xff]  ;;  %v10845_v58 = vld [vmem:[#allocation47_spill] sm:$0xff]  ;;  %v10848_v56 = vld [vmem:[#allocation33_spill] sm:$0xff]  ;;  %v3320_v19 = vsub.f32 0.0, %v9688_v61 }
 0x2bf   : > { %10819 = vst [vmem:[#allocation111_spill] sm:$0xff] %v8634_v24  ;;  %v3917_v50 = vpop.eup %3916  ;;  %v8683_v8 = vmul.f32 %v3915_v1, %v8551_v35  ;;  %v10841_v35 = vld [vmem:[#allocation45_spill] sm:$0xff]  ;;  %vm3287_vm4 = vcmp.lt.f32.partialorder %v10842_v57, 0.0  ;;  %vm3290_vm5 = vcmp.lt.f32.partialorder %v10845_v58, 0.0  ;;  %v10846_v1 = vld [vmem:[#allocation32_spill] sm:$0xff]  ;;  %vm3293_vm14 = vcmp.lt.f32.partialorder %v10848_v56, 0.0 }
 0x2c0   : > { %10821 = vst [vmem:[#allocation112_spill] sm:$0xff] %v8644_v28  ;;  %v3919_v12 = vpop.eup %3918  ;;  %v8686_v10 = vmul.f32 %v3917_v50, %v8560_v42  ;;  %vm3286_vm1 = vcmp.lt.f32.partialorder %v10841_v35, 0.0  ;;  %vm3291_vm12 = vcmp.lt.f32.partialorder %v10846_v1, 0.0  ;;  %v10847_v50 = vld [vmem:[#allocation16_spill] sm:$0xff]  ;;  %v10849_v63 = vld [vmem:[#allocation17_spill] sm:$0xff]  ;;  %v3321_v62 = vsub.f32 0.0, %v9689_v3 }
 0x2c1   : > { %10823 = vst [vmem:[#allocation69_spill] sm:$0xff] %v8647_v38  ;;  %v3921_v11 = vpop.eup %3920  ;;  %v8692_v43 = vmul.f32 %v3919_v12, %v8568_v51  ;;  %v10843_v51 = vld [vmem:[#allocation46_spill] sm:$0xff]  ;;  %v10844_v12 = vld [vmem:[#allocation31_spill] sm:$0xff]  ;;  %vm3292_vm6 = vcmp.lt.f32.partialorder %v10847_v50, 0.0  ;;  %vm3294_vm0 = vcmp.lt.f32.partialorder %v10849_v63, 0.0  ;;  %v10850_v14 = vld [vmem:[#allocation49_spill] sm:$0xff] }
 0x2c2   : > { %10825 = vst [vmem:[#allocation114_spill] sm:$0xff] %v8650_v27  ;;  %v8699_v42 = vmul.f32 %v3921_v11, %v8576_v59  ;;  %vm3288_vm3 = vcmp.lt.f32.partialorder %v10843_v51, 0.0  ;;  %vm3289_vm11 = vcmp.lt.f32.partialorder %v10844_v12, 0.0  ;;  %vm3295_vm13 = vcmp.lt.f32.partialorder %v10850_v14, 0.0  ;;  %v10880_v14 = vld [vmem:[#allocation61_spill] sm:$0xff]  ;;  %v10881_v44 = vld [vmem:[#allocation62_spill] sm:$0xff] }
 0x2c3   : > { %10827 = vst [vmem:[#allocation70_spill] sm:$0xff] %v8654_v4  ;;  %v3318_v11 = vsub.f32 0.0, %v9686_v47  ;;  %v3319_v59 = vsub.f32 0.0, %v9687_v0  ;;  %v3322_v47 = vsub.f32 0.0, %v9690_v22  ;;  %v3323_v0 = vsub.f32 0.0, %v9691_v55  ;;  %v10882_v55 = vld [vmem:[#allocation64_spill] sm:$0xff] }
 0x2c4   : > { %10829 = vst [vmem:[#allocation115_spill] sm:$0xff] %v8657_v34  ;;  %vm3305_vm2 = vcmp.lt.f32.partialorder %v10860_v18, 0.0  ;;  %vm3306_vm7 = vcmp.lt.f32.partialorder %v10861_v15, 0.0  ;;  %v3324_v39 = vsub.f32 0.0, %v9692_v7  ;;  %v10862_v3 = vsub.f32 1.0, %v8602_v16  ;;  %v10912_v57 = vld [vmem:[#allocation18_spill] sm:$0xff] }
 0x2c5   : > { %10831 = vst [vmem:[#allocation116_spill] sm:$0xff] %v8660_v13  ;;  %v10863_v22 = vsub.f32 1.0, %v8606_v2  ;;  %v10868_v18 = vsub.f32 1.0, %v8610_v60  ;;  %v10869_v20 = vsub.f32 1.0, %v8614_v5  ;;  %v10870_v54 = vsub.f32 1.0, %v8618_v53  ;;  %v10916_v51 = vld [vmem:[#allocation50_spill] sm:$0xff] }
 0x2c6   : > { %10833 = vst [vmem:[#allocation71_spill] sm:$0xff] %v8664_v49  ;;  %v3325_v41 = vsub.f32 0.0, %v10862_v3  ;;  %v10871_v32 = vsub.f32 1.0, %v8621_v33  ;;  %vm3314_vm15 = vcmp.lt.f32.partialorder %v10875_v26, 0.0  ;;  %v10876_v37 = vsub.f32 1.0, %v8624_v45  ;;  %v10920_v12 = vld [vmem:[#allocation35_spill] sm:$0xff] }
 0x2c7   : > { %10835 = vst [vmem:[#allocation118_spill] sm:$0xff] %v8667_v46  ;;  %v3326_v31 = vsub.f32 0.0, %v10863_v22  ;;  %v3327_v15 = vsub.f32 0.0, %v10868_v18  ;;  %v3328_v7 = vsub.f32 0.0, %v10869_v20  ;;  %v3329_v3 = vsub.f32 0.0, %v10870_v54 }
 0x2c8   : > { %10837 = vst [vmem:[#allocation76_spill] sm:$0xff] %v8670_v25  ;;  %v3330_v22 = vsub.f32 0.0, %v10871_v32  ;;  %v3331_v18 = vsub.f32 0.0, %v10876_v37  ;;  %v10877_v5 = vsub.f32 1.0, %v8629_v30  ;;  %v10878_v53 = vsub.f32 1.0, %v8634_v24 }
 0x2c9   : > { %10840 = vst [vmem:[#allocation119_spill] sm:$0xff] %v8680_v17  ;;  %v10879_v33 = vsub.f32 1.0, %v8644_v28  ;;  %vm3315_vm10 = vcmp.lt.f32.partialorder %v10880_v14, 0.0  ;;  %vm3316_vm8 = vcmp.lt.f32.partialorder %v10881_v44, 0.0  ;;  %vm3317_vm9 = vcmp.lt.f32.partialorder %v10882_v55, 0.0 }
 0x2ca   : > { %v3332_v20 = vsub.f32 0.0, %v10877_v5  ;;  %v3333_v54 = vsub.f32 0.0, %v10878_v53  ;;  %v10883_v26 = vsub.f32 1.0, %v8647_v38  ;;  %v10884_v37 = vsub.f32 1.0, %v8650_v27 }
 0x2cb   : > { %v3334_v32 = vsub.f32 0.0, %v10879_v33  ;;  %v10885_v5 = vsub.f32 1.0, %v8654_v4  ;;  %v10886_v53 = vsub.f32 1.0, %v8657_v34  ;;  %v10887_v33 = vsub.f32 1.0, %v8660_v13 }
 0x2cc   : > { %v3335_v61 = vsub.f32 0.0, %v10883_v26  ;;  %v3336_v45 = vsub.f32 0.0, %v10884_v37  ;;  %v10888_v14 = vsub.f32 1.0, %v8664_v49  ;;  %v10889_v55 = vsub.f32 1.0, %v8667_v46 }
 0x2cd   : > { %v3337_v30 = vsub.f32 0.0, %v10885_v5  ;;  %v3338_v24 = vsub.f32 0.0, %v10886_v53  ;;  %v3339_v28 = vsub.f32 0.0, %v10887_v33  ;;  %v10890_v26 = vsub.f32 1.0, %v8670_v25 }
 0x2ce   : > { %v3340_v44 = vsub.f32 0.0, %v10888_v14  ;;  %v3341_v60 = vsub.f32 0.0, %v10889_v55  ;;  %v10891_v37 = vsub.f32 1.0, %v8674_v9  ;;  %v10892_v5 = vsub.f32 1.0, %v8677_v6 }
 0x2cf   : > { %v3342_v38 = vsub.f32 0.0, %v10890_v26  ;;  %v10893_v53 = vsub.f32 1.0, %v8680_v17  ;;  %v10894_v33 = vsub.f32 1.0, %v8683_v8  ;;  %v10895_v14 = vsub.f32 1.0, %v8686_v10 }
 0x2d0   : > { %v3343_v27 = vsub.f32 0.0, %v10891_v37  ;;  %v3344_v4 = vsub.f32 0.0, %v10892_v5  ;;  %v10896_v55 = vsub.f32 1.0, %v8692_v43  ;;  %v10897_v26 = vsub.f32 1.0, %v8699_v42 }
 0x2d1   : > { %v3345_v34 = vsub.f32 0.0, %v10893_v53  ;;  %v3346_v13 = vsub.f32 0.0, %v10894_v33  ;;  %v3347_v49 = vsub.f32 0.0, %v10895_v14  ;;  %v10898_v37 = vsub.f32 1.0, %v8564_v23 }
 0x2d2   : > { %v3348_v46 = vsub.f32 0.0, %v10896_v55  ;;  %v3349_v25 = vsub.f32 0.0, %v10897_v26  ;;  %v10899_v17 = vsub.f32 1.0, %v8572_v21  ;;  %v10900_v33 = vsub.f32 1.0, %v8580_v36 }
 0x2d3   : > { %v3350_v5 = vsel %vm3286_vm1, %v3318_v11, %v10898_v37  ;;  %v10901_v55 = vsub.f32 1.0, %v8584_v40  ;;  %v10902_v23 = vsub.f32 1.0, %v8588_v48  ;;  %vm10913_vm1 = vcmp.lt.f32.partialorder %v10912_v57, 0.0  ;;  %v10924_v11 = vld [vmem:[#allocation51_spill] sm:$0xff] }
 0x2d4   : > { %v3351_v53 = vsel %vm3287_vm4, %v3319_v59, %v10899_v17  ;;  %v8818_v14 = vsel %vm3288_vm3, %v3320_v19, %v10900_v33  ;;  %v10903_v17 = vsub.f32 1.0, %v8593_v52  ;;  %v10904_v19 = vsub.f32 1.0, %v8597_v29 }
 0x2d5   : > { %v8824_v26 = vsel %vm3289_vm11, %v3321_v62, %v10901_v55  ;;  %v8830_v21 = vsel %vm3290_vm5, %v3322_v47, %v10902_v23  ;;  %v10905_v62 = vsub.f32 1.0, %v8602_v16  ;;  %v10906_v47 = vsub.f32 1.0, %v8606_v2  ;;  %v10928_v55 = vld [vmem:[#allocation36_spill] sm:$0xff] }
 0x2d6   : > { %v8836_v36 = vsel %vm3291_vm12, %v3323_v0, %v10903_v17  ;;  %v8842_v40 = vsel %vm3292_vm6, %v3324_v39, %v10904_v19  ;;  %v10907_v0 = vld [vmem:[#allocation66_spill] sm:$0xff]  ;;  %vm10917_vm4 = vcmp.lt.f32.partialorder %v10916_v51, 0.0  ;;  %vm10921_vm3 = vcmp.lt.f32.partialorder %v10920_v12, 0.0  ;;  %v10932_v19 = vld [vmem:[#allocation21_spill] sm:$0xff] }
 0x2d7   : > { %v8848_v48 = vsel %vm3293_vm14, %v3325_v41, %v10905_v62  ;;  %v8854_v52 = vsel %vm3294_vm0, %v3326_v31, %v10906_v47  ;;  %v10908_v35 = vsub.f32 1.0, %v10907_v0  ;;  %v10910_v39 = vld [vmem:[#allocation106_spill] sm:$0xff]  ;;  %v10914_v41 = vld [vmem:[#allocation107_spill] sm:$0xff]  ;;  %vm10925_vm11 = vcmp.lt.f32.partialorder %v10924_v11, 0.0  ;;  %v10936_v0 = vld [vmem:[#allocation37_spill] sm:$0xff] }
 0x2d8   : > { %v10911_v50 = vsub.f32 1.0, %v10910_v39  ;;  %v10915_v56 = vsub.f32 1.0, %v10914_v41  ;;  %v10918_v31 = vld [vmem:[#allocation67_spill] sm:$0xff]  ;;  %vm10929_vm5 = vcmp.lt.f32.partialorder %v10928_v55, 0.0  ;;  %vm10933_vm12 = vcmp.lt.f32.partialorder %v10932_v19, 0.0  ;;  %v10940_v39 = vld [vmem:[#allocation24_spill] sm:$0xff] }
 0x2d9   : > { %v8860_v29 = vsel %vm3295_vm13, %v3327_v15, %v10908_v35  ;;  %v10919_v63 = vsub.f32 1.0, %v10918_v31  ;;  %v10922_v15 = vld [vmem:[#allocation109_spill] sm:$0xff]  ;;  %vm10937_vm6 = vcmp.lt.f32.partialorder %v10936_v0, 0.0  ;;  %vm10941_vm14 = vcmp.lt.f32.partialorder %v10940_v39, 0.0  ;;  %v10969_v39 = vld [vmem:[#allocation38_spill] sm:$0xff] }
 0x2da   : > { %v8866_v16 = vsel %vm10913_vm1, %v3328_v7, %v10911_v50  ;;  %v8872_v2 = vsel %vm10917_vm4, %v3329_v3, %v10915_v56  ;;  %v10923_v59 = vsub.f32 1.0, %v10922_v15  ;;  %v10926_v7 = vld [vmem:[#allocation68_spill] sm:$0xff]  ;;  %v10930_v3 = vld [vmem:[#allocation111_spill] sm:$0xff]  ;;  %v10944_v41 = vld [vmem:[#allocation53_spill] sm:$0xff]  ;;  %vm10970_vm4 = vcmp.lt.f32.partialorder %v10969_v39, 0.0 }
 0x2db   : > { %v8878_v58 = vsel %vm10921_vm3, %v3330_v22, %v10919_v63  ;;  %v10927_v33 = vsub.f32 1.0, %v10926_v7  ;;  %v10931_v17 = vsub.f32 1.0, %v10930_v3  ;;  %v10934_v22 = vld [vmem:[#allocation112_spill] sm:$0xff]  ;;  %vm10945_vm0 = vcmp.lt.f32.partialorder %v10944_v41, 0.0  ;;  %v10958_v3 = vld [vmem:[#allocation57_spill] sm:$0xff] }
 0x2dc   : > { %v8884_v37 = vsel %vm10925_vm11, %v3331_v18, %v10923_v59  ;;  %v10935_v47 = vsub.f32 1.0, %v10934_v22  ;;  %v10938_v18 = vld [vmem:[#allocation69_spill] sm:$0xff]  ;;  %v10954_v7 = vld [vmem:[#allocation56_spill] sm:$0xff]  ;;  %vm10959_vm1 = vcmp.lt.f32.partialorder %v10958_v3, 0.0  ;;  %v10962_v22 = vld [vmem:[#allocation19_spill] sm:$0xff] }
 0x2dd   : > { %v8890_v23 = vsel %vm10929_vm5, %v3332_v20, %v10927_v33  ;;  %v8896_v62 = vsel %vm10933_vm12, %v3333_v54, %v10931_v17  ;;  %v10939_v1 = vsub.f32 1.0, %v10938_v18  ;;  %v10942_v20 = vld [vmem:[#allocation114_spill] sm:$0xff]  ;;  %vm10955_vm13 = vcmp.lt.f32.partialorder %v10954_v7, 0.0  ;;  %v10995_v39 = vld [vmem:[#allocation8_spill] sm:$0xff] }
 0x2de   : > { %v8902_v35 = vsel %vm10937_vm6, %v3334_v32, %v10935_v47  ;;  %v10943_v57 = vsub.f32 1.0, %v10942_v20  ;;  %v10946_v54 = vld [vmem:[#allocation70_spill] sm:$0xff]  ;;  %v10949_v32 = vld [vmem:[#allocation115_spill] sm:$0xff] }
 0x2df   : > { %v8908_v50 = vsel %vm10941_vm14, %v3335_v61, %v10939_v1  ;;  %v10947_v51 = vsub.f32 1.0, %v10946_v54  ;;  %v10950_v12 = vsub.f32 1.0, %v10949_v32  ;;  %v10952_v61 = vld [vmem:[#allocation116_spill] sm:$0xff]  ;;  %v10966_v18 = vld [vmem:[#allocation6_spill] sm:$0xff] }
 0x2e0   : > { %v8914_v56 = vsel %vm10945_vm0, %v3336_v45, %v10943_v57  ;;  %v10953_v11 = vsub.f32 1.0, %v10952_v61  ;;  %v10956_v45 = vld [vmem:[#allocation71_spill] sm:$0xff]  ;;  %v10972_v57 = vld [vmem:[#allocation58_spill] sm:$0xff] }
 0x2e1   : > { %v8920_v63 = vsel %vm3305_vm2, %v3337_v30, %v10947_v51  ;;  %v8926_v59 = vsel %vm3306_vm7, %v3338_v24, %v10950_v12  ;;  %v10957_v55 = vsub.f32 1.0, %v10956_v45  ;;  %v10960_v30 = vld [vmem:[#allocation118_spill] sm:$0xff]  ;;  %vm10963_vm2 = vcmp.lt.f32.partialorder %v10962_v22, 0.0  ;;  %v10964_v24 = vld [vmem:[#allocation76_spill] sm:$0xff]  ;;  %v10976_v51 = vld [vmem:[#allocation59_spill] sm:$0xff] }
 0x2e2   : > { %v8932_v33 = vsel %vm10955_vm13, %v3339_v28, %v10953_v11  ;;  %v10961_v19 = vsub.f32 1.0, %v10960_v30  ;;  %v10965_v0 = vsub.f32 1.0, %v10964_v24  ;;  %vm10967_vm7 = vcmp.lt.f32.partialorder %v10966_v18, 0.0  ;;  %v10987_v45 = vld [vmem:[#allocation80_spill] sm:$0xff]  ;;  %v10991_v22 = vld [vmem:[#allocation22_spill] sm:$0xff] }
 0x2e3   : > { %v8938_v17 = vsel %vm10959_vm1, %v3340_v44, %v10957_v55  ;;  %v10968_v28 = vsub.f32 1.0, %v8674_v9  ;;  %v10971_v44 = vsub.f32 1.0, %v8677_v6  ;;  %vm10973_vm3 = vcmp.lt.f32.partialorder %v10972_v57, 0.0  ;;  %v10988_v55 = vld [vmem:[#allocation63_spill] sm:$0xff]  ;;  %v10996_v57 = vld [vmem:[#allocation40_spill] sm:$0xff] }
 0x2e4   : > { %v8944_v47 = vsel %vm10963_vm2, %v3341_v60, %v10961_v19  ;;  %v8950_v1 = vsel %vm10967_vm7, %v3342_v38, %v10965_v0  ;;  %v10974_v60 = vld [vmem:[#allocation119_spill] sm:$0xff]  ;;  %vm10977_vm11 = vcmp.lt.f32.partialorder %v10976_v51, 0.0  ;;  %v10978_v38 = vsub.f32 1.0, %v8683_v8 }
 0x2e5   : > { %v8956_v20 = vsel %vm10970_vm4, %v3343_v27, %v10968_v28  ;;  %v8962_v41 = vsel %vm10973_vm3, %v3344_v4, %v10971_v44  ;;  %v10975_v54 = vsub.f32 1.0, %v10974_v60  ;;  %v10980_v27 = vsub.f32 1.0, %v8686_v10  ;;  %v10990_v19 = vld [vmem:[#allocation55_spill] sm:$0xff] }
 0x2e6   : > { %v8974_v9 = vsel %vm3314_vm15, %v3346_v13, %v10978_v38  ;;  %v10982_v4 = vsub.f32 1.0, %v8692_v43  ;;  %v10986_v13 = vld [vmem:[#allocation79_spill] sm:$0xff]  ;;  %v3383_v10 = vmul.f32 0.5, %v10987_v45  ;;  %v3384_v3 = vmul.f32 0.5, %v10988_v55  ;;  %v10998_v38 = vld [vmem:[#allocation9_spill] sm:$0xff] }
 0x2e7   : > { %v8968_v31 = vsel %vm10977_vm11, %v3345_v34, %v10975_v54  ;;  %v8980_v6 = vsel %vm3315_vm10, %v3347_v49, %v10980_v27  ;;  %v10984_v34 = vsub.f32 1.0, %v8699_v42  ;;  %v3382_v7 = vmul.f32 0.5, %v10986_v13  ;;  %v10989_v49 = vld [vmem:[#allocation54_spill] sm:$0xff]  ;;  %v10993_v42 = vld [vmem:[#allocation39_spill] sm:$0xff]  ;;  %v10997_v54 = vld [vmem:[#allocation25_spill] sm:$0xff] }
 0x2e8   : > { %v8986_v61 = vsel %vm3316_vm8, %v3348_v46, %v10982_v4  ;;  %v3385_v30 = vmul.f32 0.5, %v10989_v49  ;;  %v3386_v43 = vmul.f32 0.5, %v10990_v19  ;;  %v3387_v24 = vmul.f32 0.5, %v10991_v22  ;;  %v10992_v46 = vld [vmem:[#allocation7_spill] sm:$0xff]  ;;  %v10999_v27 = vld [vmem:[#allocation41_spill] sm:$0xff]  ;;  %v11000_v4 = vld [vmem:[#allocation26_spill] sm:$0xff] }
 0x2e9   : > { %v8992_v8 = vsel %vm3317_vm9, %v3349_v25, %v10984_v34  ;;  %v9001_v0 = vmul.f32 0.5, %v10992_v46  ;;  %v9004_v18 = vmul.f32 0.5, %v10993_v42  ;;  %v10994_v25 = vld [vmem:[#allocation23_spill] sm:$0xff]  ;;  %v9010_v44 = vmul.f32 0.5, %v10995_v39  ;;  %v11001_v34 = vld [vmem:[#allocation10_spill] sm:$0xff] }
 0x2ea   : > { %v9007_v28 = vmul.f32 0.5, %v10994_v25  ;;  %v9013_v60 = vmul.f32 0.5, %v10996_v57  ;;  %v9016_v51 = vmul.f32 0.5, %v10997_v54  ;;  %v9019_v32 = vmul.f32 0.5, %v10998_v38  ;;  %v11002_v13 = vld [vmem:[#allocation42_spill] sm:$0xff]  ;;  %v11003_v55 = vld [vmem:[#allocation27_spill] sm:$0xff] }
 0x2eb   : > { %v9022_v12 = vmul.f32 0.5, %v10999_v27  ;;  %v9025_v15 = vmul.f32 0.5, %v11000_v4  ;;  %v9028_v11 = vmul.f32 0.5, %v11001_v34  ;;  %v9031_v45 = vmul.f32 0.5, %v11002_v13  ;;  %v11005_v19 = vld [vmem:[#allocation11_spill] sm:$0xff]  ;;  %v11009_v25 = vld [vmem:[#allocation28_spill] sm:$0xff] }
 0x2ec   : > { %v9034_v49 = vmul.f32 0.5, %v11003_v55  ;;  %v9037_v22 = vmul.f32 0.5, %v11005_v19  ;;  %v11007_v46 = vld [vmem:[#allocation43_spill] sm:$0xff]  ;;  %v9043_v39 = vmul.f32 0.5, %v11009_v25  ;;  %v11011_v57 = vld [vmem:[#allocation12_spill] sm:$0xff]  ;;  %v11015_v4 = vld [vmem:[#allocation29_spill] sm:$0xff] }
 0x2ed   : > { %v9040_v42 = vmul.f32 0.5, %v11007_v46  ;;  %v9046_v54 = vmul.f32 0.5, %v11011_v57  ;;  %v11013_v38 = vld [vmem:[#allocation44_spill] sm:$0xff]  ;;  %v9052_v34 = vmul.f32 0.5, %v11015_v4  ;;  %v11017_v13 = vld [vmem:[#allocation13_spill] sm:$0xff]  ;;  %v11019_v19 = vld [vmem:[#allocation30_spill] sm:$0xff] }
 0x2ee   : > { %11004 = vst [vmem:[#allocation72_spill] sm:$0xff] %v9034_v49  ;;  %v9049_v27 = vmul.f32 0.5, %v11013_v38  ;;  %v9055_v55 = vmul.f32 0.5, %v11017_v13  ;;  %v11020_v46 = vld [vmem:[#allocation15_spill] sm:$0xff]  ;;  %v11022_v25 = vld [vmem:[#allocation48_spill] sm:$0xff]  ;;  %v3414_v57 = vadd.f32 1.0, %v3350_v5 }
 0x2ef   : > { %11006 = vst [vmem:[#allocation120_spill] sm:$0xff] %v9037_v22  ;;  %v9058_v22 = vmul.f32 0.5, %v11019_v19  ;;  %v11024_v38 = vld [vmem:[#allocation20_spill] sm:$0xff]  ;;  %v3415_v13 = vadd.f32 1.0, %v3351_v53  ;;  %v3419_v5 = vadd.f32 1.0, %v8836_v36  ;;  %v3424_v53 = vadd.f32 1.0, %v8866_v16 }
 0x2f0   : > { %11008 = vst [vmem:[#allocation73_spill] sm:$0xff] %v9040_v42  ;;  %v9061_v42 = vmul.f32 0.5, %v11020_v46  ;;  %v11026_v4 = vld [vmem:[#allocation52_spill] sm:$0xff]  ;;  %v3416_v46 = vadd.f32 1.0, %v8818_v14  ;;  %v9091_v14 = vld [vmem:[%s9368_s3] ss:$0 sm:$0xff] }
 0x2f1   : > { %11010 = vst [vmem:[#allocation74_spill] sm:$0xff] %v9043_v39  ;;  %v9064_v39 = vmul.f32 0.5, %v11022_v25  ;;  %v3418_v25 = vadd.f32 1.0, %v8830_v21  ;;  %v3427_v21 = vadd.f32 1.0, %v8884_v37  ;;  %v3428_v36 = vadd.f32 1.0, %v8890_v23 }
 0x2f2   : > { %11012 = vst [vmem:[#allocation75_spill] sm:$0xff] %v9046_v54  ;;  %v11023_v54 = vld [vmem:[#allocation34_spill] sm:$0xff]  ;;  %v3448_v16 = vmul.f32 %v3416_v46, %v3384_v3  ;;  %v9111_v23 = vadd.f32 1.0, %v8932_v33  ;;  %v9133_v3 = vadd.f32 1.0, %v8962_v41  ;;  %vm3580_vm8 = vcmask 31744  }
 0x2f3   : > { %11014 = vst [vmem:[#allocation2_spill] sm:$0xff] %v9049_v27  ;;  %v9067_v49 = vmul.f32 0.5, %v11023_v54  ;;  %v9070_v27 = vmul.f32 0.5, %v11024_v38  ;;  %v3420_v54 = vadd.f32 1.0, %v8842_v40  ;;  %v3421_v38 = vadd.f32 1.0, %v8848_v48 }
 0x2f4   : > { %11016 = vst [vmem:[#allocation77_spill] sm:$0xff] %v9052_v34  ;;  %v9073_v34 = vmul.f32 0.5, %v11026_v4  ;;  %v3423_v4 = vadd.f32 1.0, %v8860_v29  ;;  %v3447_v40 = vmul.f32 %v3415_v13, %v3383_v10  ;;  %v3429_v48 = vadd.f32 1.0, %v8896_v62 }
 0x2f5   : > { %11018 = vst [vmem:[#allocation78_spill] sm:$0xff] %v9055_v55  ;;  %v11027_v55 = vld [vmem:[#allocation4_spill] sm:$0xff]  ;;  %v9099_v29 = vadd.f32 1.0, %v8908_v50  ;;  %v9114_v62 = vadd.f32 1.0, %v8938_v17  ;;  %v3451_v10 = vmul.f32 %v3419_v5, %v3387_v24  ;;  %v9130_v17 = vadd.f32 1.0, %v8956_v20 }
 0x2f6   : > { %11021 = vst [vmem:[#allocation81_spill] sm:$0xff] %v9061_v42  ;;  %v9076_v19 = vmul.f32 0.5, %v11027_v55  ;;  %v3417_v42 = vadd.f32 1.0, %v8824_v26  ;;  %v3425_v55 = vadd.f32 1.0, %v8872_v2  ;;  %v3426_v26 = vadd.f32 1.0, %v8878_v58 }
 0x2f7   : > { %11025 = vst [vmem:[#allocation82_spill] sm:$0xff] %v9070_v27  ;;  %v3422_v27 = vadd.f32 1.0, %v8854_v52  ;;  %v3430_v52 = vadd.f32 1.0, %v8902_v35  ;;  %v9102_v2 = vadd.f32 1.0, %v8914_v56  ;;  %v9108_v58 = vadd.f32 1.0, %v8926_v59 }
 0x2f8   : > { %11028 = vst [vmem:[#allocation83_spill] sm:$0xff] %v9076_v19  ;;  %v3446_v19 = vmul.f32 %v3414_v57, %v3382_v7  ;;  %v9105_v7 = vadd.f32 1.0, %v8920_v63  ;;  %v3449_v37 = vmul.f32 %v3417_v42, %v3385_v30  ;;  %v3450_v35 = vmul.f32 %v3418_v25, %v3386_v43  ;;  %v9120_v56 = vld [vmem:[%s9369_s4] ss:$0 sm:$0xff] }
 0x2f9   : > { %v9123_v63 = vadd.f32 1.0, %v8944_v47  ;;  %v9126_v59 = vadd.f32 1.0, %v8950_v1  ;;  %v3482_v33 = vmul.f32 %v9091_v14, %v3447_v40  ;;  %v3452_v30 = vmul.f32 %v3420_v54, %v9001_v0  ;;  %v3923_v54 = vld [vmem:[%s4036_s25] sm:$0xff]  ;;  %v3925_v40 = vld [vmem:[%s4036_s25 + $0x10] sm:$0xff] }
 0x2fa   : > { %v3481_v50 = vmul.f32 %v9091_v14, %v3446_v19  ;;  %v3483_v43 = vmul.f32 %v9091_v14, %v3448_v16  ;;  %v9138_v42 = vadd.f32 1.0, %v8968_v31  ;;  %v9141_v47 = vadd.f32 1.0, %v8974_v9 }
 0x2fb   : > { %v3453_v1 = vmul.f32 %v3421_v38, %v9004_v18  ;;  %v3484_v24 = vmul.f32 %v9091_v14, %v3449_v37  ;;  %v9146_v20 = vadd.f32 1.0, %v8980_v6  ;;  %v3454_v41 = vmul.f32 %v3422_v27, %v9007_v28 }
 0x2fc   : > { %v3485_v57 = vmul.f32 %v9091_v14, %v3450_v35  ;;  %v3516_v0 = vadd.f32 %v9120_v56, %v3481_v50  ;;  %v9152_v31 = vadd.f32 1.0, %v8986_v61  ;;  %v3455_v9 = vmul.f32 %v3423_v4, %v9010_v44 }
 0x2fd   : > { %v3486_v18 = vmul.f32 %v9091_v14, %v3451_v10  ;;  %v3517_v13 = vadd.f32 %v9120_v56, %v3482_v33  ;;  %v9158_v6 = vadd.f32 1.0, %v8992_v8  ;;  %v3456_v28 = vmul.f32 %v3424_v53, %v9013_v60  ;;  %v3927_v10 = vld [vmem:[%s4036_s25 + $0x20] sm:$0xff] }
 0x2fe   : > { %v3487_v27 = vmul.f32 %v9091_v14, %v3452_v30  ;;  %v3518_v19 = vadd.f32 %v9120_v56, %v3483_v43  ;;  %v3457_v61 = vmul.f32 %v3425_v55, %v9016_v51  ;;  %v3458_v46 = vmul.f32 %v3426_v26, %v9019_v32  ;;  %v11029_v30 = vld [vmem:[#allocation72_spill] sm:$0xff] }
 0x2ff   : > { %v3488_v44 = vmul.f32 %v9091_v14, %v3453_v1  ;;  %v3519_v25 = vadd.f32 %v9120_v56, %v3484_v24  ;;  %v3459_v5 = vmul.f32 %v3427_v21, %v9022_v12  ;;  %v3489_v8 = vmul.f32 %v9091_v14, %v3454_v41  ;;  %v3924_v12 = vld [vmem:[%s4036_s25 + $0x8] sm:$0xff] }
 0x300   : > { %v3520_v60 = vadd.f32 %v9120_v56, %v3485_v57  ;;  %v3548_v38 = vadd.f32 %v3923_v54, %v3516_v0  ;;  %v3460_v51 = vmul.f32 %v3428_v36, %v9025_v15  ;;  %v3490_v32 = vmul.f32 %v9091_v14, %v3455_v9  ;;  %v3926_v36 = vld [vmem:[%s4036_s25 + $0x18] sm:$0xff]  ;;  %v3928_v41 = vld [vmem:[%s4036_s25 + $0x28] sm:$0xff] }
 0x301   : > { %v3521_v4 = vadd.f32 %v9120_v56, %v3486_v18  ;;  %v3549_v53 = vadd.f32 %v3924_v12, %v3517_v13  ;;  %v3461_v55 = vmul.f32 %v3429_v48, %v9028_v11  ;;  %v3491_v26 = vmul.f32 %v9091_v14, %v3456_v28  ;;  %v3929_v18 = vld [vmem:[%s4036_s25 + $0x30] sm:$0xff]  ;;  %v11031_v13 = vld [vmem:[#allocation73_spill] sm:$0xff] }
 0x302   : > { %v3522_v21 = vadd.f32 %v9120_v56, %v3487_v27  ;;  %v3550_v16 = vadd.f32 %v3925_v40, %v3518_v19  ;;  %v3492_v37 = vmul.f32 %v9091_v14, %v3457_v61  ;;  %v3523_v15 = vadd.f32 %v9120_v56, %v3488_v44  ;;  %3581 = vst.msk [vmem:[%s9176_s15] sm:$0xff] %vm3580_vm8, %v3548_v38  ;;  %v3930_v61 = vld [vmem:[%s4036_s25 + $0x38] sm:$0xff] }
 0x303   : > { %v3551_v35 = vadd.f32 %v3926_v36, %v3519_v25  ;;  %v3462_v50 = vmul.f32 %v3430_v52, %v9031_v45  ;;  %v3493_v11 = vmul.f32 %v9091_v14, %v3458_v46  ;;  %v3524_v48 = vadd.f32 %v9120_v56, %v3489_v8  ;;  %3582 = vst.msk [vmem:[%s9176_s15 + $0x8] sm:$0xff] %vm3580_vm8, %v3549_v53  ;;  %v11030_v52 = vld [vmem:[#allocation120_spill] sm:$0xff]  ;;  %v11032_v46 = vld [vmem:[#allocation74_spill] sm:$0xff] }
 0x304   : > { %v3552_v33 = vadd.f32 %v3927_v10, %v3520_v60  ;;  %v3463_v43 = vmul.f32 %v9099_v29, %v11029_v30  ;;  %v3494_v1 = vmul.f32 %v9091_v14, %v3459_v5  ;;  %v3525_v24 = vadd.f32 %v9120_v56, %v3490_v32  ;;  %3583 = vst.msk [vmem:[%s9176_s15 + $0x10] sm:$0xff] %vm3580_vm8, %v3550_v16  ;;  %v3931_v8 = vld [vmem:[%s4036_s25 + $0x40] sm:$0xff]  ;;  %v11033_v60 = vld [vmem:[#allocation75_spill] sm:$0xff] }
 0x305   : > { %v3553_v45 = vadd.f32 %v3928_v41, %v3521_v4  ;;  %v3464_v57 = vmul.f32 %v9102_v2, %v11030_v52  ;;  %v3495_v0 = vmul.f32 %v9091_v14, %v3460_v51  ;;  %v3526_v9 = vadd.f32 %v9120_v56, %v3491_v26  ;;  %3584 = vst.msk [vmem:[%s9176_s15 + $0x18] sm:$0xff] %vm3580_vm8, %v3551_v35  ;;  %v3932_v32 = vld [vmem:[%s4036_s25 + $0x48] sm:$0xff]  ;;  %v11034_v4 = vld [vmem:[#allocation2_spill] sm:$0xff]  ;;  %v3933_v26 = vld [vmem:[%s4036_s25 + $0x50] sm:$0xff] }
 0x306   : > { %v3554_v29 = vadd.f32 %v3929_v18, %v3522_v21  ;;  %v3465_v28 = vmul.f32 %v9105_v7, %v11031_v13  ;;  %v3496_v27 = vmul.f32 %v9091_v14, %v3461_v55  ;;  %v3527_v19 = vadd.f32 %v9120_v56, %v3492_v37  ;;  %3585 = vst.msk [vmem:[%s9176_s15 + $0x20] sm:$0xff] %vm3580_vm8, %v3552_v33  ;;  %v11035_v21 = vld [vmem:[#allocation77_spill] sm:$0xff]  ;;  %v11036_v36 = vld [vmem:[#allocation78_spill] sm:$0xff]  ;;  %v3937_v52 = vld [vmem:[%s4036_s25 + $0x70] sm:$0xff] }
 0x307   : > { %v3555_v2 = vadd.f32 %v3930_v61, %v3523_v15  ;;  %v3466_v44 = vmul.f32 %v9108_v58, %v11032_v46  ;;  %v3497_v25 = vmul.f32 %v9091_v14, %v3462_v50  ;;  %v3528_v5 = vadd.f32 %v9120_v56, %v3493_v11  ;;  %3586 = vst.msk [vmem:[%s9176_s15 + $0x28] sm:$0xff] %vm3580_vm8, %v3553_v45  ;;  %v3934_v15 = vld [vmem:[%s4036_s25 + $0x58] sm:$0xff] }
 0x308   : > { %v3556_v7 = vadd.f32 %v3931_v8, %v3524_v48  ;;  %v3467_v54 = vmul.f32 %v9111_v23, %v11033_v60  ;;  %v3498_v38 = vmul.f32 %v9091_v14, %v3463_v43  ;;  %v3529_v51 = vadd.f32 %v9120_v56, %v3494_v1  ;;  %3587 = vst.msk [vmem:[%s9176_s15 + $0x30] sm:$0xff] %vm3580_vm8, %v3554_v29  ;;  %v3935_v48 = vld [vmem:[%s4036_s25 + $0x60] sm:$0xff]  ;;  %v3936_v43 = vld [vmem:[%s4036_s25 + $0x68] sm:$0xff]  ;;  %v11037_v1 = vld [vmem:[#allocation81_spill] sm:$0xff] }
 0x309   : > { %v3557_v58 = vadd.f32 %v3932_v32, %v3525_v24  ;;  %v3468_v12 = vmul.f32 %v9114_v62, %v11034_v4  ;;  %v3499_v53 = vmul.f32 %v9091_v14, %v3464_v57  ;;  %v3530_v55 = vadd.f32 %v9120_v56, %v3495_v0  ;;  %3588 = vst.msk [vmem:[%s9176_s15 + $0x38] sm:$0xff] %vm3580_vm8, %v3555_v2  ;;  %v3940_v2 = vld [vmem:[%s4036_s25 + $0x88] sm:$0xff] }
 0x30a   : > { %v3558_v23 = vadd.f32 %v3933_v26, %v3526_v9  ;;  %v3469_v40 = vmul.f32 %v9123_v63, %v11035_v21  ;;  %v3500_v16 = vmul.f32 %v9091_v14, %v3465_v28  ;;  %v3531_v37 = vadd.f32 %v9120_v56, %v3496_v27  ;;  %3589 = vst.msk [vmem:[%s9176_s15 + $0x40] sm:$0xff] %vm3580_vm8, %v3556_v7  ;;  %v3938_v9 = vld [vmem:[%s4036_s25 + $0x78] sm:$0xff]  ;;  %v3939_v28 = vld [vmem:[%s4036_s25 + $0x80] sm:$0xff]  ;;  %v3944_v4 = vld [vmem:[%s4036_s25 + $0xa8] sm:$0xff] }
 0x30b   : > { %v3559_v62 = vadd.f32 %v3934_v15, %v3527_v19  ;;  %v3470_v35 = vmul.f32 %v9126_v59, %v11036_v36  ;;  %v3501_v50 = vmul.f32 %v9091_v14, %v3466_v44  ;;  %v3532_v11 = vadd.f32 %v9120_v56, %v3497_v25  ;;  %3590 = vst.msk [vmem:[%s9176_s15 + $0x48] sm:$0xff] %vm3580_vm8, %v3557_v58  ;;  %v3941_v25 = vld [vmem:[%s4036_s25 + $0x90] sm:$0xff] }
 0x30c   : > { %v3560_v63 = vadd.f32 %v3935_v48, %v3528_v5  ;;  %v3471_v10 = vmul.f32 %v9130_v17, %v9058_v22  ;;  %v3502_v33 = vmul.f32 %v9091_v14, %v3467_v54  ;;  %v3533_v30 = vadd.f32 %v9120_v56, %v3498_v38  ;;  %3591 = vst.msk [vmem:[%s9176_s15 + $0x50] sm:$0xff] %vm3580_vm8, %v3558_v23  ;;  %v11039_v5 = vld [vmem:[#allocation83_spill] sm:$0xff]  ;;  %v3945_v26 = vld [vmem:[%s4036_s25 + $0xb0] sm:$0xff] }
 0x30d   : > { %v3561_v59 = vadd.f32 %v3936_v43, %v3529_v51  ;;  %v3472_v24 = vmul.f32 %v9133_v3, %v11037_v1  ;;  %v3503_v41 = vmul.f32 %v9091_v14, %v3468_v12  ;;  %v3534_v45 = vadd.f32 %v9120_v56, %v3499_v53  ;;  %3592 = vst.msk [vmem:[%s9176_s15 + $0x58] sm:$0xff] %vm3580_vm8, %v3559_v62  ;;  %v3943_v51 = vld [vmem:[%s4036_s25 + $0xa0] sm:$0xff]  ;;  %v3949_v48 = vld [vmem:[%s4036_s25 + $0xd0] sm:$0xff]  ;;  %v3952_v1 = vld [vmem:[%s4036_s25 + $0xe8] sm:$0xff] }
 0x30e   : > { %v3562_v22 = vadd.f32 %v3937_v52, %v3530_v55  ;;  %v3473_v17 = vmul.f32 %v9138_v42, %v9064_v39  ;;  %v3504_v57 = vmul.f32 %v9091_v14, %v3469_v40  ;;  %v3535_v0 = vadd.f32 %v9120_v56, %v3500_v16  ;;  %3593 = vst.msk [vmem:[%s9176_s15 + $0x60] sm:$0xff] %vm3580_vm8, %v3560_v63  ;;  %v11038_v42 = vld [vmem:[#allocation82_spill] sm:$0xff]  ;;  %v3946_v16 = vld [vmem:[%s4036_s25 + $0xb8] sm:$0xff] }
 0x30f   : > { %v3563_v3 = vadd.f32 %v3938_v9, %v3531_v37  ;;  %v3474_v18 = vmul.f32 %v9141_v47, %v9067_v49  ;;  %v3505_v29 = vmul.f32 %v9091_v14, %v3470_v35  ;;  %v3536_v13 = vadd.f32 %v9120_v56, %v3501_v50  ;;  %3594 = vst.msk [vmem:[%s9176_s15 + $0x68] sm:$0xff] %vm3580_vm8, %v3561_v59  ;;  %v3947_v62 = vld [vmem:[%s4036_s25 + $0xc0] sm:$0xff]  ;;  %v3948_v35 = vld [vmem:[%s4036_s25 + $0xc8] sm:$0xff] }
 0x310   : > { %v3564_v39 = vadd.f32 %v3939_v28, %v3532_v11  ;;  %v3475_v27 = vmul.f32 %v9146_v20, %v11038_v42  ;;  %v3506_v19 = vmul.f32 %v9091_v14, %v3471_v10  ;;  %v3537_v61 = vadd.f32 %v9120_v56, %v3502_v33  ;;  %3595 = vst.msk [vmem:[%s9176_s15 + $0x70] sm:$0xff] %vm3580_vm8, %v3562_v22  ;;  %v3950_v33 = vld [vmem:[%s4036_s25 + $0xd8] sm:$0xff]  ;;  %v3951_v43 = vld [vmem:[%s4036_s25 + $0xe0] sm:$0xff] }
 0x311   : > { %v3565_v49 = vadd.f32 %v3940_v2, %v3533_v30  ;;  %v3476_v47 = vmul.f32 %v9152_v31, %v9073_v34  ;;  %v3507_v46 = vmul.f32 %v9091_v14, %v3472_v24  ;;  %v3538_v44 = vadd.f32 %v9120_v56, %v3503_v41  ;;  %v3942_v34 = vld [vmem:[%s4036_s25 + $0x98] sm:$0xff]  ;;  %3596 = vst.msk [vmem:[%s9176_s15 + $0x78] sm:$0xff] %vm3580_vm8, %v3563_v3  ;;  %v3953_v41 = vld [vmem:[%s4036_s25 + $0xf0] sm:$0xff] }
 0x312   : > { %v3566_v20 = vadd.f32 %v3941_v25, %v3534_v45  ;;  %v3477_v8 = vmul.f32 %v9158_v6, %v11039_v5  ;;  %v3508_v7 = vmul.f32 %v9091_v14, %v3473_v17  ;;  %v3539_v60 = vadd.f32 %v9120_v56, %v3504_v57  ;;  %3597 = vst.msk [vmem:[%s9176_s15 + $0x80] sm:$0xff] %vm3580_vm8, %v3564_v39 }
 0x313   : > { %v3567_v31 = vadd.f32 %v3942_v34, %v3535_v0  ;;  %v3509_v54 = vmul.f32 %v9091_v14, %v3474_v18  ;;  %v3540_v38 = vadd.f32 %v9120_v56, %v3505_v29  ;;  %v3568_v32 = vadd.f32 %v3943_v51, %v3536_v13  ;;  %3598 = vst.msk [vmem:[%s9176_s15 + $0x88] sm:$0xff] %vm3580_vm8, %v3565_v49 }
 0x314   : > { %v3510_v6 = vmul.f32 %v9091_v14, %v3475_v27  ;;  %v3541_v58 = vadd.f32 %v9120_v56, %v3506_v19  ;;  %v3569_v12 = vadd.f32 %v3944_v4, %v3537_v61  ;;  %v3511_v53 = vmul.f32 %v9091_v14, %v3476_v47  ;;  %3599 = vst.msk [vmem:[%s9176_s15 + $0x90] sm:$0xff] %vm3580_vm8, %v3566_v20 }
 0x315   : > { %v3542_v55 = vadd.f32 %v9120_v56, %v3507_v46  ;;  %v3570_v23 = vadd.f32 %v3945_v26, %v3538_v44  ;;  %v3512_v21 = vmul.f32 %v9091_v14, %v3477_v8  ;;  %v3543_v40 = vadd.f32 %v9120_v56, %v3508_v7  ;;  %3600 = vst.msk [vmem:[%s9176_s15 + $0x98] sm:$0xff] %vm3580_vm8, %v3567_v31 }
 0x316   : > { %v3571_v37 = vadd.f32 %v3946_v16, %v3539_v60  ;;  %v3544_v15 = vadd.f32 %v9120_v56, %v3509_v54  ;;  %v3572_v36 = vadd.f32 %v3947_v62, %v3540_v38  ;;  %3601 = vst.msk [vmem:[%s9176_s15 + $0xa0] sm:$0xff] %vm3580_vm8, %v3568_v32  ;;  %v3545_v14 = vadd.f32 %v9120_v56, %v3510_v6 }
 0x317   : > { %v3573_v50 = vadd.f32 %v3948_v35, %v3541_v58  ;;  %3602 = vst.msk [vmem:[%s9176_s15 + $0xa8] sm:$0xff] %vm3580_vm8, %v3569_v12  ;;  %v3546_v11 = vadd.f32 %v9120_v56, %v3511_v53  ;;  %v3574_v63 = vadd.f32 %v3949_v48, %v3542_v55  ;;  %v3547_v10 = vadd.f32 %v9120_v56, %v3512_v21  ;;  %v3954_v56 = vld [vmem:[%s4036_s25 + $0xf8] sm:$0xff] }
 0x318   : > { %3603 = vst.msk [vmem:[%s9176_s15 + $0xb0] sm:$0xff] %vm3580_vm8, %v3570_v23  ;;  %v3575_v30 = vadd.f32 %v3950_v33, %v3543_v40  ;;  %v3576_v59 = vadd.f32 %v3951_v43, %v3544_v15  ;;  %v3577_v24 = vadd.f32 %v3952_v1, %v3545_v14 }
 0x319   : > { %3604 = vst.msk [vmem:[%s9176_s15 + $0xb8] sm:$0xff] %vm3580_vm8, %v3571_v37  ;;  %v3578_v45 = vadd.f32 %v3953_v41, %v3546_v11  ;;  %v3579_v52 = vadd.f32 %v3954_v56, %v3547_v10 }
 0x31a   : > { %3605 = vst.msk [vmem:[%s9176_s15 + $0xc0] sm:$0xff] %vm3580_vm8, %v3572_v36 }
 0x31b   : > { %3606 = vst.msk [vmem:[%s9176_s15 + $0xc8] sm:$0xff] %vm3580_vm8, %v3573_v50 }
 0x31c   : > { %3607 = vst.msk [vmem:[%s9176_s15 + $0xd0] sm:$0xff] %vm3580_vm8, %v3574_v63 }
 0x31d   : > { %3608 = vst.msk [vmem:[%s9176_s15 + $0xd8] sm:$0xff] %vm3580_vm8, %v3575_v30 }
 0x31e   : > { %3609 = vst.msk [vmem:[%s9176_s15 + $0xe0] sm:$0xff] %vm3580_vm8, %v3576_v59 }
 0x31f   : > { %3610 = vst.msk [vmem:[%s9176_s15 + $0xe8] sm:$0xff] %vm3580_vm8, %v3577_v24 }
 0x320   : > { %3611 = vst.msk [vmem:[%s9176_s15 + $0xf0] sm:$0xff] %vm3580_vm8, %v3578_v45 }
 0x321   : > { %3612 = vst.msk [vmem:[%s9176_s15 + $0xf8] sm:$0xff] %vm3580_vm8, %v3579_v52 }
 0x322 PF: > { %s15_s20 = sadd.s32 1, %s3977_s20   ;;  %s11040_s18 = smov %s3973_s19 }
 0x323   : > { %p12_p5 = scmp.ge.s32.totalorder %s15_s20, 4   ;;  %s11041_s19 = smov %s11043_s21 }
 0x325   :  { %14 = sbr.rel (!%p12_p5) target bundleno = 2 (0x2), region = 82 }

</bundles_post_ra>
